<compile_context>
chip_gen: v5e
topology: v5e:2x2
jax: 0.10.0
libtpu: 0.0.40
codegen_flags: <defaults>
</compile_context>

<pallas_src>
import functools

import numpy as np
import jax
import jax.numpy as jnp
from jax.experimental import pallas as pl
from jax.experimental.pallas import tpu as pltpu

NUM_CLASSES = 10
KSIZE = 4
PAD = 1
CPAD = 128          # lane padding for all channel / feature dims
MAX_TB = 64         # max examples (frames) per grid step


def _round_up(a, m):
    return (a + m - 1) // m * m


# ---------------------------- Pallas kernel ----------------------------
def cnn1d_kernel(x_ref,
                 w1_ref, b1_ref, w2_ref, b2_ref, w3_ref, b3_ref, w4_ref, b4_ref,
                 pt_ref,
                 wf1_ref, bf1_ref, wf2_ref, bf2_ref, wo_ref, bo_ref,
                 o_ref, *, frame, conv_louts):
    R = x_ref.shape[0]                                   # rows = TB * frame
    fpos = jax.lax.broadcasted_iota(jnp.int32, (R, 1), 0) % frame

    h = x_ref[...]                                       # (R, 128) f32
    conv_layers = ((w1_ref, b1_ref), (w2_ref, b2_ref),
                   (w3_ref, b3_ref), (w4_ref, b4_ref))
    for (w_ref, b_ref), lout in zip(conv_layers, conv_louts):
        # Conv1d(k=4, pad=1): out[r] = sum_t h[r + t - 1] @ W_t  (tap-sum form)
        # t=1 needs no shift -> seed the accumulator with it (skips zeros init).
        acc = jnp.dot(h.astype(jnp.bfloat16), w_ref[1],
                      preferred_element_type=jnp.float32)
        for t in (0, 2, 3):
            shift = (1 - t) % R
            ht = pltpu.roll(h, shift, axis=0)
            acc = acc + jnp.dot(ht.astype(jnp.bfloat16), w_ref[t],
                                preferred_element_type=jnp.float32)
        # keep only the valid output rows of each frame (restores zero guards,
        # so the roll wrap-around never leaks across frames / examples)
        valid = (fpos >= 1) & (fpos <= lout)
        h = jnp.where(valid, jnp.maximum(acc + b_ref[...], 0.0), 0.0)

    # AdaptiveAvgPool1d(1): tiny pooling matmul, also maps rows -> one per example
    pooled = jnp.dot(pt_ref[...], h, preferred_element_type=jnp.float32)  # (TB,128)

    # TODO(synk): Dropout(0.5) is identity in eval mode; training-mode stochastic
    # masking (pltpu.prng_seed + stateful_bernoulli) intentionally not applied.
    z = jnp.maximum(jnp.dot(pooled.astype(jnp.bfloat16), wf1_ref[...],
                            preferred_element_type=jnp.float32) + bf1_ref[...], 0.0)
    z = jnp.maximum(jnp.dot(z.astype(jnp.bfloat16), wf2_ref[...],
                            preferred_element_type=jnp.float32) + bf2_ref[...], 0.0)
    # final logits matmul kept in f32 to preserve class margins
    out = jnp.dot(z, wo_ref[...], preferred_element_type=jnp.float32) + bo_ref[...]
    o_ref[...] = out.astype(o_ref.dtype)


# ------------------------ parameter construction -----------------------
def init_params(key, num_classes):
    ks = jax.random.split(key, 14)

    def conv_w(k, cout, cin):
        bound = 1.0 / np.sqrt(cin * KSIZE)
        return jax.random.uniform(k, (cout, cin, KSIZE), jnp.float32, -bound, bound)

    def conv_b(k, cout, cin):
        bound = 1.0 / np.sqrt(cin * KSIZE)
        return jax.random.uniform(k, (cout,), jnp.float32, -bound, bound)

    def lin_w(k, outf, inf):
        bound = 1.0 / np.sqrt(inf)
        return jax.random.uniform(k, (outf, inf), jnp.float32, -bound, bound)

    def lin_b(k, outf, inf):
        bound = 1.0 / np.sqrt(inf)
        return jax.random.uniform(k, (outf,), jnp.float32, -bound, bound)

    return dict(
        w1=conv_w(ks[0], 8, 1),    b1=conv_b(ks[1], 8, 1),
        w2=conv_w(ks[2], 16, 8),   b2=conv_b(ks[3], 16, 8),
        w3=conv_w(ks[4], 32, 16),  b3=conv_b(ks[5], 32, 16),
        w4=conv_w(ks[6], 64, 32),  b4=conv_b(ks[7], 64, 32),
        wf1=lin_w(ks[8], 256, 64),  bf1=lin_b(ks[9], 256, 64),
        wf2=lin_w(ks[10], 64, 256), bf2=lin_b(ks[11], 64, 256),
        wo=lin_w(ks[12], num_classes, 64), bo=lin_b(ks[13], num_classes, 64),
    )


def prepare_params(params):
    """One-time host-side packing into padded, bf16 TPU layouts."""
    def conv_pack(w):
        w = np.asarray(w, np.float32)                     # (Cout, Cin, K) torch layout
        cout, cin, k = w.shape
        m = np.zeros((k, CPAD, CPAD), np.float32)
        m[:, :cin, :cout] = np.transpose(w, (2, 1, 0))    # [t, cin, cout]
        return jnp.asarray(m, jnp.bfloat16)

    def bias_pack(b, width):
        v = np.zeros((1, width), np.float32)
        v[0, :np.asarray(b).shape[0]] = np.asarray(b, np.float32)
        return jnp.asarray(v)

    def linear_pack(w, kpad, npad, dtype):
        w = np.asarray(w, np.float32)                     # (out, in) torch layout
        m = np.zeros((kpad, npad), np.float32)
        m[:w.shape[1], :w.shape[0]] = w.T
        return jnp.asarray(m, dtype)

    return dict(
        w1=conv_pack(params["w1"]), b1=bias_pack(params["b1"], CPAD),
        w2=conv_pack(params["w2"]), b2=bias_pack(params["b2"], CPAD),
        w3=conv_pack(params["w3"]), b3=bias_pack(params["b3"], CPAD),
        w4=conv_pack(params["w4"]), b4=bias_pack(params["b4"], CPAD),
        wf1=linear_pack(params["wf1"], CPAD, 256, jnp.bfloat16),
        bf1=bias_pack(params["bf1"], 256),
        wf2=linear_pack(params["wf2"], 256, CPAD, jnp.bfloat16),
        bf2=bias_pack(params["bf2"], CPAD),
        wo=linear_pack(params["wo"], CPAD, CPAD, jnp.float32),
        bo=bias_pack(params["bo"], CPAD),
        num_classes=int(np.asarray(params["bo"]).shape[0]),
    )


# ------------------------------ wrapper ---------------------------------
def custom_cnn1d_forward(x, packed):
    B, L = x.shape
    num_classes = packed["num_classes"]
    assert L >= 5 and num_classes <= CPAD
    F = L + 2                       # frame: 1 zero guard row each side of the signal
    L4 = L - 4                      # conv4 output length
    TB = min(_round_up(B, 8), MAX_TB)        # examples (frames) per grid step
    B_pad = _round_up(B, TB)
    G = B_pad // TB
    R = TB * F                      # activation rows per grid step (M axis)

    # frame the input: (B_pad, F, 128) with the signal on channel lane 0, rows 1..L
    xf = jnp.zeros((B_pad, F, CPAD), jnp.float32)
    xf = xf.at[:B, 1:1 + L, 0].set(x.astype(jnp.float32))
    xf = xf.reshape(B_pad * F, CPAD)

    # per-tile pooling matrix: PT[j, j*F + 1 + i] = 1/L4 for i < L4
    pool_row = jnp.zeros((F,), jnp.float32).at[1:1 + L4].set(1.0 / L4)
    pt = jnp.kron(jnp.eye(TB, dtype=jnp.float32), pool_row[None, :])   # (TB, R)

    kern = functools.partial(cnn1d_kernel, frame=F,
                             conv_louts=(L - 1, L - 2, L - 3, L - 4))

    weight_args = (packed["w1"], packed["b1"], packed["w2"], packed["b2"],
                   packed["w3"], packed["b3"], packed["w4"], packed["b4"],
                   pt,
                   packed["wf1"], packed["bf1"], packed["wf2"], packed["bf2"],
                   packed["wo"], packed["bo"])

    def resident(a):
        nd = a.ndim
        return pl.BlockSpec(a.shape, lambda g, _nd=nd: (0,) * _nd)

    out = pl.pallas_call(
        kern,
        out_shape=jax.ShapeDtypeStruct((B_pad, CPAD), jnp.float32),
        grid=(G,),
        in_specs=[pl.BlockSpec((R, CPAD), lambda g: (g, 0))]
                 + [resident(a) for a in weight_args],
        out_specs=pl.BlockSpec((TB, CPAD), lambda g: (g, 0)),
        compiler_params=pltpu.CompilerParams(dimension_semantics=("parallel",)),
    )(xf, *weight_args)

    return out[:B, :num_classes]


# ----------------------- pure-JAX reference (check) ---------------------
def reference_forward(x, p):
    h = x[:, None, :]                              # (B, 1, L) — NCL
    for w, b in ((p["w1"], p["b1"]), (p["w2"], p["b2"]),
                 (p["w3"], p["b3"]), (p["w4"], p["b4"])):
        h = jax.lax.conv_general_dilated(
            h, w, window_strides=(1,), padding=[(PAD, PAD)],
            dimension_numbers=("NCH", "OIH", "NCH"))
        h = jnp.maximum(h + b[None, :, None], 0.0)
    h = jnp.mean(h, axis=2)                        # AdaptiveAvgPool1d(1) + flatten
    h = jnp.maximum(h @ p["wf1"].T + p["bf1"], 0.0)
    h = jnp.maximum(h @ p["wf2"].T + p["bf2"], 0.0)
    return h @ p["wo"].T + p["bo"]


if __name__ == "__main__":
    key = jax.random.PRNGKey(0)
    kx, kp = jax.random.split(key)
    B, L = 2, 16
    x = jax.random.normal(kx, (B, L), jnp.float32)
    params = init_params(kp, NUM_CLASSES)
    packed = prepare_params(params)                # one-time host packing

    out = jax.block_until_ready(custom_cnn1d_forward(x, packed))
    ref = reference_forward(x, params)

    assert out.shape == (B, NUM_CLASSES)
    np.testing.assert_allclose(np.asarray(out), np.asarray(ref), rtol=5e-2, atol=5e-2)
    print("KERNEL_OK")
</pallas_src>

<mosaic_0001>
module attributes {stable_mosaic.version = 11 : i64} {
  func.func @cnn1d_kernel(%arg0: i32, %arg1: memref<144x128xf32, #tpu.memory_space<vmem>>, %arg2: memref<4x128x128xbf16, #tpu.memory_space<vmem>>, %arg3: memref<1x128xf32, #tpu.memory_space<vmem>>, %arg4: memref<4x128x128xbf16, #tpu.memory_space<vmem>>, %arg5: memref<1x128xf32, #tpu.memory_space<vmem>>, %arg6: memref<4x128x128xbf16, #tpu.memory_space<vmem>>, %arg7: memref<1x128xf32, #tpu.memory_space<vmem>>, %arg8: memref<4x128x128xbf16, #tpu.memory_space<vmem>>, %arg9: memref<1x128xf32, #tpu.memory_space<vmem>>, %arg10: memref<8x144xf32, #tpu.memory_space<vmem>>, %arg11: memref<128x256xbf16, #tpu.memory_space<vmem>>, %arg12: memref<1x256xf32, #tpu.memory_space<vmem>>, %arg13: memref<256x128xbf16, #tpu.memory_space<vmem>>, %arg14: memref<1x128xf32, #tpu.memory_space<vmem>>, %arg15: memref<128x128xf32, #tpu.memory_space<vmem>>, %arg16: memref<1x128xf32, #tpu.memory_space<vmem>>, %arg17: memref<8x128xf32, #tpu.memory_space<vmem>>) attributes {dimension_semantics = [#tpu.dimension_semantics<parallel>], iteration_bounds = array<i64: 1>, scalar_prefetch = 0 : i64, scratch_operands = 0 : i64, tpu.core_type = #tpu.core_type<tc>, window_params = [{transform_indices = @transform_0, window_bounds = array<i64: 144, 128>}, {pipeline_mode = #tpu.pipeline_mode<synchronous>, transform_indices = @transform_1, window_bounds = array<i64: 4, 128, 128>}, {pipeline_mode = #tpu.pipeline_mode<synchronous>, transform_indices = @transform_2, window_bounds = array<i64: 1, 128>}, {pipeline_mode = #tpu.pipeline_mode<synchronous>, transform_indices = @transform_3, window_bounds = array<i64: 4, 128, 128>}, {pipeline_mode = #tpu.pipeline_mode<synchronous>, transform_indices = @transform_4, window_bounds = array<i64: 1, 128>}, {pipeline_mode = #tpu.pipeline_mode<synchronous>, transform_indices = @transform_5, window_bounds = array<i64: 4, 128, 128>}, {pipeline_mode = #tpu.pipeline_mode<synchronous>, transform_indices = @transform_6, window_bounds = array<i64: 1, 128>}, {pipeline_mode = #tpu.pipeline_mode<synchronous>, transform_indices = @transform_7, window_bounds = array<i64: 4, 128, 128>}, {pipeline_mode = #tpu.pipeline_mode<synchronous>, transform_indices = @transform_8, window_bounds = array<i64: 1, 128>}, {pipeline_mode = #tpu.pipeline_mode<synchronous>, transform_indices = @transform_9, window_bounds = array<i64: 8, 144>}, {pipeline_mode = #tpu.pipeline_mode<synchronous>, transform_indices = @transform_10, window_bounds = array<i64: 128, 256>}, {pipeline_mode = #tpu.pipeline_mode<synchronous>, transform_indices = @transform_11, window_bounds = array<i64: 1, 256>}, {pipeline_mode = #tpu.pipeline_mode<synchronous>, transform_indices = @transform_12, window_bounds = array<i64: 256, 128>}, {pipeline_mode = #tpu.pipeline_mode<synchronous>, transform_indices = @transform_13, window_bounds = array<i64: 1, 128>}, {pipeline_mode = #tpu.pipeline_mode<synchronous>, transform_indices = @transform_14, window_bounds = array<i64: 128, 128>}, {pipeline_mode = #tpu.pipeline_mode<synchronous>, transform_indices = @transform_15, window_bounds = array<i64: 1, 128>}, {transform_indices = @transform_16, window_bounds = array<i64: 8, 128>}]} {
    %0 = tpu.iota {dimensions = array<i32: 0>} : vector<144x1xi32>
    %c18_i32 = arith.constant 18 : i32
    %c0_i32 = arith.constant 0 : i32
    %1 = arith.cmpi eq, %c18_i32, %c0_i32 : i32
    %c1_i32 = arith.constant 1 : i32
    %2 = arith.select %1, %c1_i32, %c18_i32 : i32
    %3 = vector.broadcast %2 : i32 to vector<144x1xi32>
    %4 = arith.remsi %0, %3 : vector<144x1xi32>
    %c0_i32_0 = arith.constant 0 : i32
    %5 = vector.broadcast %c0_i32_0 : i32 to vector<144x1xi32>
    %6 = arith.cmpi ne, %4, %5 : vector<144x1xi32>
    %c0_i32_1 = arith.constant 0 : i32
    %7 = vector.broadcast %c0_i32_1 : i32 to vector<144x1xi32>
    %8 = arith.cmpi slt, %4, %7 : vector<144x1xi32>
    %c0_i32_2 = arith.constant 0 : i32
    %9 = arith.cmpi slt, %2, %c0_i32_2 : i32
    %10 = vector.broadcast %9 : i1 to vector<144x1xi1>
    %11 = vector.broadcast %10 : vector<144x1xi1> to vector<144x1xi1>
    %12 = arith.xori %8, %11 : vector<144x1xi1>
    %13 = arith.andi %12, %6 : vector<144x1xi1>
    %14 = vector.broadcast %2 : i32 to vector<144x1xi32>
    %15 = arith.addi %4, %14 : vector<144x1xi32>
    %16 = arith.select %13, %15, %4 : vector<144x1xi1>, vector<144x1xi32>
    %c0 = arith.constant 0 : index
    %c0_3 = arith.constant 0 : index
    %17 = vector.load %arg1[%c0, %c0_3] : memref<144x128xf32, #tpu.memory_space<vmem>>, vector<144x128xf32>
    %18 = arith.truncf %17 : vector<144x128xf32> to vector<144x128xbf16>
    %c1 = arith.constant 1 : index
    %c0_4 = arith.constant 0 : index
    %c0_5 = arith.constant 0 : index
    %19 = vector.load %arg2[%c1, %c0_4, %c0_5] : memref<4x128x128xbf16, #tpu.memory_space<vmem>>, vector<1x128x128xbf16>
    %20 = vector.shape_cast %19 : vector<1x128x128xbf16> to vector<128x128xbf16>
    %cst = arith.constant dense<0.000000e+00> : vector<144x128xf32>
    %21 = tpu.matmul %18, %20, %cst {dimension_numbers = #tpu.dot_dimension_numbers<[1], [0], [0], [1], [0, 0, 1, 1], [], []>} : vector<144x128xbf16>, vector<128x128xbf16>, vector<144x128xf32> -> vector<144x128xf32>
    %c1_i32_6 = arith.constant 1 : i32
    %22 = tpu.dynamic_rotate %17 by %c1_i32_6 dim 0 : vector<144x128xf32>, i32 -> vector<144x128xf32>
    %23 = arith.truncf %22 : vector<144x128xf32> to vector<144x128xbf16>
    %c0_7 = arith.constant 0 : index
    %c0_8 = arith.constant 0 : index
    %c0_9 = arith.constant 0 : index
    %24 = vector.load %arg2[%c0_7, %c0_8, %c0_9] : memref<4x128x128xbf16, #tpu.memory_space<vmem>>, vector<1x128x128xbf16>
    %25 = vector.shape_cast %24 : vector<1x128x128xbf16> to vector<128x128xbf16>
    %cst_10 = arith.constant dense<0.000000e+00> : vector<144x128xf32>
    %26 = tpu.matmul %23, %25, %cst_10 {dimension_numbers = #tpu.dot_dimension_numbers<[1], [0], [0], [1], [0, 0, 1, 1], [], []>} : vector<144x128xbf16>, vector<128x128xbf16>, vector<144x128xf32> -> vector<144x128xf32>
    %27 = arith.addf %21, %26 : vector<144x128xf32>
    %c143_i32 = arith.constant 143 : i32
    %28 = tpu.dynamic_rotate %17 by %c143_i32 dim 0 : vector<144x128xf32>, i32 -> vector<144x128xf32>
    %29 = arith.truncf %28 : vector<144x128xf32> to vector<144x128xbf16>
    %c2 = arith.constant 2 : index
    %c0_11 = arith.constant 0 : index
    %c0_12 = arith.constant 0 : index
    %30 = vector.load %arg2[%c2, %c0_11, %c0_12] : memref<4x128x128xbf16, #tpu.memory_space<vmem>>, vector<1x128x128xbf16>
    %31 = vector.shape_cast %30 : vector<1x128x128xbf16> to vector<128x128xbf16>
    %cst_13 = arith.constant dense<0.000000e+00> : vector<144x128xf32>
    %32 = tpu.matmul %29, %31, %cst_13 {dimension_numbers = #tpu.dot_dimension_numbers<[1], [0], [0], [1], [0, 0, 1, 1], [], []>} : vector<144x128xbf16>, vector<128x128xbf16>, vector<144x128xf32> -> vector<144x128xf32>
    %33 = arith.addf %27, %32 : vector<144x128xf32>
    %c142_i32 = arith.constant 142 : i32
    %34 = tpu.dynamic_rotate %17 by %c142_i32 dim 0 : vector<144x128xf32>, i32 -> vector<144x128xf32>
    %35 = arith.truncf %34 : vector<144x128xf32> to vector<144x128xbf16>
    %c3 = arith.constant 3 : index
    %c0_14 = arith.constant 0 : index
    %c0_15 = arith.constant 0 : index
    %36 = vector.load %arg2[%c3, %c0_14, %c0_15] : memref<4x128x128xbf16, #tpu.memory_space<vmem>>, vector<1x128x128xbf16>
    %37 = vector.shape_cast %36 : vector<1x128x128xbf16> to vector<128x128xbf16>
    %cst_16 = arith.constant dense<0.000000e+00> : vector<144x128xf32>
    %38 = tpu.matmul %35, %37, %cst_16 {dimension_numbers = #tpu.dot_dimension_numbers<[1], [0], [0], [1], [0, 0, 1, 1], [], []>} : vector<144x128xbf16>, vector<128x128xbf16>, vector<144x128xf32> -> vector<144x128xf32>
    %39 = arith.addf %33, %38 : vector<144x128xf32>
    %c1_i32_17 = arith.constant 1 : i32
    %40 = vector.broadcast %c1_i32_17 : i32 to vector<144x1xi32>
    %41 = arith.cmpi sge, %16, %40 : vector<144x1xi32>
    %c15_i32 = arith.constant 15 : i32
    %42 = vector.broadcast %c15_i32 : i32 to vector<144x1xi32>
    %43 = arith.cmpi sle, %16, %42 : vector<144x1xi32>
    %44 = arith.andi %41, %43 : vector<144x1xi1>
    %c0_18 = arith.constant 0 : index
    %c0_19 = arith.constant 0 : index
    %45 = vector.load %arg3[%c0_18, %c0_19] : memref<1x128xf32, #tpu.memory_space<vmem>>, vector<1x128xf32>
    %46 = vector.broadcast %45 : vector<1x128xf32> to vector<144x128xf32>
    %47 = arith.addf %39, %46 : vector<144x128xf32>
    %cst_20 = arith.constant 0.000000e+00 : f32
    %48 = vector.broadcast %cst_20 : f32 to vector<144x128xf32>
    %49 = arith.maximumf %47, %48 : vector<144x128xf32>
    %cst_21 = arith.constant 0.000000e+00 : f32
    %50 = vector.shape_cast %44 : vector<144x1xi1> to vector<144x1xi1>
    %51 = vector.broadcast %50 : vector<144x1xi1> to vector<144x128xi1>
    %52 = vector.broadcast %cst_21 : f32 to vector<144x128xf32>
    %53 = arith.select %51, %49, %52 : vector<144x128xi1>, vector<144x128xf32>
    %54 = arith.truncf %53 : vector<144x128xf32> to vector<144x128xbf16>
    %c1_22 = arith.constant 1 : index
    %c0_23 = arith.constant 0 : index
    %c0_24 = arith.constant 0 : index
    %55 = vector.load %arg4[%c1_22, %c0_23, %c0_24] : memref<4x128x128xbf16, #tpu.memory_space<vmem>>, vector<1x128x128xbf16>
    %56 = vector.shape_cast %55 : vector<1x128x128xbf16> to vector<128x128xbf16>
    %cst_25 = arith.constant dense<0.000000e+00> : vector<144x128xf32>
    %57 = tpu.matmul %54, %56, %cst_25 {dimension_numbers = #tpu.dot_dimension_numbers<[1], [0], [0], [1], [0, 0, 1, 1], [], []>} : vector<144x128xbf16>, vector<128x128xbf16>, vector<144x128xf32> -> vector<144x128xf32>
    %c1_i32_26 = arith.constant 1 : i32
    %58 = tpu.dynamic_rotate %53 by %c1_i32_26 dim 0 : vector<144x128xf32>, i32 -> vector<144x128xf32>
    %59 = arith.truncf %58 : vector<144x128xf32> to vector<144x128xbf16>
    %c0_27 = arith.constant 0 : index
    %c0_28 = arith.constant 0 : index
    %c0_29 = arith.constant 0 : index
    %60 = vector.load %arg4[%c0_27, %c0_28, %c0_29] : memref<4x128x128xbf16, #tpu.memory_space<vmem>>, vector<1x128x128xbf16>
    %61 = vector.shape_cast %60 : vector<1x128x128xbf16> to vector<128x128xbf16>
    %cst_30 = arith.constant dense<0.000000e+00> : vector<144x128xf32>
    %62 = tpu.matmul %59, %61, %cst_30 {dimension_numbers = #tpu.dot_dimension_numbers<[1], [0], [0], [1], [0, 0, 1, 1], [], []>} : vector<144x128xbf16>, vector<128x128xbf16>, vector<144x128xf32> -> vector<144x128xf32>
    %63 = arith.addf %57, %62 : vector<144x128xf32>
    %c143_i32_31 = arith.constant 143 : i32
    %64 = tpu.dynamic_rotate %53 by %c143_i32_31 dim 0 : vector<144x128xf32>, i32 -> vector<144x128xf32>
    %65 = arith.truncf %64 : vector<144x128xf32> to vector<144x128xbf16>
    %c2_32 = arith.constant 2 : index
    %c0_33 = arith.constant 0 : index
    %c0_34 = arith.constant 0 : index
    %66 = vector.load %arg4[%c2_32, %c0_33, %c0_34] : memref<4x128x128xbf16, #tpu.memory_space<vmem>>, vector<1x128x128xbf16>
    %67 = vector.shape_cast %66 : vector<1x128x128xbf16> to vector<128x128xbf16>
    %cst_35 = arith.constant dense<0.000000e+00> : vector<144x128xf32>
    %68 = tpu.matmul %65, %67, %cst_35 {dimension_numbers = #tpu.dot_dimension_numbers<[1], [0], [0], [1], [0, 0, 1, 1], [], []>} : vector<144x128xbf16>, vector<128x128xbf16>, vector<144x128xf32> -> vector<144x128xf32>
    %69 = arith.addf %63, %68 : vector<144x128xf32>
    %c142_i32_36 = arith.constant 142 : i32
    %70 = tpu.dynamic_rotate %53 by %c142_i32_36 dim 0 : vector<144x128xf32>, i32 -> vector<144x128xf32>
    %71 = arith.truncf %70 : vector<144x128xf32> to vector<144x128xbf16>
    %c3_37 = arith.constant 3 : index
    %c0_38 = arith.constant 0 : index
    %c0_39 = arith.constant 0 : index
    %72 = vector.load %arg4[%c3_37, %c0_38, %c0_39] : memref<4x128x128xbf16, #tpu.memory_space<vmem>>, vector<1x128x128xbf16>
    %73 = vector.shape_cast %72 : vector<1x128x128xbf16> to vector<128x128xbf16>
    %cst_40 = arith.constant dense<0.000000e+00> : vector<144x128xf32>
    %74 = tpu.matmul %71, %73, %cst_40 {dimension_numbers = #tpu.dot_dimension_numbers<[1], [0], [0], [1], [0, 0, 1, 1], [], []>} : vector<144x128xbf16>, vector<128x128xbf16>, vector<144x128xf32> -> vector<144x128xf32>
    %75 = arith.addf %69, %74 : vector<144x128xf32>
    %c1_i32_41 = arith.constant 1 : i32
    %76 = vector.broadcast %c1_i32_41 : i32 to vector<144x1xi32>
    %77 = arith.cmpi sge, %16, %76 : vector<144x1xi32>
    %c14_i32 = arith.constant 14 : i32
    %78 = vector.broadcast %c14_i32 : i32 to vector<144x1xi32>
    %79 = arith.cmpi sle, %16, %78 : vector<144x1xi32>
    %80 = arith.andi %77, %79 : vector<144x1xi1>
    %c0_42 = arith.constant 0 : index
    %c0_43 = arith.constant 0 : index
    %81 = vector.load %arg5[%c0_42, %c0_43] : memref<1x128xf32, #tpu.memory_space<vmem>>, vector<1x128xf32>
    %82 = vector.broadcast %81 : vector<1x128xf32> to vector<144x128xf32>
    %83 = arith.addf %75, %82 : vector<144x128xf32>
    %cst_44 = arith.constant 0.000000e+00 : f32
    %84 = vector.broadcast %cst_44 : f32 to vector<144x128xf32>
    %85 = arith.maximumf %83, %84 : vector<144x128xf32>
    %cst_45 = arith.constant 0.000000e+00 : f32
    %86 = vector.shape_cast %80 : vector<144x1xi1> to vector<144x1xi1>
    %87 = vector.broadcast %86 : vector<144x1xi1> to vector<144x128xi1>
    %88 = vector.broadcast %cst_45 : f32 to vector<144x128xf32>
    %89 = arith.select %87, %85, %88 : vector<144x128xi1>, vector<144x128xf32>
    %90 = arith.truncf %89 : vector<144x128xf32> to vector<144x128xbf16>
    %c1_46 = arith.constant 1 : index
    %c0_47 = arith.constant 0 : index
    %c0_48 = arith.constant 0 : index
    %91 = vector.load %arg6[%c1_46, %c0_47, %c0_48] : memref<4x128x128xbf16, #tpu.memory_space<vmem>>, vector<1x128x128xbf16>
    %92 = vector.shape_cast %91 : vector<1x128x128xbf16> to vector<128x128xbf16>
    %cst_49 = arith.constant dense<0.000000e+00> : vector<144x128xf32>
    %93 = tpu.matmul %90, %92, %cst_49 {dimension_numbers = #tpu.dot_dimension_numbers<[1], [0], [0], [1], [0, 0, 1, 1], [], []>} : vector<144x128xbf16>, vector<128x128xbf16>, vector<144x128xf32> -> vector<144x128xf32>
    %c1_i32_50 = arith.constant 1 : i32
    %94 = tpu.dynamic_rotate %89 by %c1_i32_50 dim 0 : vector<144x128xf32>, i32 -> vector<144x128xf32>
    %95 = arith.truncf %94 : vector<144x128xf32> to vector<144x128xbf16>
    %c0_51 = arith.constant 0 : index
    %c0_52 = arith.constant 0 : index
    %c0_53 = arith.constant 0 : index
    %96 = vector.load %arg6[%c0_51, %c0_52, %c0_53] : memref<4x128x128xbf16, #tpu.memory_space<vmem>>, vector<1x128x128xbf16>
    %97 = vector.shape_cast %96 : vector<1x128x128xbf16> to vector<128x128xbf16>
    %cst_54 = arith.constant dense<0.000000e+00> : vector<144x128xf32>
    %98 = tpu.matmul %95, %97, %cst_54 {dimension_numbers = #tpu.dot_dimension_numbers<[1], [0], [0], [1], [0, 0, 1, 1], [], []>} : vector<144x128xbf16>, vector<128x128xbf16>, vector<144x128xf32> -> vector<144x128xf32>
    %99 = arith.addf %93, %98 : vector<144x128xf32>
    %c143_i32_55 = arith.constant 143 : i32
    %100 = tpu.dynamic_rotate %89 by %c143_i32_55 dim 0 : vector<144x128xf32>, i32 -> vector<144x128xf32>
    %101 = arith.truncf %100 : vector<144x128xf32> to vector<144x128xbf16>
    %c2_56 = arith.constant 2 : index
    %c0_57 = arith.constant 0 : index
    %c0_58 = arith.constant 0 : index
    %102 = vector.load %arg6[%c2_56, %c0_57, %c0_58] : memref<4x128x128xbf16, #tpu.memory_space<vmem>>, vector<1x128x128xbf16>
    %103 = vector.shape_cast %102 : vector<1x128x128xbf16> to vector<128x128xbf16>
    %cst_59 = arith.constant dense<0.000000e+00> : vector<144x128xf32>
    %104 = tpu.matmul %101, %103, %cst_59 {dimension_numbers = #tpu.dot_dimension_numbers<[1], [0], [0], [1], [0, 0, 1, 1], [], []>} : vector<144x128xbf16>, vector<128x128xbf16>, vector<144x128xf32> -> vector<144x128xf32>
    %105 = arith.addf %99, %104 : vector<144x128xf32>
    %c142_i32_60 = arith.constant 142 : i32
    %106 = tpu.dynamic_rotate %89 by %c142_i32_60 dim 0 : vector<144x128xf32>, i32 -> vector<144x128xf32>
    %107 = arith.truncf %106 : vector<144x128xf32> to vector<144x128xbf16>
    %c3_61 = arith.constant 3 : index
    %c0_62 = arith.constant 0 : index
    %c0_63 = arith.constant 0 : index
    %108 = vector.load %arg6[%c3_61, %c0_62, %c0_63] : memref<4x128x128xbf16, #tpu.memory_space<vmem>>, vector<1x128x128xbf16>
    %109 = vector.shape_cast %108 : vector<1x128x128xbf16> to vector<128x128xbf16>
    %cst_64 = arith.constant dense<0.000000e+00> : vector<144x128xf32>
    %110 = tpu.matmul %107, %109, %cst_64 {dimension_numbers = #tpu.dot_dimension_numbers<[1], [0], [0], [1], [0, 0, 1, 1], [], []>} : vector<144x128xbf16>, vector<128x128xbf16>, vector<144x128xf32> -> vector<144x128xf32>
    %111 = arith.addf %105, %110 : vector<144x128xf32>
    %c1_i32_65 = arith.constant 1 : i32
    %112 = vector.broadcast %c1_i32_65 : i32 to vector<144x1xi32>
    %113 = arith.cmpi sge, %16, %112 : vector<144x1xi32>
    %c13_i32 = arith.constant 13 : i32
    %114 = vector.broadcast %c13_i32 : i32 to vector<144x1xi32>
    %115 = arith.cmpi sle, %16, %114 : vector<144x1xi32>
    %116 = arith.andi %113, %115 : vector<144x1xi1>
    %c0_66 = arith.constant 0 : index
    %c0_67 = arith.constant 0 : index
    %117 = vector.load %arg7[%c0_66, %c0_67] : memref<1x128xf32, #tpu.memory_space<vmem>>, vector<1x128xf32>
    %118 = vector.broadcast %117 : vector<1x128xf32> to vector<144x128xf32>
    %119 = arith.addf %111, %118 : vector<144x128xf32>
    %cst_68 = arith.constant 0.000000e+00 : f32
    %120 = vector.broadcast %cst_68 : f32 to vector<144x128xf32>
    %121 = arith.maximumf %119, %120 : vector<144x128xf32>
    %cst_69 = arith.constant 0.000000e+00 : f32
    %122 = vector.shape_cast %116 : vector<144x1xi1> to vector<144x1xi1>
    %123 = vector.broadcast %122 : vector<144x1xi1> to vector<144x128xi1>
    %124 = vector.broadcast %cst_69 : f32 to vector<144x128xf32>
    %125 = arith.select %123, %121, %124 : vector<144x128xi1>, vector<144x128xf32>
    %126 = arith.truncf %125 : vector<144x128xf32> to vector<144x128xbf16>
    %c1_70 = arith.constant 1 : index
    %c0_71 = arith.constant 0 : index
    %c0_72 = arith.constant 0 : index
    %127 = vector.load %arg8[%c1_70, %c0_71, %c0_72] : memref<4x128x128xbf16, #tpu.memory_space<vmem>>, vector<1x128x128xbf16>
    %128 = vector.shape_cast %127 : vector<1x128x128xbf16> to vector<128x128xbf16>
    %cst_73 = arith.constant dense<0.000000e+00> : vector<144x128xf32>
    %129 = tpu.matmul %126, %128, %cst_73 {dimension_numbers = #tpu.dot_dimension_numbers<[1], [0], [0], [1], [0, 0, 1, 1], [], []>} : vector<144x128xbf16>, vector<128x128xbf16>, vector<144x128xf32> -> vector<144x128xf32>
    %c1_i32_74 = arith.constant 1 : i32
    %130 = tpu.dynamic_rotate %125 by %c1_i32_74 dim 0 : vector<144x128xf32>, i32 -> vector<144x128xf32>
    %131 = arith.truncf %130 : vector<144x128xf32> to vector<144x128xbf16>
    %c0_75 = arith.constant 0 : index
    %c0_76 = arith.constant 0 : index
    %c0_77 = arith.constant 0 : index
    %132 = vector.load %arg8[%c0_75, %c0_76, %c0_77] : memref<4x128x128xbf16, #tpu.memory_space<vmem>>, vector<1x128x128xbf16>
    %133 = vector.shape_cast %132 : vector<1x128x128xbf16> to vector<128x128xbf16>
    %cst_78 = arith.constant dense<0.000000e+00> : vector<144x128xf32>
    %134 = tpu.matmul %131, %133, %cst_78 {dimension_numbers = #tpu.dot_dimension_numbers<[1], [0], [0], [1], [0, 0, 1, 1], [], []>} : vector<144x128xbf16>, vector<128x128xbf16>, vector<144x128xf32> -> vector<144x128xf32>
    %135 = arith.addf %129, %134 : vector<144x128xf32>
    %c143_i32_79 = arith.constant 143 : i32
    %136 = tpu.dynamic_rotate %125 by %c143_i32_79 dim 0 : vector<144x128xf32>, i32 -> vector<144x128xf32>
    %137 = arith.truncf %136 : vector<144x128xf32> to vector<144x128xbf16>
    %c2_80 = arith.constant 2 : index
    %c0_81 = arith.constant 0 : index
    %c0_82 = arith.constant 0 : index
    %138 = vector.load %arg8[%c2_80, %c0_81, %c0_82] : memref<4x128x128xbf16, #tpu.memory_space<vmem>>, vector<1x128x128xbf16>
    %139 = vector.shape_cast %138 : vector<1x128x128xbf16> to vector<128x128xbf16>
    %cst_83 = arith.constant dense<0.000000e+00> : vector<144x128xf32>
    %140 = tpu.matmul %137, %139, %cst_83 {dimension_numbers = #tpu.dot_dimension_numbers<[1], [0], [0], [1], [0, 0, 1, 1], [], []>} : vector<144x128xbf16>, vector<128x128xbf16>, vector<144x128xf32> -> vector<144x128xf32>
    %141 = arith.addf %135, %140 : vector<144x128xf32>
    %c142_i32_84 = arith.constant 142 : i32
    %142 = tpu.dynamic_rotate %125 by %c142_i32_84 dim 0 : vector<144x128xf32>, i32 -> vector<144x128xf32>
    %143 = arith.truncf %142 : vector<144x128xf32> to vector<144x128xbf16>
    %c3_85 = arith.constant 3 : index
    %c0_86 = arith.constant 0 : index
    %c0_87 = arith.constant 0 : index
    %144 = vector.load %arg8[%c3_85, %c0_86, %c0_87] : memref<4x128x128xbf16, #tpu.memory_space<vmem>>, vector<1x128x128xbf16>
    %145 = vector.shape_cast %144 : vector<1x128x128xbf16> to vector<128x128xbf16>
    %cst_88 = arith.constant dense<0.000000e+00> : vector<144x128xf32>
    %146 = tpu.matmul %143, %145, %cst_88 {dimension_numbers = #tpu.dot_dimension_numbers<[1], [0], [0], [1], [0, 0, 1, 1], [], []>} : vector<144x128xbf16>, vector<128x128xbf16>, vector<144x128xf32> -> vector<144x128xf32>
    %147 = arith.addf %141, %146 : vector<144x128xf32>
    %c1_i32_89 = arith.constant 1 : i32
    %148 = vector.broadcast %c1_i32_89 : i32 to vector<144x1xi32>
    %149 = arith.cmpi sge, %16, %148 : vector<144x1xi32>
    %c12_i32 = arith.constant 12 : i32
    %150 = vector.broadcast %c12_i32 : i32 to vector<144x1xi32>
    %151 = arith.cmpi sle, %16, %150 : vector<144x1xi32>
    %152 = arith.andi %149, %151 : vector<144x1xi1>
    %c0_90 = arith.constant 0 : index
    %c0_91 = arith.constant 0 : index
    %153 = vector.load %arg9[%c0_90, %c0_91] : memref<1x128xf32, #tpu.memory_space<vmem>>, vector<1x128xf32>
    %154 = vector.broadcast %153 : vector<1x128xf32> to vector<144x128xf32>
    %155 = arith.addf %147, %154 : vector<144x128xf32>
    %cst_92 = arith.constant 0.000000e+00 : f32
    %156 = vector.broadcast %cst_92 : f32 to vector<144x128xf32>
    %157 = arith.maximumf %155, %156 : vector<144x128xf32>
    %cst_93 = arith.constant 0.000000e+00 : f32
    %158 = vector.shape_cast %152 : vector<144x1xi1> to vector<144x1xi1>
    %159 = vector.broadcast %158 : vector<144x1xi1> to vector<144x128xi1>
    %160 = vector.broadcast %cst_93 : f32 to vector<144x128xf32>
    %161 = arith.select %159, %157, %160 : vector<144x128xi1>, vector<144x128xf32>
    %c0_94 = arith.constant 0 : index
    %c0_95 = arith.constant 0 : index
    %162 = vector.load %arg10[%c0_94, %c0_95] : memref<8x144xf32, #tpu.memory_space<vmem>>, vector<8x144xf32>
    %cst_96 = arith.constant dense<0.000000e+00> : vector<8x128xf32>
    %163 = tpu.matmul %162, %161, %cst_96 {dimension_numbers = #tpu.dot_dimension_numbers<[1], [0], [0], [1], [0, 0, 1, 1], [], []>} : vector<8x144xf32>, vector<144x128xf32>, vector<8x128xf32> -> vector<8x128xf32>
    %164 = arith.truncf %163 : vector<8x128xf32> to vector<8x128xbf16>
    %c0_97 = arith.constant 0 : index
    %c0_98 = arith.constant 0 : index
    %165 = vector.load %arg11[%c0_97, %c0_98] : memref<128x256xbf16, #tpu.memory_space<vmem>>, vector<128x256xbf16>
    %cst_99 = arith.constant dense<0.000000e+00> : vector<8x256xf32>
    %166 = tpu.matmul %164, %165, %cst_99 {dimension_numbers = #tpu.dot_dimension_numbers<[1], [0], [0], [1], [0, 0, 1, 1], [], []>} : vector<8x128xbf16>, vector<128x256xbf16>, vector<8x256xf32> -> vector<8x256xf32>
    %c0_100 = arith.constant 0 : index
    %c0_101 = arith.constant 0 : index
    %167 = vector.load %arg12[%c0_100, %c0_101] : memref<1x256xf32, #tpu.memory_space<vmem>>, vector<1x256xf32>
    %168 = vector.broadcast %167 : vector<1x256xf32> to vector<8x256xf32>
    %169 = arith.addf %166, %168 : vector<8x256xf32>
    %cst_102 = arith.constant 0.000000e+00 : f32
    %170 = vector.broadcast %cst_102 : f32 to vector<8x256xf32>
    %171 = arith.maximumf %169, %170 : vector<8x256xf32>
    %172 = arith.truncf %171 : vector<8x256xf32> to vector<8x256xbf16>
    %c0_103 = arith.constant 0 : index
    %c0_104 = arith.constant 0 : index
    %173 = vector.load %arg13[%c0_103, %c0_104] : memref<256x128xbf16, #tpu.memory_space<vmem>>, vector<256x128xbf16>
    %cst_105 = arith.constant dense<0.000000e+00> : vector<8x128xf32>
    %174 = tpu.matmul %172, %173, %cst_105 {dimension_numbers = #tpu.dot_dimension_numbers<[1], [0], [0], [1], [0, 0, 1, 1], [], []>} : vector<8x256xbf16>, vector<256x128xbf16>, vector<8x128xf32> -> vector<8x128xf32>
    %c0_106 = arith.constant 0 : index
    %c0_107 = arith.constant 0 : index
    %175 = vector.load %arg14[%c0_106, %c0_107] : memref<1x128xf32, #tpu.memory_space<vmem>>, vector<1x128xf32>
    %176 = vector.broadcast %175 : vector<1x128xf32> to vector<8x128xf32>
    %177 = arith.addf %174, %176 : vector<8x128xf32>
    %cst_108 = arith.constant 0.000000e+00 : f32
    %178 = vector.broadcast %cst_108 : f32 to vector<8x128xf32>
    %179 = arith.maximumf %177, %178 : vector<8x128xf32>
    %c0_109 = arith.constant 0 : index
    %c0_110 = arith.constant 0 : index
    %180 = vector.load %arg15[%c0_109, %c0_110] : memref<128x128xf32, #tpu.memory_space<vmem>>, vector<128x128xf32>
    %cst_111 = arith.constant dense<0.000000e+00> : vector<8x128xf32>
    %181 = tpu.matmul %179, %180, %cst_111 {dimension_numbers = #tpu.dot_dimension_numbers<[1], [0], [0], [1], [0, 0, 1, 1], [], []>} : vector<8x128xf32>, vector<128x128xf32>, vector<8x128xf32> -> vector<8x128xf32>
    %c0_112 = arith.constant 0 : index
    %c0_113 = arith.constant 0 : index
    %182 = vector.load %arg16[%c0_112, %c0_113] : memref<1x128xf32, #tpu.memory_space<vmem>>, vector<1x128xf32>
    %183 = vector.broadcast %182 : vector<1x128xf32> to vector<8x128xf32>
    %184 = arith.addf %181, %183 : vector<8x128xf32>
    %c0_114 = arith.constant 0 : index
    %c0_115 = arith.constant 0 : index
    %185 = vector.load %arg17[%c0_114, %c0_115] : memref<8x128xf32, #tpu.memory_space<vmem>>, vector<8x128xf32>
    tpu.vector_store %arg17[%c0_114, %c0_115], %184 {strides = array<i32>} : memref<8x128xf32, #tpu.memory_space<vmem>>, vector<8x128xf32>,
    return
  }
  func.func @transform_0(%arg0: i32) -> (i32, i32) {
    %c0_i32 = arith.constant 0 : i32
    %c0_i32_0 = arith.constant 0 : i32
    return %arg0, %c0_i32 : i32, i32
  }
  func.func @transform_1(%arg0: i32) -> (i32, i32, i32) {
    %c0_i32 = arith.constant 0 : i32
    %c0_i32_0 = arith.constant 0 : i32
    %c0_i32_1 = arith.constant 0 : i32
    %c0_i32_2 = arith.constant 0 : i32
    return %c0_i32, %c0_i32_0, %c0_i32_1 : i32, i32, i32
  }
  func.func @transform_2(%arg0: i32) -> (i32, i32) {
    %c0_i32 = arith.constant 0 : i32
    %c0_i32_0 = arith.constant 0 : i32
    %c0_i32_1 = arith.constant 0 : i32
    return %c0_i32, %c0_i32_0 : i32, i32
  }
  func.func @transform_3(%arg0: i32) -> (i32, i32, i32) {
    %c0_i32 = arith.constant 0 : i32
    %c0_i32_0 = arith.constant 0 : i32
    %c0_i32_1 = arith.constant 0 : i32
    %c0_i32_2 = arith.constant 0 : i32
    return %c0_i32, %c0_i32_0, %c0_i32_1 : i32, i32, i32
  }
  func.func @transform_4(%arg0: i32) -> (i32, i32) {
    %c0_i32 = arith.constant 0 : i32
    %c0_i32_0 = arith.constant 0 : i32
    %c0_i32_1 = arith.constant 0 : i32
    return %c0_i32, %c0_i32_0 : i32, i32
  }
  func.func @transform_5(%arg0: i32) -> (i32, i32, i32) {
    %c0_i32 = arith.constant 0 : i32
    %c0_i32_0 = arith.constant 0 : i32
    %c0_i32_1 = arith.constant 0 : i32
    %c0_i32_2 = arith.constant 0 : i32
    return %c0_i32, %c0_i32_0, %c0_i32_1 : i32, i32, i32
  }
  func.func @transform_6(%arg0: i32) -> (i32, i32) {
    %c0_i32 = arith.constant 0 : i32
    %c0_i32_0 = arith.constant 0 : i32
    %c0_i32_1 = arith.constant 0 : i32
    return %c0_i32, %c0_i32_0 : i32, i32
  }
  func.func @transform_7(%arg0: i32) -> (i32, i32, i32) {
    %c0_i32 = arith.constant 0 : i32
    %c0_i32_0 = arith.constant 0 : i32
    %c0_i32_1 = arith.constant 0 : i32
    %c0_i32_2 = arith.constant 0 : i32
    return %c0_i32, %c0_i32_0, %c0_i32_1 : i32, i32, i32
  }
  func.func @transform_8(%arg0: i32) -> (i32, i32) {
    %c0_i32 = arith.constant 0 : i32
    %c0_i32_0 = arith.constant 0 : i32
    %c0_i32_1 = arith.constant 0 : i32
    return %c0_i32, %c0_i32_0 : i32, i32
  }
  func.func @transform_9(%arg0: i32) -> (i32, i32) {
    %c0_i32 = arith.constant 0 : i32
    %c0_i32_0 = arith.constant 0 : i32
    %c0_i32_1 = arith.constant 0 : i32
    return %c0_i32, %c0_i32_0 : i32, i32
  }
  func.func @transform_10(%arg0: i32) -> (i32, i32) {
    %c0_i32 = arith.constant 0 : i32
    %c0_i32_0 = arith.constant 0 : i32
    %c0_i32_1 = arith.constant 0 : i32
    return %c0_i32, %c0_i32_0 : i32, i32
  }
  func.func @transform_11(%arg0: i32) -> (i32, i32) {
    %c0_i32 = arith.constant 0 : i32
    %c0_i32_0 = arith.constant 0 : i32
    %c0_i32_1 = arith.constant 0 : i32
    return %c0_i32, %c0_i32_0 : i32, i32
  }
  func.func @transform_12(%arg0: i32) -> (i32, i32) {
    %c0_i32 = arith.constant 0 : i32
    %c0_i32_0 = arith.constant 0 : i32
    %c0_i32_1 = arith.constant 0 : i32
    return %c0_i32, %c0_i32_0 : i32, i32
  }
  func.func @transform_13(%arg0: i32) -> (i32, i32) {
    %c0_i32 = arith.constant 0 : i32
    %c0_i32_0 = arith.constant 0 : i32
    %c0_i32_1 = arith.constant 0 : i32
    return %c0_i32, %c0_i32_0 : i32, i32
  }
  func.func @transform_14(%arg0: i32) -> (i32, i32) {
    %c0_i32 = arith.constant 0 : i32
    %c0_i32_0 = arith.constant 0 : i32
    %c0_i32_1 = arith.constant 0 : i32
    return %c0_i32, %c0_i32_0 : i32, i32
  }
  func.func @transform_15(%arg0: i32) -> (i32, i32) {
    %c0_i32 = arith.constant 0 : i32
    %c0_i32_0 = arith.constant 0 : i32
    %c0_i32_1 = arith.constant 0 : i32
    return %c0_i32, %c0_i32_0 : i32, i32
  }
  func.func @transform_16(%arg0: i32) -> (i32, i32) {
    %c0_i32 = arith.constant 0 : i32
    %c0_i32_0 = arith.constant 0 : i32
    return %arg0, %c0_i32 : i32, i32
  }
}

</mosaic_0001>

<bundles_post_ra>
// kernel: tpu_custom_call.1
= control target key start
LH: loop header
LB: loop body
LE: loop exit
PB: predicated region body
PF: predicated region fallthrough
CT: control target
= control target key end

     0   :  { %s8151_s0 = inlined_call_operand.hbm [shape: f32[144,128], index: 0, kind: input, shape index: {}]   ;;  %s8152_s1 = inlined_call_operand.hbm [shape: bf16[4,128,128], index: 1, kind: input, shape index: {}]   ;;  %s8153_s2 = inlined_call_operand.vmem [shape: f32[1,128], index: 2, kind: input, shape index: {}]   ;;  %s8154_s3 = inlined_call_operand.hbm [shape: bf16[4,128,128], index: 3, kind: input, shape index: {}]   ;;  %s8155_s4 = inlined_call_operand.hbm [shape: f32[1,128], index: 4, kind: input, shape index: {}]   ;;  %s8156_s5 = inlined_call_operand.hbm [shape: bf16[4,128,128], index: 5, kind: input, shape index: {}]   ;;  %s8157_s6 = inlined_call_operand.vmem [shape: f32[1,128], index: 6, kind: input, shape index: {}]   ;;  %s8158_s7 = inlined_call_operand.hbm [shape: bf16[4,128,128], index: 7, kind: input, shape index: {}]   ;;  %s8159_s8 = inlined_call_operand.vmem [shape: f32[1,128], index: 8, kind: input, shape index: {}]   ;;  %s8160_s9 = inlined_call_operand.hbm [shape: f32[8,144], index: 9, kind: input, shape index: {}]   ;;  %s8161_s10 = inlined_call_operand.hbm [shape: bf16[128,256], index: 10, kind: input, shape index: {}]   ;;  %s8162_s11 = inlined_call_operand.vmem [shape: f32[1,256], index: 11, kind: input, shape index: {}]   ;;  %s8163_s12 = inlined_call_operand.hbm [shape: bf16[256,128], index: 12, kind: input, shape index: {}]   ;;  %s8164_s13 = inlined_call_operand.vmem [shape: f32[1,128], index: 13, kind: input, shape index: {}]   ;;  %s8165_s14 = inlined_call_operand.hbm [shape: f32[128,128], index: 14, kind: input, shape index: {}]   ;;  %s8166_s15 = inlined_call_operand.vmem [shape: f32[1,128], index: 15, kind: input, shape index: {}]   ;;  %s8167_s16 = inlined_call_operand.hbm [shape: f32[8,128], index: 16, kind: output, shape index: {}]  }
   0x1   :  { %8210 = sst [smem:[#allocation54_spill]] %s8151_s0 }
   0x2   :  { %21 = vsyncpa [#allocation3], 0 }
   0x3   :  { %22 = vsyncpa [#allocation6], 0 }
   0x4   :  { %23 = vsyncpa [#allocation9], 0 }
   0x5   :  { %24 = vsyncpa [#allocation12], 0 }
   0x6   :  { %25 = vsyncpa [#allocation15], 0 }
   0x7   :  { %26 = vsyncpa [#allocation18], 0  ;;  %s45_s23 = sshll.u32 %s8152_s1, 4  ;;  %s46_s23 = int_to_ptr.hbm [resolvable:$true] %s45_s23 }
   0x8   :  { %27 = vsyncpa [#allocation4], 0  ;;  %s5618_s24 = smov [#allocation5]   ;;  %s74_s28 = sshll.u32 %s8155_s4, 4  ;;  %s75_s28 = int_to_ptr.hbm [resolvable:$true] %s74_s28 }
   0x9   :  { %s47_s25 = sshll.u32 %s5618_s24, 4  ;;  %s5619_s29 = smov 64   ;;  %s48_s25 = int_to_ptr.vmem [resolvable:$true] %s47_s25 }
   0xa   :  { %s5620_s30 = smov 4   ;;  %s5621_s0 = smov [#allocation8]  }
   0xb   :  { %53 = dma.hbm_to_vmem [thread:$0]  %s46_s23, 4096, %s48_s25, [#allocation6], %s5619_s29, %s5619_s29, %s5620_s30  }
   0xc   :  { %s76_s17 = sshll.u32 %s5621_s0, 4  ;;  %s99_s19 = sshll.u32 %s8158_s7, 4  ;;  %s77_s17 = int_to_ptr.vmem [resolvable:$true] %s76_s17  ;;  %s100_s19 = int_to_ptr.hbm [resolvable:$true] %s99_s19 }
   0xd   :  { %79 = dma.hbm_to_vmem [thread:$0]  %s75_s28, 16, %s77_s17, [#allocation9]  }
   0xe   :  { %s5622_s20 = smov [#allocation11]   ;;  %s125_s24 = sshll.u32 %s8161_s10, 4  ;;  %s126_s24 = int_to_ptr.hbm [resolvable:$true] %s125_s24 }
   0xf   :  { %s101_s21 = sshll.u32 %s5622_s20, 4  ;;  %s5623_s23 = smov [#allocation14]   ;;  %s102_s21 = int_to_ptr.vmem [resolvable:$true] %s101_s21 }
  0x10   :  { %107 = dma.hbm_to_vmem [thread:$0]  %s100_s19, 4096, %s102_s21, [#allocation12], %s5619_s29, %s5619_s29, %s5620_s30  }
  0x11   :  { %s127_s25 = sshll.u32 %s5623_s23, 4  ;;  %s8211_s7 = sld [smem:[#allocation54_spill]]  ;;  %s128_s25 = int_to_ptr.vmem [resolvable:$true] %s127_s25 }
  0x12   :  { %s5624_s28 = smov 128   ;;  %s5625_s17 = smov 8  }
  0x13   :  { %133 = dma.hbm_to_vmem [thread:$0]  %s126_s24, 2048, %s128_s25, [#allocation15], %s5624_s28, %s5624_s28, %s5625_s17  }
  0x14   :  { %s60_s1 = sshll.u32 %s8154_s3, 4  ;;  %s5626_s19 = smov [#allocation2]   ;;  %s61_s1 = int_to_ptr.hbm [resolvable:$true] %s60_s1 }
  0x15   :  { %s34_s20 = sshll.u32 %s5626_s19, 4  ;;  %s5627_s21 = smov [#allocation7]   ;;  %s35_s20 = int_to_ptr.vmem [resolvable:$true] %s34_s20 }
  0x16   :  { %s62_s4 = sshll.u32 %s5627_s21, 4  ;;  %s84_s26 = sshll.u32 %s8156_s5, 4  ;;  %s63_s4 = int_to_ptr.vmem [resolvable:$true] %s62_s4  ;;  %s85_s26 = int_to_ptr.hbm [resolvable:$true] %s84_s26 }
  0x17   :  { %s32_s0 = sshll.u32 %s8211_s7, 4  ;;  %s115_s25 = sshll.u32 %s8160_s9, 4  ;;  %s33_s0 = int_to_ptr.hbm [resolvable:$true] %s32_s0  ;;  %s116_s25 = int_to_ptr.hbm [resolvable:$true] %s115_s25 }
  0x18   :  { %40 = dma.hbm_to_vmem [thread:$0]  %s33_s0, 2304, %s35_s20, [#allocation3], %s5624_s28, %s5624_s28, %s5625_s17  }
  0x19   :  { %68 = dma.hbm_to_vmem [thread:$0]  %s61_s1, 4096, %s63_s4, [#allocation6], %s5619_s29, %s5619_s29, %s5620_s30  }
  0x1a   :  { %s5628_s27 = smov [#allocation10]   ;;  %s5629_s0 = smov [#allocation13]  }
  0x1b   :  { %s86_s7 = sshll.u32 %s5628_s27, 4  ;;  %s117_s5 = sshll.u32 %s5629_s0, 4  ;;  %s87_s7 = int_to_ptr.vmem [resolvable:$true] %s86_s7  ;;  %s118_s5 = int_to_ptr.vmem [resolvable:$true] %s117_s5 }
  0x1c   :  { %92 = dma.hbm_to_vmem [thread:$0]  %s85_s26, 4096, %s87_s7, [#allocation9], %s5619_s29, %s5619_s29, %s5620_s30  }
  0x1d   :  { %s140_s19 = sshll.u32 %s8163_s12, 4  ;;  %s155_s9 = sshll.u32 %s8165_s14, 4  ;;  %s141_s19 = int_to_ptr.hbm [resolvable:$true] %s140_s19  ;;  %s156_s9 = int_to_ptr.hbm [resolvable:$true] %s155_s9 }
  0x1e   :  { %120 = dma.hbm_to_vmem [thread:$0]  %s116_s25, 256, %s118_s5, [#allocation12]  }
  0x1f   :  { %s5630_s21 = smov [#allocation16]   ;;  %s5631_s22 = smov [#allocation17]  }
  0x20   :  { %s142_s4 = sshll.u32 %s5630_s21, 4  ;;  %s157_s23 = sshll.u32 %s5631_s22, 4  ;;  %s143_s4 = int_to_ptr.vmem [resolvable:$true] %s142_s4  ;;  %s158_s23 = int_to_ptr.vmem [resolvable:$true] %s157_s23 }
  0x21   :  { %148 = dma.hbm_to_vmem [thread:$0]  %s141_s19, 2048, %s143_s4, [#allocation15], %s5619_s29, %s5619_s29, %s5620_s30  }
  0x22   :  { %163 = dma.hbm_to_vmem [thread:$0]  %s156_s9, 2048, %s158_s23, [#allocation18], %s5624_s28, %s5624_s28, %s5625_s17  }
  0x23   :  { %5604 = dma.done.wait [#allocation3], 2304  }
  0x24   :  { %5605 = vsyncadd [#allocation3], 4294964992 }
  0x25   :  { %5606 = dma.done.wait [#allocation6], 8192  }
  0x26   :  { %5607 = vsyncadd [#allocation6], 4294959104 }
  0x27   :  { %5608 = dma.done.wait [#allocation9], 4112  }
  0x28   :  { %5609 = vsyncadd [#allocation9], 4294963184 }
  0x29   :  { %5610 = dma.done.wait [#allocation12], 4352  }
  0x2a   :  { %5611 = vsyncadd [#allocation12], 4294962944 }
  0x2b   :  { %5612 = dma.done.wait [#allocation15], 4096  }
  0x2c   :  { %5613 = vsyncadd [#allocation15], 4294963200 }
  0x2d   :  { %5614 = dma.done.wait [#allocation18], 2048  }
  0x2e   :  { %5615 = vsyncadd [#allocation18], 4294965248  ;;  %v5172_v0 = vld [vmem:[#allocation5 + $0x38] sm:$0xff]  ;;  %v5171_v4 = vld [vmem:[#allocation5 + $0x30] sm:$0xff]  ;;  %v206_v18 = vlaneseq  ;;  %s5633_s27 = smov [#allocation19]   ;;  %s4402_s10 = sshll.u32 %s8167_s16, 4  ;;  %s4403_s10 = int_to_ptr.hbm [resolvable:$true] %s4402_s10 }
  0x2f   :  { %v5164_v1 = vld [vmem:[#allocation5 + $0x78] sm:$0xff]  ;;  %991 = vmatpush.bf16.msra.mxu0 %v5172_v0  ;;  %v5163_v5 = vld [vmem:[#allocation5 + $0x70] sm:$0xff]  ;;  %v5170_v8 = vld [vmem:[#allocation5 + $0x28] sm:$0xff]  ;;  %s4400_s7 = sshll.u32 %s5633_s27, 4  ;;  %s4401_s7 = int_to_ptr.vmem [resolvable:$true] %s4400_s7 }
  0x30   :  { %v5180_v2 = vld [vmem:[#allocation5 + $0xb8] sm:$0xff]  ;;  %1093 = vmatpush.bf16.msra.mxu1 %v5164_v1  ;;  %v5179_v6 = vld [vmem:[#allocation5 + $0xb0] sm:$0xff]  ;;  %v5162_v9 = vld [vmem:[#allocation5 + $0x68] sm:$0xff]  ;;  %v5773_v22 = vshrl.u32 %v206_v18, 7 }
  0x31   :  { %v5188_v3 = vld [vmem:[#allocation5 + $0xf8] sm:$0xff]  ;;  %1258 = vmatpush.bf16.msra.mxu2 %v5180_v2  ;;  %v5187_v7 = vld [vmem:[#allocation5 + $0xf0] sm:$0xff]  ;;  %v5178_v10 = vld [vmem:[#allocation5 + $0xa8] sm:$0xff] }
  0x32   :  { %1441 = vmatpush.bf16.msra.mxu3 %v5188_v3  ;;  %v5186_v11 = vld [vmem:[#allocation5 + $0xe8] sm:$0xff]  ;;  %v5169_v12 = vld [vmem:[#allocation5 + $0x20] sm:$0xff]  ;;  %v5168_v16 = vld [vmem:[#allocation5 + $0x18] sm:$0xff]  ;;  %vm899_vm0 = vcmp.lt.s32.totalorder %v5773_v22, 1  ;;  %vm1165_vm1 = vcmp.lt.s32.totalorder %v5773_v22, 7  ;;  %vm1348_vm2 = vcmp.lt.s32.totalorder %v5773_v22, 6 }
  0x33   :  { %992 = vmatpush.bf16.msra.mxu0 %v5171_v4  ;;  %v5161_v13 = vld [vmem:[#allocation5 + $0x60] sm:$0xff]  ;;  %v5160_v17 = vld [vmem:[#allocation5 + $0x58] sm:$0xff]  ;;  %v5167_v21 = vld [vmem:[#allocation5 + $0x10] sm:$0xff] }
  0x34   :  { %1094 = vmatpush.bf16.msra.mxu1 %v5163_v5  ;;  %v5177_v14 = vld [vmem:[#allocation5 + $0xa0] sm:$0xff]  ;;  %v5176_v19 = vld [vmem:[#allocation5 + $0x98] sm:$0xff]  ;;  %v5159_v23 = vld [vmem:[#allocation5 + $0x50] sm:$0xff] }
  0x35   :  { %1259 = vmatpush.bf16.msra.mxu2 %v5179_v6  ;;  %v5185_v15 = vld [vmem:[#allocation5 + $0xe0] sm:$0xff]  ;;  %v5184_v20 = vld [vmem:[#allocation5 + $0xd8] sm:$0xff]  ;;  %v5175_v24 = vld [vmem:[#allocation5 + $0x90] sm:$0xff] }
  0x36   :  { %1442 = vmatpush.bf16.msra.mxu3 %v5187_v7  ;;  %v5775_v25 = vld [vmem:[#allocation2] sm:$0xff]  ;;  %v838_v27 = vld [vmem:[#allocation2 + $0x8] sm:$0xff]  ;;  %v5779_v29 = vld [vmem:[#allocation2 + $0x10] sm:$0xff] }
  0x37   :  { %993 = vmatpush.bf16.msra.mxu0 %v5170_v8  ;;  %v5183_v26 = vld [vmem:[#allocation5 + $0xd0] sm:$0xff]  ;;  %v5777_v28 = vld [vmem:[#allocation2 + $0x88] sm:$0xff]  ;;  %v881_v30 = vrot.slane %v5775_v25, 7  ;;  %v5166_v31 = vld [vmem:[#allocation5 + $0x8] sm:$0xff]  ;;  %v882_v33 = vrot.slane %v838_v27, 7  ;;  %v1147_v35 = vrot.slane %v5775_v25, 1  ;;  %v855_v54 = vpack.c.bf16 %v838_v27, %v5775_v25 }
  0x38   :  { %1095 = vmatpush.bf16.msra.mxu1 %v5162_v9  ;;  %v5158_v32 = vld [vmem:[#allocation5 + $0x48] sm:$0xff]  ;;  %v898_v34 = vrot.slane %v5777_v28, 7  ;;  %v1148_v36 = vrot.slane %v838_v27, 1  ;;  %v1149_v39 = vrot.slane %v5779_v29, 1  ;;  %v1330_v40 = vrot.slane %v5775_v25, 2  ;;  %v5165_v43 = vld [vmem:[#allocation5] sm:$0xff] }
  0x39   :  { %1260 = vmatpush.bf16.msra.mxu2 %v5178_v10  ;;  %v5174_v37 = vld [vmem:[#allocation5 + $0x88] sm:$0xff]  ;;  %v1331_v41 = vrot.slane %v838_v27, 2  ;;  %v1332_v42 = vrot.slane %v5779_v29, 2  ;;  %v5157_v44 = vld [vmem:[#allocation5 + $0x40] sm:$0xff]  ;;  %v916_v45 = vsel %vm899_vm0, %v881_v30, %v882_v33  ;;  %v841_v58 = vld [vmem:[#allocation2 + $0x20] sm:$0xff]  ;;  %v883_v59 = vrot.slane %v5779_v29, 7 }
  0x3a   :  { %1443 = vmatpush.bf16.msra.mxu3 %v5186_v11  ;;  %v5182_v38 = vld [vmem:[#allocation5 + $0xc8] sm:$0xff]  ;;  %v917_v46 = vsel %vm899_vm0, %v898_v34, %v881_v30  ;;  %v1182_v47 = vsel %vm1165_vm1, %v1147_v35, %v1148_v36  ;;  %v5173_v48 = vld [vmem:[#allocation5 + $0x80] sm:$0xff]  ;;  %v1181_v50 = vsel %vm1165_vm1, %v1148_v36, %v1149_v39  ;;  %v1151_v62 = vrot.slane %v841_v58, 1  ;;  %v842_v11 = vld [vmem:[#allocation2 + $0x28] sm:$0xff] }
  0x3b   :  { %994 = vmatpush.bf16.msra.mxu0 %v5169_v12  ;;  %v5181_v49 = vld [vmem:[#allocation5 + $0xc0] sm:$0xff]  ;;  %v1364_v51 = vsel %vm1348_vm2, %v1331_v41, %v1332_v42  ;;  %v1365_v52 = vsel %vm1348_vm2, %v1330_v40, %v1331_v41  ;;  %v918_v53 = vpack.c.bf16 %v916_v45, %v917_v46  ;;  %v1184_v55 = vpack.c.bf16 %v1181_v50, %v1182_v47  ;;  %v840_v57 = vld [vmem:[#allocation2 + $0x18] sm:$0xff] }
  0x3c   :  { %1096 = vmatpush.bf16.msra.mxu1 %v5161_v13  ;;  %v1367_v56 = vpack.c.bf16 %v1364_v51, %v1365_v52  ;;  %v884_v60 = vrot.slane %v840_v57, 7  ;;  %v1150_v61 = vrot.slane %v840_v57, 1  ;;  %v1333_v63 = vrot.slane %v840_v57, 2  ;;  %v843_v12 = vld [vmem:[#allocation2 + $0x30] sm:$0xff] }
  0x3d   :  { %1261 = vmatpush.bf16.msra.mxu2 %v5177_v14  ;;  %v1334_v0 = vrot.slane %v841_v58, 2  ;;  %v915_v2 = vsel %vm899_vm0, %v882_v33, %v883_v59  ;;  %v856_v8 = vpack.c.bf16 %v840_v57, %v5779_v29  ;;  %v885_v13 = vrot.slane %v841_v58, 7  ;;  %v845_v33 = vld [vmem:[#allocation2 + $0x40] sm:$0xff] }
  0x3e   :  { %1444 = vmatpush.bf16.msra.mxu3 %v5185_v15  ;;  %v914_v1 = vsel %vm899_vm0, %v883_v59, %v884_v60  ;;  %v1179_v3 = vsel %vm1165_vm1, %v1150_v61, %v1151_v62  ;;  %v1180_v4 = vsel %vm1165_vm1, %v1149_v39, %v1150_v61  ;;  %v1363_v6 = vsel %vm1348_vm2, %v1332_v42, %v1333_v63 }
  0x3f   :  { %995 = vmatpush.bf16.msra.mxu0 %v5168_v16  ;;  %v1362_v5 = vsel %vm1348_vm2, %v1333_v63, %v1334_v0  ;;  %v919_v7 = vpack.c.bf16 %v914_v1, %v915_v2  ;;  %v1185_v9 = vpack.c.bf16 %v1179_v3, %v1180_v4  ;;  %v886_v14 = vrot.slane %v842_v11, 7 }
  0x40   :  { %1097 = vmatpush.bf16.msra.mxu1 %v5160_v17  ;;  %v1368_v10 = vpack.c.bf16 %v1362_v5, %v1363_v6  ;;  %v1152_v15 = vrot.slane %v842_v11, 1  ;;  %v1153_v16 = vrot.slane %v843_v12, 1  ;;  %v1335_v17 = vrot.slane %v842_v11, 2 }
  0x41   :  { %1262 = vmatpush.bf16.msra.mxu2 %v5176_v19  ;;  %v1336_v18 = vrot.slane %v843_v12, 2  ;;  %v912_v19 = vsel %vm899_vm0, %v885_v13, %v886_v14  ;;  %v857_v29 = vpack.c.bf16 %v842_v11, %v841_v58  ;;  %v887_v36 = vrot.slane %v843_v12, 7 }
  0x42   :  { %1445 = vmatpush.bf16.msra.mxu3 %v5184_v20  ;;  %v913_v20 = vsel %vm899_vm0, %v884_v60, %v885_v13  ;;  %v1155_v39 = vrot.slane %v845_v33, 1  ;;  %v1338_v42 = vrot.slane %v845_v33, 2 }
  0x43   :  { %996 = vmatpush.bf16.msra.mxu0 %v5167_v21  ;;  %v1177_v21 = vsel %vm1165_vm1, %v1152_v15, %v1153_v16  ;;  %v920_v27 = vpack.c.bf16 %v912_v19, %v913_v20 }
  0x44   :  { %1098 = vmatpush.bf16.msra.mxu1 %v5159_v23  ;;  %v1178_v23 = vsel %vm1165_vm1, %v1151_v62, %v1152_v15 }
  0x45   :  { %1263 = vmatpush.bf16.msra.mxu2 %v5175_v24  ;;  %v1360_v24 = vsel %vm1348_vm2, %v1335_v17, %v1336_v18  ;;  %v1186_v30 = vpack.c.bf16 %v1177_v21, %v1178_v23 }
  0x46   :  { %1446 = vmatpush.bf16.msra.mxu3 %v5183_v26  ;;  %v1361_v26 = vsel %vm1348_vm2, %v1334_v0, %v1335_v17 }
  0x47   :  { %997 = vmatpush.bf16.msra.mxu0 %v5166_v31  ;;  %v1369_v31 = vpack.c.bf16 %v1360_v24, %v1361_v26 }
  0x48   :  { %1099 = vmatpush.bf16.msra.mxu1 %v5158_v32  ;;  %v844_v32 = vld [vmem:[#allocation2 + $0x38] sm:$0xff] }
  0x49   :  { %1264 = vmatpush.bf16.msra.mxu2 %v5174_v37  ;;  %v888_v37 = vrot.slane %v844_v32, 7  ;;  %v1337_v41 = vrot.slane %v844_v32, 2  ;;  %v858_v50 = vpack.c.bf16 %v844_v32, %v843_v12 }
  0x4a   :  { %1447 = vmatpush.bf16.msra.mxu3 %v5182_v38  ;;  %v1154_v38 = vrot.slane %v844_v32, 1 }
  0x4b   :  { %998 = vmatpush.bf16.msra.mxu0 %v5165_v43  ;;  %v910_v43 = vsel %vm899_vm0, %v887_v36, %v888_v37  ;;  %v1358_v47 = vsel %vm1348_vm2, %v1337_v41, %v1338_v42 }
  0x4c   :  { %1100 = vmatpush.bf16.msra.mxu1 %v5157_v44  ;;  %v911_v44 = vsel %vm899_vm0, %v886_v14, %v887_v36  ;;  %v1175_v45 = vsel %vm1165_vm1, %v1154_v38, %v1155_v39  ;;  %v1176_v46 = vsel %vm1165_vm1, %v1153_v16, %v1154_v38 }
  0x4d   :  { %1265 = vmatpush.bf16.msra.mxu2 %v5173_v48  ;;  %v1359_v48 = vsel %vm1348_vm2, %v1336_v18, %v1337_v41  ;;  %v1187_v51 = vpack.c.bf16 %v1175_v45, %v1176_v46 }
  0x4e   :  { %1448 = vmatpush.bf16.msra.mxu3 %v5181_v49  ;;  %999 = vmatmul.bf16.vlgmr.msra.gmra.mxu0 %v918_v53  ;;  %v921_v49 = vpack.c.bf16 %v910_v43, %v911_v44  ;;  %v1370_v52 = vpack.c.bf16 %v1358_v47, %v1359_v48  ;;  %v846_v53 = vld [vmem:[#allocation2 + $0x48] sm:$0xff] }
  0x4f   :  { %1101 = vmatmul.bf16.vlgmr.msra.gmra.mxu1 %v855_v54  ;;  %v847_v54 = vld [vmem:[#allocation2 + $0x50] sm:$0xff]  ;;  %v1156_v57 = vrot.slane %v846_v53, 1  ;;  %v1339_v59 = vrot.slane %v846_v53, 2  ;;  %v859_v4 = vpack.c.bf16 %v846_v53, %v845_v33 }
  0x50   :  { %1266 = vmatmul.bf16.vlgmr.msra.gmra.mxu2 %v1184_v55  ;;  %v889_v55 = vrot.slane %v845_v33, 7  ;;  %v1157_v58 = vrot.slane %v847_v54, 1  ;;  %v1340_v60 = vrot.slane %v847_v54, 2  ;;  %v5195_v33 = vld [vmem:[#allocation7 + $0x70] sm:$0xff] }
  0x51   :  { %1449 = vmatmul.bf16.vlgmr.msra.gmra.mxu3 %v1367_v56  ;;  %v890_v56 = vrot.slane %v846_v53, 7  ;;  %v1174_v0 = vsel %vm1165_vm1, %v1155_v39, %v1156_v57  ;;  %v1357_v2 = vsel %vm1348_vm2, %v1338_v42, %v1339_v59  ;;  %v5899_v53 = vld [vmem:[#allocation2 + $0x78] sm:$0xff] }
  0x52   :  { %v909_v62 = vsel %vm899_vm0, %v888_v37, %v889_v55  ;;  %v1173_v63 = vsel %vm1165_vm1, %v1156_v57, %v1157_v58  ;;  %v1356_v1 = vsel %vm1348_vm2, %v1339_v59, %v1340_v60  ;;  %v229_v37 = vshrl.u32 %v5773_v22, 16 }
  0x53   :  { %v908_v61 = vsel %vm899_vm0, %v889_v55, %v890_v56  ;;  %v1188_v5 = vpack.c.bf16 %v1173_v63, %v1174_v0  ;;  %v1371_v6 = vpack.c.bf16 %v1356_v1, %v1357_v2  ;;  %v896_v0 = vrot.slane %v5899_v53, 7 }
  0x54   :  { %v922_v3 = vpack.c.bf16 %v908_v61, %v909_v62  ;;  %v5884_v45 = vmul.u32 14564, %v229_v37  ;;  %v234_v57 = vmul.u32 58254, %v229_v37 }
  0x56   :  { %v238_v37 = vshrl.u32 %v5884_v45, 16 }
  0x5e   :  { %1004 = vmatmul.bf16.gmra.mxu0 %v919_v7  ;;  %v848_v7 = vld [vmem:[#allocation2 + $0x58] sm:$0xff] }
  0x5f   :  { %1106 = vmatmul.bf16.gmra.mxu1 %v856_v8  ;;  %v5859_v8 = vld [vmem:[#allocation2 + $0x60] sm:$0xff]  ;;  %v1158_v11 = vrot.slane %v848_v7, 1  ;;  %v1341_v13 = vrot.slane %v848_v7, 2  ;;  %v860_v23 = vpack.c.bf16 %v848_v7, %v847_v54 }
  0x60   :  { %1271 = vmatmul.bf16.gmra.mxu2 %v1185_v9  ;;  %v891_v9 = vrot.slane %v847_v54, 7  ;;  %v1159_v12 = vrot.slane %v5859_v8, 1  ;;  %v1342_v14 = vrot.slane %v5859_v8, 2  ;;  %v893_v32 = vrot.slane %v5859_v8, 7 }
  0x61   :  { %1454 = vmatmul.bf16.gmra.mxu3 %v1368_v10  ;;  %v892_v10 = vrot.slane %v848_v7, 7  ;;  %v1172_v18 = vsel %vm1165_vm1, %v1157_v58, %v1158_v11  ;;  %v1355_v20 = vsel %vm1348_vm2, %v1340_v60, %v1341_v13  ;;  %v5632_v60 = vmov 0  }
  0x62   :  { %v907_v16 = vsel %vm899_vm0, %v890_v56, %v891_v9  ;;  %v1171_v17 = vsel %vm1165_vm1, %v1158_v11, %v1159_v12  ;;  %v1354_v19 = vsel %vm1348_vm2, %v1341_v13, %v1342_v14  ;;  %v1162_v11 = vrot.slane %v5899_v53, 1 }
  0x63   :  { %v906_v15 = vsel %vm899_vm0, %v891_v9, %v892_v10  ;;  %v1189_v24 = vpack.c.bf16 %v1171_v17, %v1172_v18  ;;  %v1372_v26 = vpack.c.bf16 %v1354_v19, %v1355_v20  ;;  %v905_v47 = vsel %vm899_vm0, %v892_v10, %v893_v32  ;;  %v5212_v17 = vld [vmem:[#allocation7 + $0xb8] sm:$0xff] }
  0x64   :  { %v923_v21 = vpack.c.bf16 %v906_v15, %v907_v16  ;;  %v5931_v13 = vadd.s32 16, %v5773_v22  ;;  %v5193_v16 = vld [vmem:[#allocation7 + $0x60] sm:$0xff]  ;;  %v5220_v18 = vld [vmem:[#allocation7 + $0xf8] sm:$0xff]  ;;  %2062 = vmatpush.bf16.msrb.mxu2 %v5212_v17 }
  0x65   :  { %2244 = vmatpush.bf16.msrb.mxu3 %v5220_v18 }
  0x66   :  { %v286_v19 = vand.u32 65535, %v5931_v13 }
  0x6e   :  { %1009 = vmatmul.bf16.gmra.mxu0 %v920_v27  ;;  %v850_v27 = vld [vmem:[#allocation2 + $0x68] sm:$0xff] }
  0x6f   :  { %1111 = vmatmul.bf16.gmra.mxu1 %v857_v29  ;;  %v5196_v29 = vld [vmem:[#allocation7 + $0x78] sm:$0xff]  ;;  %v894_v36 = vrot.slane %v850_v27, 7  ;;  %v1160_v39 = vrot.slane %v850_v27, 1  ;;  %v1343_v42 = vrot.slane %v850_v27, 2  ;;  %v861_v63 = vpack.c.bf16 %v850_v27, %v5859_v8 }
  0x70   :  { %1276 = vmatmul.bf16.gmra.mxu2 %v1186_v30  ;;  %v5875_v30 = vld [vmem:[#allocation2 + $0x70] sm:$0xff]  ;;  %1898 = vmatpush.bf16.msrb.mxu1 %v5196_v29 }
  0x71   :  { %1459 = vmatmul.bf16.gmra.mxu3 %v1369_v31  ;;  %v228_v31 = vand.u32 65535, %v5773_v22  ;;  %v1161_v41 = vrot.slane %v5875_v30, 1  ;;  %v1344_v43 = vrot.slane %v5875_v30, 2  ;;  %v904_v48 = vsel %vm899_vm0, %v893_v32, %v894_v36 }
  0x72   :  { %v1353_v56 = vsel %vm1348_vm2, %v1342_v14, %v1343_v42  ;;  %v895_v59 = vrot.slane %v5875_v30, 7  ;;  %v924_v62 = vpack.c.bf16 %v904_v48, %v905_v47  ;;  %v289_v47 = vmul.u32 14564, %v286_v19 }
  0x73   :  { %v5880_v38 = vmul.u32 58254, %v228_v31  ;;  %v231_v44 = vmul.u32 14564, %v228_v31  ;;  %v1352_v55 = vsel %vm1348_vm2, %v1343_v42, %v1344_v43  ;;  %v5951_v32 = vsel %vm1165_vm1, %v1161_v41, %v1162_v11  ;;  %v5192_v42 = vld [vmem:[#allocation7 + $0x58] sm:$0xff] }
  0x74   :  { %1899 = vmatpush.bf16.msrb.mxu1 %v5195_v33  ;;  %v1373_v2 = vpack.c.bf16 %v1352_v55, %v1353_v56  ;;  %v5919_v9 = vsel %vm899_vm0, %v894_v36, %v895_v59  ;;  %v5926_v8 = vsel %vm899_vm0, %v895_v59, %v896_v0  ;;  %v287_v33 = vshrl.u32 %v5931_v13, 16 }
  0x75   :  { %v235_v46 = vshll.u32 %v5880_v38, 16  ;;  %v236_v20 = vshrl.u32 %v5880_v38, 16  ;;  %v290_v36 = vmul.u32 58254, %v286_v19 }
  0x76   :  { %v291_v48 = vmul.u32 14564, %v287_v33 }
  0x77   :  { %vm239_vm3 = vc.u32 %v231_v44, %v235_v46  ;;  %v241_v54 = vadd.s32 %v235_v46, %v231_v44  ;;  %v5211_v44 = vld [vmem:[#allocation7 + $0xb0] sm:$0xff] }
  0x78   :  { %v240_v61 = vsel %vm239_vm3, 1, %v5632_v60  ;;  %v5219_v46 = vld [vmem:[#allocation7 + $0xf0] sm:$0xff]  ;;  %2063 = vmatpush.bf16.msrb.mxu2 %v5211_v44  ;;  %v295_v55 = vshll.u32 %v291_v48, 16 }
  0x79   :  { %2245 = vmatpush.bf16.msrb.mxu3 %v5219_v46 }
  0x7e   :  { %1014 = vmatmul.bf16.gmra.mxu0 %v921_v49  ;;  %v5892_v49 = vadd.s32 8, %v5773_v22 }
  0x7f   :  { %1116 = vmatmul.bf16.gmra.mxu1 %v858_v50  ;;  %v237_v50 = vshll.u32 %v5884_v45, 16 }
  0x80   :  { %1281 = vmatmul.bf16.gmra.mxu2 %v1187_v51  ;;  %v1169_v51 = vsel %vm1165_vm1, %v1160_v39, %v1161_v41  ;;  %v257_v58 = vand.u32 65535, %v5892_v49 }
  0x81   :  { %1464 = vmatmul.bf16.gmra.mxu3 %v1370_v52  ;;  %v1170_v52 = vsel %vm1165_vm1, %v1159_v12, %v1160_v39  ;;  %vm243_vm4 = vc.u32 %v241_v54, %v237_v50  ;;  %v293_v50 = vshll.u32 %v290_v36, 16  ;;  %v292_v54 = vmul.u32 58254, %v287_v33 }
  0x82   :  { %v1190_v1 = vpack.c.bf16 %v1169_v51, %v1170_v52  ;;  %v5915_v7 = vmul.u32 58254, %v257_v58  ;;  %v244_v10 = vsel %vm243_vm4, 1, %v5632_v60  ;;  %v260_v14 = vmul.u32 14564, %v257_v58 }
  0x83   :  { %vm297_vm7 = vc.u32 %v289_v47, %v293_v50  ;;  %v299_v56 = vadd.s32 %v293_v50, %v289_v47 }
  0x84   :  { %v265_v58 = vshrl.u32 %v5915_v7, 16 }
  0x85   :  { %vm301_vm8 = vc.u32 %v299_v56, %v295_v55 }
  0x8e   :  { %1019 = vmatmul.bf16.gmra.mxu0 %v922_v3  ;;  %v5912_v3 = vld [vmem:[#allocation2 + $0x80] sm:$0xff] }
  0x8f   :  { %1121 = vmatmul.bf16.gmra.mxu1 %v859_v4  ;;  %v258_v4 = vshrl.u32 %v5892_v49, 16  ;;  %v1163_v12 = vrot.slane %v5912_v3, 1  ;;  %v1346_v27 = vrot.slane %v5912_v3, 2  ;;  %v897_v19 = vrot.slane %v5912_v3, 7 }
  0x90   :  { %1286 = vmatmul.bf16.gmra.mxu2 %v1188_v5  ;;  %v5194_v5 = vld [vmem:[#allocation7 + $0x68] sm:$0xff] }
  0x91   :  { %1469 = vmatmul.bf16.gmra.mxu3 %v1371_v6  ;;  %v242_v6 = vadd.s32 %v240_v61, %v234_v57  ;;  %v5933_v15 = vmul.u32 14564, %v258_v4  ;;  %1900 = vmatpush.bf16.msrb.mxu1 %v5194_v5  ;;  %v5947_v31 = vsel %vm1165_vm1, %v1162_v11, %v1163_v12  ;;  %v263_v38 = vmul.u32 58254, %v258_v4 }
  0x92   :  { %v298_v57 = vsel %vm297_vm7, 1, %v5632_v60  ;;  %v5968_v4 = vadd.s32 24, %v5773_v22  ;;  %v862_v5 = vpack.c.bf16 %v5899_v53, %v5875_v30  ;;  %v1191_v11 = vpack.c.bf16 %v5947_v31, %v5951_v32  ;;  %v5217_v32 = vld [vmem:[#allocation7 + $0xe0] sm:$0xff] }
  0x93   :  { %v266_v29 = vshll.u32 %v5933_v15, 16  ;;  %v1164_v31 = vrot.slane %v5777_v28, 1  ;;  %v5995_v47 = vsel %vm899_vm0, %v897_v19, %v898_v34 }
  0x94   :  { %v315_v17 = vand.u32 65535, %v5968_v4  ;;  %v316_v30 = vshrl.u32 %v5968_v4, 16 }
  0x95   :  { %1901 = vmatpush.bf16.msrb.mxu1 %v5193_v16  ;;  %v6014_v34 = vsel %vm1165_vm1, %v1164_v31, %v1147_v35 }
  0x96   :  { %v5979_v33 = vmul.u32 58254, %v315_v17  ;;  %v5988_v44 = vmul.u32 14564, %v316_v30 }
  0x98   :  { %v322_v46 = vshll.u32 %v5979_v33, 16 }
  0x99   :  { %1902 = vmatpush.bf16.msrb.mxu1 %v5192_v42  ;;  %v318_v42 = vmul.u32 14564, %v315_v17 }
  0x9b   :  { %vm6021_vm9 = vc.u32 %v318_v42, %v322_v46  ;;  %v328_v35 = vadd.s32 %v322_v46, %v318_v42  ;;  %v5213_v42 = vld [vmem:[#allocation7 + $0xc0] sm:$0xff] }
  0x9e   :  { %1024 = vmatmul.bf16.gmra.mxu0 %v923_v21  ;;  %v246_v21 = vadd.s32 %v244_v10, %v242_v6  ;;  %v302_v6 = vsel %vm301_vm8, 1, %v5632_v60 }
  0x9f   :  { %1126 = vmatmul.bf16.gmra.mxu1 %v860_v23  ;;  %v264_v23 = vshll.u32 %v5915_v7, 16  ;;  %v267_v7 = vshrl.u32 %v5933_v15, 16  ;;  %v296_v15 = vshrl.u32 %v291_v48, 16 }
  0xa0   :  { %1291 = vmatmul.bf16.gmra.mxu2 %v1189_v24  ;;  %v925_v24 = vpack.c.bf16 %v5926_v8, %v5919_v9  ;;  %v247_v51 = vadd.s32 %v246_v21, %v236_v20  ;;  %v5190_v21 = vld [vmem:[#allocation7 + $0x48] sm:$0xff]  ;;  %v6001_v9 = vsel %vm899_vm0, %v896_v0, %v897_v19  ;;  %v5189_v8 = vld [vmem:[#allocation7 + $0x40] sm:$0xff]  ;;  %v5216_v0 = vld [vmem:[#allocation7 + $0xd8] sm:$0xff] }
  0xa1   :  { %1474 = vmatmul.bf16.gmra.mxu3 %v1372_v26  ;;  %v1345_v26 = vrot.slane %v5899_v53, 2  ;;  %vm268_vm5 = vc.u32 %v260_v14, %v264_v23  ;;  %v270_v39 = vadd.s32 %v264_v23, %v260_v14  ;;  %v294_v14 = vshrl.u32 %v290_v36, 16  ;;  %v5209_v23 = vld [vmem:[#allocation7 + $0xa0] sm:$0xff] }
  0xa2   :  { %v269_v52 = vsel %vm268_vm5, 1, %v5632_v60  ;;  %v1347_v53 = vrot.slane %v5777_v28, 2  ;;  %v926_v55 = vpack.c.bf16 %v5995_v47, %v6001_v9  ;;  %v6145_v47 = vadd.s32 64, %v5773_v22 }
  0xa3   :  { %v1350_v41 = vsel %vm1348_vm2, %v1345_v26, %v1346_v27  ;;  %v1351_v45 = vsel %vm1348_vm2, %v1344_v43, %v1345_v26  ;;  %vm272_vm6 = vc.u32 %v270_v39, %v266_v29  ;;  %v271_v59 = vadd.s32 %v269_v52, %v263_v38  ;;  %v5218_v43 = vld [vmem:[#allocation7 + $0xe8] sm:$0xff] }
  0xa4   :  { %v273_v61 = vsel %vm272_vm6, 1, %v5632_v60  ;;  %2246 = vmatpush.bf16.msrb.mxu3 %v5218_v43  ;;  %v1374_v18 = vpack.c.bf16 %v1350_v41, %v1351_v45  ;;  %v5986_v38 = vadd.s32 32, %v5773_v22  ;;  %v1349_v43 = vsel %vm1348_vm2, %v1346_v27, %v1347_v53 }
  0xa5   :  { %v275_v10 = vadd.s32 %v273_v61, %v271_v59 }
  0xa6   :  { %v344_v50 = vand.u32 65535, %v5986_v38  ;;  %v345_v52 = vshrl.u32 %v5986_v38, 16 }
  0xa7   :  { %v276_v20 = vadd.s32 %v275_v10, %v265_v58  ;;  %v5207_v58 = vld [vmem:[#allocation7 + $0x90] sm:$0xff] }
  0xa8   :  { %2247 = vmatpush.bf16.msrb.mxu3 %v5217_v32  ;;  %v347_v59 = vmul.u32 14564, %v344_v50  ;;  %v349_v61 = vmul.u32 14564, %v345_v52  ;;  %v350_v10 = vmul.u32 58254, %v345_v52 }
  0xa9   :  { %v277_v36 = vadd.s32 %v276_v20, %v267_v7 }
  0xaa   :  { %v354_v32 = vshrl.u32 %v349_v61, 16 }
  0xab   :  { %v278_v39 = vshrl.u32 %v277_v36, 4  ;;  %v325_v36 = vshrl.u32 %v5988_v44, 16 }
  0xac   :  { %2248 = vmatpush.bf16.msrb.mxu3 %v5216_v0 }
  0xad   :  { %v279_v45 = vmul.u32 18, %v278_v39 }
  0xae   :  { %1029 = vmatmul.bf16.gmra.mxu0 %v924_v62  ;;  %v5191_v62 = vld [vmem:[#allocation7 + $0x50] sm:$0xff] }
  0xaf   :  { %1131 = vmatmul.bf16.gmra.mxu1 %v861_v63  ;;  %v5210_v63 = vld [vmem:[#allocation7 + $0xa8] sm:$0xff]  ;;  %v6039_v7 = vsub.s32 %v5892_v49, %v279_v45 }
  0xb0   :  { %1296 = vmatmul.bf16.gmra.mxu2 %v1190_v1  ;;  %v300_v1 = vadd.s32 %v298_v57, %v292_v54  ;;  %1903 = vmatpush.bf16.msrb.mxu1 %v5191_v62  ;;  %v348_v54 = vmul.u32 58254, %v344_v50  ;;  %v5206_v49 = vld [vmem:[#allocation7 + $0x88] sm:$0xff] }
  0xb1   :  { %1479 = vmatmul.bf16.gmra.mxu3 %v1373_v2  ;;  %v248_v2 = vadd.s32 %v247_v51, %v238_v37  ;;  %2064 = vmatpush.bf16.msrb.mxu2 %v5210_v63  ;;  %v6008_v51 = vsel %vm1165_vm1, %v1163_v12, %v1164_v31  ;;  %v324_v12 = vshll.u32 %v5988_v44, 16  ;;  %v863_v63 = vpack.c.bf16 %v5777_v28, %v5912_v3 }
  0xb2   :  { %v304_v16 = vadd.s32 %v302_v6, %v300_v1  ;;  %v351_v62 = vshll.u32 %v348_v54, 16  ;;  %v1366_v1 = vsel %vm1348_vm2, %v1347_v53, %v1330_v40  ;;  %v327_v28 = vsel %vm6021_vm9, 1, %v5632_v60 }
  0xb3   :  { %v249_v29 = vshrl.u32 %v248_v2, 4  ;;  %v5215_v2 = vld [vmem:[#allocation7 + $0xd0] sm:$0xff]  ;;  %v353_v3 = vshll.u32 %v349_v61, 16  ;;  %vm6044_vm11 = vc.u32 %v328_v35, %v324_v12  ;;  %v1192_v40 = vpack.c.bf16 %v6014_v34, %v6008_v51 }
  0xb4   :  { %v305_v26 = vadd.s32 %v304_v16, %v294_v14  ;;  %1904 = vmatpush.bf16.msrb.mxu1 %v5190_v21  ;;  %vm355_vm10 = vc.u32 %v347_v59, %v351_v62  ;;  %v357_v27 = vadd.s32 %v351_v62, %v347_v59  ;;  %2249 = vmatpush.bf16.msrb.mxu3 %v5215_v2  ;;  %v5214_v16 = vld [vmem:[#allocation7 + $0xc8] sm:$0xff]  ;;  %v352_v19 = vshrl.u32 %v348_v54, 16 }
  0xb5   :  { %2065 = vmatpush.bf16.msrb.mxu2 %v5209_v23  ;;  %v250_v48 = vmul.u32 18, %v249_v29  ;;  %v356_v14 = vsel %vm355_vm10, 1, %v5632_v60  ;;  %v331_v21 = vsel %vm6044_vm11, 1, %v5632_v60  ;;  %vm748_vm15 = vcmp.ne.s32.totalorder %v6039_v7, 0 }
  0xb6   :  { %v306_v37 = vadd.s32 %v305_v26, %v296_v15  ;;  %v358_v17 = vadd.s32 %v356_v14, %v350_v10  ;;  %vm359_vm14 = vc.u32 %v357_v27, %v353_v3  ;;  %v6061_v31 = vadd.s32 40, %v5773_v22 }
  0xb7   :  { %v6026_v57 = vsub.s32 %v5773_v22, %v250_v48  ;;  %v360_v20 = vsel %vm359_vm14, 1, %v5632_v60  ;;  %vm766_vm3 = vcmp.lt.s32.totalorder %v6039_v7, 0  ;;  %v802_v44 = vadd.s32 18, %v6039_v7 }
  0xb8   :  { %v307_v41 = vshrl.u32 %v306_v37, 4  ;;  %1905 = vmatpush.bf16.msrb.mxu1 %v5189_v8  ;;  %v362_v29 = vadd.s32 %v360_v20, %v358_v17  ;;  %2250 = vmatpush.bf16.msrb.mxu3 %v5214_v16  ;;  %v6077_v8 = vadd.s32 48, %v5773_v22  ;;  %vm784_vm6 = vmand %vm766_vm3, %vm748_vm15  ;;  %v374_v53 = vshrl.u32 %v6061_v31, 16 }
  0xb9   :  { %vm747_vm12 = vcmp.ne.s32.totalorder %v6026_v57, 0  ;;  %vm765_vm13 = vcmp.lt.s32.totalorder %v6026_v57, 0  ;;  %v801_v39 = vadd.s32 18, %v6026_v57 }
  0xba   :  { %v308_v6 = vmul.u32 18, %v307_v41  ;;  %v363_v46 = vadd.s32 %v362_v29, %v352_v19  ;;  %vm6071_vm4 = vmand %vm765_vm13, %vm747_vm12  ;;  %v402_v34 = vand.u32 65535, %v6077_v8  ;;  %v403_v56 = vshrl.u32 %v6077_v8, 16 }
  0xbb   :  { %v6090_v41 = vsel %vm6071_vm4, %v801_v39, %v6026_v57 }
  0xbc   :  { %v309_v26 = vsub.s32 %v5931_v13, %v308_v6  ;;  %v373_v13 = vand.u32 65535, %v6061_v31  ;;  %v364_v48 = vadd.s32 %v363_v46, %v354_v32  ;;  %8218 = vst [vmem:[#allocation27_spill] sm:$0xff] %v6090_v41  ;;  %2251 = vmatpush.bf16.msrb.mxu3 %v5213_v42  ;;  %v6096_v35 = vmul.u32 58254, %v402_v34 }
  0xbd   :  { %v405_v2 = vmul.u32 14564, %v402_v34  ;;  %vm8170_vm9 = vcmp.ge.s32.totalorder %v6090_v41, 1  ;;  %vm1531_vm11 = vcmp.le.s32.totalorder %v6090_v41, 15  ;;  %v408_v14 = vmul.u32 58254, %v403_v56 }
  0xbe   :  { %1034 = vmatmul.bf16.gmra.mxu0 %v925_v24  ;;  %v5208_v24 = vld [vmem:[#allocation7 + $0x98] sm:$0xff]  ;;  %vm749_vm5 = vcmp.ne.s32.totalorder %v309_v26, 0  ;;  %v6083_v50 = vmul.u32 58254, %v373_v13  ;;  %vm767_vm7 = vcmp.lt.s32.totalorder %v309_v26, 0  ;;  %v803_v0 = vadd.s32 18, %v309_v26 }
  0xbf   :  { %1136 = vmatmul.bf16.gmra.mxu1 %v862_v5  ;;  %2066 = vmatpush.bf16.msrb.mxu2 %v5208_v24  ;;  %v321_v5 = vmul.u32 58254, %v316_v30  ;;  %v365_v45 = vshrl.u32 %v364_v48, 4  ;;  %vm785_vm8 = vmand %vm767_vm7, %vm749_vm5  ;;  %v376_v62 = vmul.u32 14564, %v373_v13  ;;  %v409_v10 = vshll.u32 %v6096_v35, 16 }
  0xc0   :  { %1301 = vmatmul.bf16.gmra.mxu2 %v1191_v11  ;;  %v1375_v11 = vpack.c.bf16 %v1366_v1, %v1349_v43  ;;  %v6104_v43 = vld [vmem:[%s8153_s2] ss:$0 sm:$0xff]  ;;  %vm6135_vm7 = vmand %vm8170_vm9, %vm1531_vm11 }
  0xc1   :  { %1484 = vmatmul.bf16.gmra.mxu3 %v1374_v18  ;;  %v323_v18 = vshrl.u32 %v5979_v33, 16  ;;  %v329_v30 = vadd.s32 %v327_v28, %v321_v5  ;;  %v5205_v33 = vld [vmem:[#allocation7 + $0x80] sm:$0xff]  ;;  %v366_v57 = vmul.u32 18, %v365_v45  ;;  %v6106_v5 = vmul.u32 14564, %v374_v53 }
  0xc2   :  { %v6111_v28 = vsel %vm785_vm8, %v803_v0, %v309_v26  ;;  %vm413_vm14 = vc.u32 %v405_v2, %v409_v10  ;;  %v415_v17 = vadd.s32 %v409_v10, %v405_v2  ;;  %v6197_v10 = vadd.s32 56, %v5773_v22 }
  0xc3   :  { %2067 = vmatpush.bf16.msrb.mxu2 %v5207_v58  ;;  %v333_v37 = vadd.s32 %v331_v21, %v329_v30  ;;  %8220 = vst [vmem:[#allocation29_spill] sm:$0xff] %v6111_v28  ;;  %v6118_v3 = vsub.s32 %v5986_v38, %v366_v57  ;;  %v414_v20 = vsel %vm413_vm14, 1, %v5632_v60  ;;  %v381_v38 = vshrl.u32 %v6083_v50, 16 }
  0xc4   :  { %v416_v39 = vadd.s32 %v414_v20, %v408_v14 }
  0xc5   :  { %v334_v9 = vadd.s32 %v333_v37, %v323_v18  ;;  %vm751_vm15 = vcmp.ne.s32.totalorder %v6118_v3, 0  ;;  %vm769_vm5 = vcmp.lt.s32.totalorder %v6118_v3, 0 }
  0xc7   :  { %2068 = vmatpush.bf16.msrb.mxu2 %v5206_v49  ;;  %v335_v51 = vadd.s32 %v334_v9, %v325_v36 }
  0xc9   :  { %v336_v12 = vshrl.u32 %v335_v51, 4  ;;  %v805_v51 = vadd.s32 18, %v6118_v3 }
  0xcb   :  { %v1000_v23 = vpop.f32.mrf.mxu0  ;;  %2069 = vmatpush.bf16.msrb.mxu2 %v5205_v33  ;;  %v337_v1 = vmul.u32 18, %v336_v12  ;;  %v410_v33 = vshrl.u32 %v6096_v35, 16  ;;  %v383_v12 = vshrl.u32 %v6106_v5, 16 }
  0xcc   :  { %v1102_v15 = vpop.f32.mrf.mxu1 }
  0xcd   :  { %v1103_v24 = vadd.f32 %v1102_v15, %v1000_v23  ;;  %v338_v27 = vsub.s32 %v5968_v4, %v337_v1 }
  0xce   :  { %1039 = vmatmul.bf16.gmra.mxu0 %v926_v55  ;;  %v6093_v55 = vsel %vm784_vm6, %v802_v44, %v6039_v7  ;;  %v6108_v7 = vmul.u32 14564, %v403_v56  ;;  %vm8169_vm6 = vcmp.ge.s32.totalorder %v6111_v28, 1 }
  0xcf   :  { %1141 = vmatmul.bf16.gmra.mxu1 %v863_v63  ;;  %8219 = vst [vmem:[#allocation28_spill] sm:$0xff] %v6093_v55  ;;  %v380_v63 = vshll.u32 %v6083_v50, 16  ;;  %vm1514_vm10 = vcmp.ge.s32.totalorder %v6093_v55, 1  ;;  %vm1532_vm12 = vcmp.le.s32.totalorder %v6093_v55, 15  ;;  %vm750_vm3 = vcmp.ne.s32.totalorder %v338_v27, 0 }
  0xd0   :  { %1306 = vmatmul.bf16.gmra.mxu2 %v1192_v40  ;;  %v379_v40 = vmul.u32 58254, %v374_v53  ;;  %v411_v16 = vshll.u32 %v6108_v7, 16  ;;  %vm768_vm4 = vcmp.lt.s32.totalorder %v338_v27, 0  ;;  %v804_v29 = vadd.s32 18, %v338_v27  ;;  %vm6152_vm11 = vmand %vm1514_vm10, %vm1532_vm12 }
  0xd1   :  { %1489 = vmatmul.bf16.gmra.mxu3 %v1375_v11  ;;  %vm384_vm13 = vc.u32 %v376_v62, %v380_v63  ;;  %v382_v11 = vshll.u32 %v6106_v5, 16  ;;  %v386_v30 = vadd.s32 %v380_v63, %v376_v62  ;;  %v460_v53 = vand.u32 65535, %v6145_v47  ;;  %vm6165_vm12 = vmand %vm769_vm5, %vm751_vm15 }
  0xd2   :  { %v385_v4 = vsel %vm384_vm13, 1, %v5632_v60  ;;  %vm417_vm8 = vc.u32 %v415_v17, %v411_v16  ;;  %vm6139_vm13 = vmand %vm768_vm4, %vm750_vm3  ;;  %vm1533_vm3 = vcmp.le.s32.totalorder %v6111_v28, 15 }
  0xd3   :  { %v1267_v52 = vpop.f32.mrf.mxu2  ;;  %v1002_v59 = vpop.f32.mrf.mxu0  ;;  %v418_v46 = vsel %vm417_vm8, 1, %v5632_v60  ;;  %v387_v13 = vadd.s32 %v385_v4, %v379_v40  ;;  %vm388_vm14 = vc.u32 %v386_v30, %v382_v11  ;;  %vm4609_vm15 = vmpackc.low %vm6152_vm11, %vm6135_vm7  ;;  %v6183_v57 = vmul.u32 58254, %v460_v53 }
  0xd4   :  { %v1450_v54 = vpop.f32.mrf.mxu3  ;;  %v1312_v58 = vadd.f32 %v1267_v52, %v1103_v24  ;;  %v1104_v61 = vpop.f32.mrf.mxu1  ;;  %v412_v24 = vshrl.u32 %v6108_v7, 16  ;;  %v420_v48 = vadd.s32 %v418_v46, %v416_v39  ;;  %v389_v50 = vsel %vm388_vm14, 1, %v5632_v60 }
  0xd5   :  { %v1105_v49 = vadd.f32 %v1104_v61, %v1002_v59  ;;  %v391_v34 = vadd.s32 %v389_v50, %v387_v13  ;;  %v6171_v52 = vsel %vm6139_vm13, %v804_v29, %v338_v27  ;;  %v461_v61 = vshrl.u32 %v6145_v47, 16 }
  0xd6   :  { %v1495_v6 = vadd.f32 %v1450_v54, %v1312_v58  ;;  %8229 = vst [vmem:[#allocation30_spill] sm:$0xff] %v6171_v52  ;;  %v421_v54 = vadd.s32 %v420_v48, %v410_v33  ;;  %v6192_v7 = vsel %vm6165_vm12, %v805_v51, %v6118_v3  ;;  %vm8168_vm4 = vcmp.ge.s32.totalorder %v6171_v52, 1 }
  0xd7   :  { %v392_v59 = vadd.s32 %v391_v34, %v381_v38  ;;  %8230 = vst [vmem:[#allocation31_spill] sm:$0xff] %v6192_v7  ;;  %vm1534_vm5 = vcmp.le.s32.totalorder %v6171_v52, 15  ;;  %v463_v11 = vmul.u32 14564, %v460_v53  ;;  %v6202_v3 = vmul.u32 14564, %v461_v61 }
  0xd8   :  { %v1571_v25 = vadd.f32 %v6104_v43, %v1495_v6  ;;  %v422_v6 = vadd.s32 %v421_v54, %v412_v24  ;;  %v467_v20 = vshll.u32 %v6183_v57, 16  ;;  %v466_v37 = vmul.u32 58254, %v461_v61 }
  0xd9   :  { %v393_v40 = vadd.s32 %v392_v59, %v383_v12  ;;  %v469_v39 = vshll.u32 %v6202_v3, 16  ;;  %vm1517_vm13 = vcmp.ge.s32.totalorder %v6192_v7, 1  ;;  %vm1535_vm14 = vcmp.le.s32.totalorder %v6192_v7, 15 }
  0xda   :  { %v1589_v26 = vmax.f32 %v1571_v25, 0.0  ;;  %v423_v25 = vshrl.u32 %v422_v6, 4  ;;  %vm471_vm8 = vc.u32 %v463_v11, %v467_v20  ;;  %v473_v42 = vadd.s32 %v467_v20, %v463_v11 }
  0xdb   :  { %v1269_v18 = vpop.f32.mrf.mxu2  ;;  %v1005_v23 = vpop.f32.mrf.mxu0  ;;  %v472_v24 = vsel %vm471_vm8, 1, %v5632_v60 }
  0xdc   :  { %v1452_v19 = vpop.f32.mrf.mxu3  ;;  %v1313_v21 = vadd.f32 %v1269_v18, %v1105_v49  ;;  %v1107_v15 = vpop.f32.mrf.mxu1  ;;  %v6176_v58 = vsel %vm6135_vm7, %v1589_v26, 0.0  ;;  %v424_v18 = vmul.u32 18, %v423_v25  ;;  %vm6212_vm7 = vmand %vm8169_vm6, %vm1533_vm3  ;;  %v468_v25 = vshrl.u32 %v6183_v57, 16 }
  0xdd   :  { %v1108_v36 = vadd.f32 %v1107_v15, %v1005_v23  ;;  %v8176_v49 = vrot.slane %v6176_v58, 1  ;;  %v8175_v30 = vrot.slane %v6176_v58, 2  ;;  %v432_v23 = vshrl.u32 %v6197_v10, 16 }
  0xde   :  { %v1496_v32 = vadd.f32 %v1452_v19, %v1313_v21  ;;  %v394_v19 = vshrl.u32 %v393_v40, 4  ;;  %v431_v21 = vand.u32 65535, %v6197_v10 }
  0xe0   :  { %v1572_v44 = vadd.f32 %v6104_v43, %v1496_v32  ;;  %v395_v29 = vmul.u32 18, %v394_v19  ;;  %v434_v51 = vmul.u32 14564, %v431_v21  ;;  %v6237_v34 = vmul.u32 58254, %v431_v21 }
  0xe1   :  { %v437_v19 = vmul.u32 58254, %v432_v23 }
  0xe2   :  { %v1590_v0 = vmax.f32 %v1572_v44, 0.0  ;;  %v396_v45 = vsub.s32 %v6061_v31, %v395_v29  ;;  %v438_v20 = vshll.u32 %v6237_v34, 16 }
  0xe3   :  { %v1272_v56 = vpop.f32.mrf.mxu2  ;;  %v1007_v1 = vpop.f32.mrf.mxu0 }
  0xe4   :  { %v1455_v35 = vpop.f32.mrf.mxu3  ;;  %v4610_v62 = vpack.c.bf16 %v1590_v0, %v1589_v26  ;;  %v1314_v63 = vadd.f32 %v1272_v56, %v1108_v36  ;;  %v1109_v2 = vpop.f32.mrf.mxu1  ;;  %v6187_v5 = vsel %vm6152_vm11, %v1590_v0, 0.0  ;;  %v425_v26 = vsub.s32 %v6077_v8, %v424_v18  ;;  %vm6245_vm11 = vmand %vm8168_vm4, %vm1534_vm5 }
  0xe5   :  { %v1953_v14 = vrot.slane %v6187_v5, 1  ;;  %v2135_v16 = vrot.slane %v6187_v5, 2  ;;  %v1110_v4 = vadd.f32 %v1109_v2, %v1007_v1  ;;  %v474_v56 = vadd.s32 %v472_v24, %v466_v37  ;;  %vm4612_vm5 = vmpackc.low %vm6245_vm11, %vm6212_vm7 }
  0xe6   :  { %v1497_v27 = vadd.f32 %v1455_v35, %v1314_v63  ;;  %4611 = vmatmul.msk.bf16.vlgmr.msrb.gmra.mxu1 %vm4609_vm15, %v4610_v62  ;;  %vm753_vm3 = vcmp.ne.s32.totalorder %v425_v26, 0  ;;  %vm771_vm12 = vcmp.lt.s32.totalorder %v425_v26, 0  ;;  %vm6258_vm15 = vc.u32 %v473_v42, %v469_v39 }
  0xe7   :  { %v1986_v36 = vsel %vm1165_vm1, %v8176_v49, %v1953_v14  ;;  %v2168_v9 = vsel %vm1348_vm2, %v8175_v30, %v2135_v16  ;;  %v807_v63 = vadd.s32 18, %v425_v26  ;;  %vm752_vm8 = vcmp.ne.s32.totalorder %v396_v45, 0  ;;  %vm6271_vm6 = vmand %vm771_vm12, %vm753_vm3 }
  0xe8   :  { %v6205_v17 = vadd.f32 %v6104_v43, %v1497_v27  ;;  %vm770_vm4 = vcmp.lt.s32.totalorder %v396_v45, 0  ;;  %v6267_v1 = vmul.u32 14564, %v432_v23  ;;  %v806_v27 = vadd.s32 18, %v396_v45 }
  0xe9   :  { %v476_v40 = vsel %vm6258_vm15, 1, %v5632_v60  ;;  %vm6279_vm9 = vmand %vm770_vm4, %vm752_vm8  ;;  %v6719_v49 = vadd.s32 136, %v5773_v22 }
  0xea   :  { %v1591_v15 = vmax.f32 %v6205_v17, 0.0  ;;  %v470_v17 = vshrl.u32 %v6202_v3, 16  ;;  %v478_v18 = vadd.s32 %v476_v40, %v474_v56  ;;  %v439_v3 = vshrl.u32 %v6237_v34, 16 }
  0xeb   :  { %v1274_v33 = vpop.f32.mrf.mxu2  ;;  %v1010_v44 = vpop.f32.mrf.mxu0  ;;  %v440_v23 = vshll.u32 %v6267_v1, 16  ;;  %v441_v37 = vshrl.u32 %v6267_v1, 16 }
  0xec   :  { %v1457_v32 = vpop.f32.mrf.mxu3  ;;  %v6228_v46 = vsel %vm6212_vm7, %v1591_v15, 0.0  ;;  %v1315_v13 = vadd.f32 %v1274_v33, %v1110_v4  ;;  %v1112_v8 = vpop.f32.mrf.mxu1 }
  0xed   :  { %v1954_v48 = vrot.slane %v6228_v46, 1  ;;  %v2136_v50 = vrot.slane %v6228_v46, 2  ;;  %v1113_v61 = vadd.f32 %v1112_v8, %v1010_v44  ;;  %v444_v8 = vadd.s32 %v438_v20, %v434_v51 }
  0xee   :  { %v1498_v53 = vadd.f32 %v1457_v32, %v1315_v13  ;;  %v6290_v32 = vadd.s32 80, %v5773_v22 }
  0xef   :  { %v1985_v54 = vsel %vm1165_vm1, %v1953_v14, %v1954_v48  ;;  %v2167_v12 = vsel %vm1348_vm2, %v2135_v16, %v2136_v50 }
  0xf0   :  { %v1574_v59 = vadd.f32 %v6104_v43, %v1498_v53  ;;  %v1988_v62 = vpack.c.bf16 %v1985_v54, %v1986_v36  ;;  %v2170_v31 = vpack.c.bf16 %v2167_v12, %v2168_v9  ;;  %v6294_v36 = vsel %vm6271_vm6, %v807_v63, %v425_v26 }
  0xf1   :  { %8241 = vst [vmem:[#allocation32_spill] sm:$0xff] %v6294_v36  ;;  %v479_v26 = vadd.s32 %v478_v18, %v468_v25  ;;  %vm442_vm6 = vc.u32 %v434_v51, %v438_v20  ;;  %v518_v38 = vand.u32 65535, %v6290_v32  ;;  %v519_v12 = vshrl.u32 %v6290_v32, 16 }
  0xf2   :  { %v1592_v2 = vmax.f32 %v1574_v59, 0.0  ;;  %2070 = vmatmul.bf16.vlgmr.msrb.gmra.mxu2 %v1988_v62  ;;  %2252 = vmatmul.bf16.vlgmr.msrb.gmra.mxu3 %v2170_v31  ;;  %v443_v34 = vsel %vm442_vm6, 1, %v5632_v60  ;;  %v6343_v25 = vadd.s32 72, %v5773_v22  ;;  %vm1519_vm12 = vcmp.ge.s32.totalorder %v6294_v36, 1 }
  0xf3   :  { %v1277_v11 = vpop.f32.mrf.mxu2  ;;  %v1012_v21 = vpop.f32.mrf.mxu0  ;;  %v480_v24 = vadd.s32 %v479_v26, %v470_v17  ;;  %v445_v51 = vadd.s32 %v443_v34, %v437_v19  ;;  %v6336_v31 = vmul.u32 58254, %v518_v38  ;;  %v6348_v17 = vmul.u32 14564, %v519_v12 }
  0xf4   :  { %v1460_v14 = vpop.f32.mrf.mxu3  ;;  %v1316_v4 = vadd.f32 %v1277_v11, %v1113_v61  ;;  %v1114_v29 = vpop.f32.mrf.mxu1  ;;  %v6287_v57 = vsel %vm6245_vm11, %v1592_v2, 0.0  ;;  %v4613_v33 = vpack.c.bf16 %v1592_v2, %v1591_v15  ;;  %v6306_v15 = vsel %vm6279_vm9, %v806_v27, %v396_v45  ;;  %vm6319_vm9 = vmand %vm1517_vm13, %vm1535_vm14 }
  0xf5   :  { %v1115_v42 = vadd.f32 %v1114_v29, %v1012_v21  ;;  %8242 = vst [vmem:[#allocation33_spill] sm:$0xff] %v6306_v15  ;;  %v1955_v13 = vrot.slane %v6287_v57, 1  ;;  %v2137_v44 = vrot.slane %v6287_v57, 2  ;;  %vm1518_vm4 = vcmp.ge.s32.totalorder %v6306_v15, 1 }
  0xf6   :  { %v1499_v39 = vadd.f32 %v1460_v14, %v1316_v4  ;;  %4614 = vmatmul.msk.bf16.gmra.mxu1 %vm4612_vm5, %v4613_v33  ;;  %vm1536_vm7 = vcmp.le.s32.totalorder %v6306_v15, 15  ;;  %vm446_vm11 = vc.u32 %v444_v8, %v440_v23  ;;  %v481_v45 = vshrl.u32 %v480_v24, 4 }
  0xf7   :  { %v447_v54 = vsel %vm446_vm11, 1, %v5632_v60  ;;  %v1984_v59 = vsel %vm1165_vm1, %v1954_v48, %v1955_v13  ;;  %v2166_v61 = vsel %vm1348_vm2, %v2136_v50, %v2137_v44  ;;  %v521_v50 = vmul.u32 14564, %v518_v38  ;;  %vm6364_vm14 = vmand %vm1518_vm4, %vm1536_vm7 }
  0xf8   :  { %v6311_v9 = vadd.f32 %v6104_v43, %v1499_v39  ;;  %v449_v62 = vadd.s32 %v447_v54, %v445_v51  ;;  %v482_v27 = vmul.u32 18, %v481_v45  ;;  %v525_v18 = vshll.u32 %v6336_v31, 16  ;;  %vm4615_vm6 = vmpackc.low %vm6364_vm14, %vm6319_vm9 }
  0xf9   :  { %v524_v26 = vmul.u32 58254, %v519_v12  ;;  %v527_v24 = vshll.u32 %v6348_v17, 16  ;;  %vm1537_vm7 = vcmp.le.s32.totalorder %v6294_v36, 15 }
  0xfa   :  { %v1593_v0 = vmax.f32 %v6311_v9, 0.0  ;;  %v450_v11 = vadd.s32 %v449_v62, %v439_v3  ;;  %v483_v16 = vsub.s32 %v6145_v47, %v482_v27  ;;  %vm529_vm8 = vc.u32 %v521_v50, %v525_v18 }
  0xfb   :  { %v1279_v56 = vpop.f32.mrf.mxu2  ;;  %v1015_v2 = vpop.f32.mrf.mxu0  ;;  %v530_v34 = vsel %vm529_vm8, 1, %v5632_v60  ;;  %v531_v38 = vadd.s32 %v525_v18, %v521_v50  ;;  %v490_v62 = vshrl.u32 %v6343_v25, 16  ;;  %v5202_v50 = vld [vmem:[#allocation7 + $0x28] sm:$0xff] }
  0xfc   :  { %v1462_v35 = vpop.f32.mrf.mxu3  ;;  %v6340_v63 = vsel %vm6319_vm9, %v1593_v0, 0.0  ;;  %v1317_v1 = vadd.f32 %v1279_v56, %v1115_v42  ;;  %v1117_v6 = vpop.f32.mrf.mxu1  ;;  %v451_v21 = vadd.s32 %v450_v11, %v441_v37  ;;  %vm755_vm3 = vcmp.ne.s32.totalorder %v483_v16, 0 }
  0xfd   :  { %v1956_v48 = vrot.slane %v6340_v63, 1  ;;  %v2138_v40 = vrot.slane %v6340_v63, 2  ;;  %v1118_v19 = vadd.f32 %v1117_v6, %v1015_v2  ;;  %vm773_vm15 = vcmp.lt.s32.totalorder %v483_v16, 0 }
  0xfe   :  { %v1500_v14 = vadd.f32 %v1462_v35, %v1317_v1  ;;  %v809_v23 = vadd.s32 18, %v483_v16  ;;  %v452_v39 = vshrl.u32 %v451_v21, 4  ;;  %vm6369_vm5 = vmand %vm773_vm15, %vm755_vm3  ;;  %v532_v6 = vadd.s32 %v530_v34, %v524_v26 }
  0xff   :  { %v1983_v20 = vsel %vm1165_vm1, %v1955_v13, %v1956_v48  ;;  %v2165_v4 = vsel %vm1348_vm2, %v2137_v44, %v2138_v40  ;;  %v489_v13 = vand.u32 65535, %v6343_v25  ;;  %vm533_vm11 = vc.u32 %v531_v38, %v527_v24  ;;  %vm6406_vm3 = vmand %vm1519_vm12, %vm1537_vm7 }
 0x100   :  { %v1576_v29 = vadd.f32 %v6104_v43, %v1500_v14  ;;  %v1989_v33 = vpack.c.bf16 %v1983_v20, %v1984_v59  ;;  %v2171_v47 = vpack.c.bf16 %v2165_v4, %v2166_v61  ;;  %v453_v9 = vmul.u32 18, %v452_v39 }
 0x101   :  { %v6387_v35 = vsel %vm6369_vm5, %v809_v23, %v483_v16  ;;  %v526_v59 = vshrl.u32 %v6336_v31, 16  ;;  %v528_v61 = vshrl.u32 %v6348_v17, 16  ;;  %v492_v31 = vmul.u32 14564, %v489_v13 }
 0x102   :  { %v1594_v42 = vmax.f32 %v1576_v29, 0.0  ;;  %2075 = vmatmul.bf16.gmra.mxu2 %v1989_v33  ;;  %2257 = vmatmul.bf16.gmra.mxu3 %v2171_v47  ;;  %8249 = vst [vmem:[#allocation34_spill] sm:$0xff] %v6387_v35  ;;  %v6400_v11 = vmul.u32 58254, %v489_v13  ;;  %v534_v16 = vsel %vm533_vm11, 1, %v5632_v60  ;;  %v6412_v17 = vmul.u32 14564, %v490_v62 }
 0x103   :  { %v1282_v44 = vpop.f32.mrf.mxu2  ;;  %v1017_v45 = vpop.f32.mrf.mxu0  ;;  %v536_v21 = vadd.s32 %v534_v16, %v532_v6  ;;  %v495_v3 = vmul.u32 58254, %v490_v62  ;;  %vm8171_vm11 = vcmp.ge.s32.totalorder %v6387_v35, 1 }
 0x104   :  { %v1465_v8 = vpop.f32.mrf.mxu3  ;;  %v1318_v51 = vadd.f32 %v1282_v44, %v1118_v19  ;;  %v1119_v54 = vpop.f32.mrf.mxu1  ;;  %v6383_v12 = vsel %vm6364_vm14, %v1594_v42, 0.0  ;;  %v4616_v56 = vpack.c.bf16 %v1594_v42, %v1593_v0  ;;  %v454_v0 = vsub.s32 %v6197_v10, %v453_v9 }
 0x105   :  { %v1957_v2 = vrot.slane %v6383_v12, 1  ;;  %v2139_v27 = vrot.slane %v6383_v12, 2  ;;  %v1120_v14 = vadd.f32 %v1119_v54, %v1017_v45  ;;  %v496_v18 = vshll.u32 %v6400_v11, 16 }
 0x106   :  { %v1501_v1 = vadd.f32 %v1465_v8, %v1318_v51  ;;  %4617 = vmatmul.msk.bf16.gmra.mxu1 %vm4615_vm6, %v4616_v56  ;;  %vm754_vm9 = vcmp.ne.s32.totalorder %v454_v0, 0  ;;  %vm772_vm14 = vcmp.lt.s32.totalorder %v454_v0, 0  ;;  %v808_v10 = vadd.s32 18, %v454_v0 }
 0x107   :  { %vm790_vm15 = vmand %vm772_vm14, %vm754_vm9  ;;  %v1982_v20 = vsel %vm1165_vm1, %v1956_v48, %v1957_v2  ;;  %v2164_v47 = vsel %vm1348_vm2, %v2138_v40, %v2139_v27  ;;  %v537_v37 = vadd.s32 %v536_v21, %v526_v59  ;;  %vm500_vm6 = vc.u32 %v492_v31, %v496_v18 }
 0x108   :  { %v1577_v53 = vadd.f32 %v6104_v43, %v1501_v1  ;;  %v6419_v4 = vsel %vm790_vm15, %v808_v10, %v454_v0  ;;  %v498_v40 = vshll.u32 %v6412_v17, 16  ;;  %v501_v24 = vsel %vm500_vm6, 1, %v5632_v60 }
 0x109   :  { %8252 = vst [vmem:[#allocation35_spill] sm:$0xff] %v6419_v4  ;;  %vm8172_vm5 = vcmp.ge.s32.totalorder %v6419_v4, 1  ;;  %vm1538_vm8 = vcmp.le.s32.totalorder %v6419_v4, 15  ;;  %v538_v9 = vadd.s32 %v537_v37, %v528_v61  ;;  %v502_v34 = vadd.s32 %v496_v18, %v492_v31 }
 0x10a   :  { %v1595_v19 = vmax.f32 %v1577_v53, 0.0  ;;  %v503_v45 = vadd.s32 %v501_v24, %v495_v3  ;;  %v6440_v54 = vadd.s32 96, %v5773_v22  ;;  %vm6447_vm7 = vmand %vm8172_vm5, %vm1538_vm8  ;;  %vm1539_vm14 = vcmp.le.s32.totalorder %v6387_v35, 15 }
 0x10b   :  { %v1284_v29 = vpop.f32.mrf.mxu2  ;;  %v1020_v39 = vpop.f32.mrf.mxu0  ;;  %v539_v1 = vshrl.u32 %v538_v9, 4  ;;  %vm504_vm9 = vc.u32 %v502_v34, %v498_v40  ;;  %vm4618_vm15 = vmpackc.low %vm6447_vm7, %vm6406_vm3  ;;  %v499_v16 = vshrl.u32 %v6412_v17, 16  ;;  %v6477_v40 = vadd.s32 88, %v5773_v22 }
 0x10c   :  { %v1467_v33 = vpop.f32.mrf.mxu3  ;;  %v6429_v23 = vsel %vm6406_vm3, %v1595_v19, 0.0  ;;  %v1319_v48 = vadd.f32 %v1284_v29, %v1120_v14  ;;  %v1122_v42 = vpop.f32.mrf.mxu1  ;;  %v577_v0 = vshrl.u32 %v6440_v54, 16  ;;  %v505_v31 = vsel %vm504_vm9, 1, %v5632_v60  ;;  %vm6486_vm3 = vmand %vm8171_vm11, %vm1539_vm14 }
 0x10d   :  { %v1123_v26 = vadd.f32 %v1122_v42, %v1020_v39  ;;  %v1958_v13 = vrot.slane %v6429_v23, 1  ;;  %v2140_v44 = vrot.slane %v6429_v23, 2  ;;  %v497_v14 = vshrl.u32 %v6400_v11, 16 }
 0x10e   :  { %v1502_v8 = vadd.f32 %v1467_v33, %v1319_v48  ;;  %v507_v18 = vadd.s32 %v505_v31, %v503_v45  ;;  %v6469_v11 = vmul.u32 14564, %v577_v0  ;;  %v582_v24 = vmul.u32 58254, %v577_v0 }
 0x10f   :  { %v1981_v38 = vsel %vm1165_vm1, %v1957_v2, %v1958_v13  ;;  %v2163_v51 = vsel %vm1348_vm2, %v2139_v27, %v2140_v44  ;;  %v576_v2 = vand.u32 65535, %v6440_v54  ;;  %v540_v27 = vmul.u32 18, %v539_v1 }
 0x110   :  { %v1578_v56 = vadd.f32 %v6104_v43, %v1502_v8  ;;  %v1990_v59 = vpack.c.bf16 %v1981_v38, %v1982_v20  ;;  %v2172_v62 = vpack.c.bf16 %v2163_v51, %v2164_v47  ;;  %v586_v0 = vshrl.u32 %v6469_v11, 16 }
 0x111   :  { %v580_v20 = vmul.u32 58254, %v576_v2  ;;  %v541_v48 = vsub.s32 %v6290_v32, %v540_v27  ;;  %v579_v37 = vmul.u32 14564, %v576_v2  ;;  %v508_v32 = vadd.s32 %v507_v18, %v497_v14 }
 0x112   :  { %v1596_v6 = vmax.f32 %v1578_v56, 0.0  ;;  %2080 = vmatmul.bf16.gmra.mxu2 %v1990_v59  ;;  %2262 = vmatmul.bf16.gmra.mxu3 %v2172_v62  ;;  %v585_v56 = vshll.u32 %v6469_v11, 16  ;;  %v547_v27 = vand.u32 65535, %v6477_v40 }
 0x113   :  { %v1287_v53 = vpop.f32.mrf.mxu2  ;;  %v1022_v33 = vpop.f32.mrf.mxu0  ;;  %vm757_vm8 = vcmp.ne.s32.totalorder %v541_v48, 0  ;;  %vm775_vm6 = vcmp.lt.s32.totalorder %v541_v48, 0  ;;  %v583_v34 = vshll.u32 %v580_v20, 16  ;;  %v509_v45 = vadd.s32 %v508_v32, %v499_v16 }
 0x114   :  { %v1470_v10 = vpop.f32.mrf.mxu3  ;;  %v4619_v21 = vpack.c.bf16 %v1596_v6, %v1595_v19  ;;  %v1320_v29 = vadd.f32 %v1287_v53, %v1123_v26  ;;  %v1124_v47 = vpop.f32.mrf.mxu1  ;;  %v6464_v3 = vsel %vm6447_vm7, %v1596_v6, 0.0  ;;  %v811_v19 = vadd.s32 18, %v541_v48  ;;  %vm793_vm9 = vmand %vm775_vm6, %vm757_vm8 }
 0x115   :  { %v1959_v39 = vrot.slane %v6464_v3, 1  ;;  %v2141_v42 = vrot.slane %v6464_v3, 2  ;;  %v1125_v26 = vadd.f32 %v1124_v47, %v1022_v33  ;;  %vm587_vm7 = vc.u32 %v579_v37, %v583_v34 }
 0x116   :  { %v1503_v17 = vadd.f32 %v1470_v10, %v1320_v29  ;;  %4620 = vmatmul.msk.bf16.gmra.mxu1 %vm4618_vm15, %v4619_v21  ;;  %v6492_v51 = vsel %vm793_vm9, %v811_v19, %v541_v48  ;;  %v589_v62 = vadd.s32 %v583_v34, %v579_v37  ;;  %v510_v2 = vshrl.u32 %v509_v45, 4 }
 0x117   :  { %v1980_v9 = vsel %vm1165_vm1, %v1958_v13, %v1959_v39  ;;  %v2162_v38 = vsel %vm1348_vm2, %v2140_v44, %v2141_v42  ;;  %v584_v13 = vshrl.u32 %v580_v20, 16  ;;  %v588_v6 = vsel %vm587_vm7, 1, %v5632_v60 }
 0x118   :  { %v1579_v8 = vadd.f32 %v6104_v43, %v1503_v17  ;;  %v590_v14 = vadd.s32 %v588_v6, %v582_v24  ;;  %vm591_vm14 = vc.u32 %v589_v62, %v585_v56  ;;  %v548_v21 = vshrl.u32 %v6477_v40, 16 }
 0x119   :  { %v511_v33 = vmul.u32 18, %v510_v2  ;;  %v592_v47 = vsel %vm591_vm14, 1, %v5632_v60  ;;  %v550_v48 = vmul.u32 14564, %v547_v27  ;;  %v6514_v19 = vmul.u32 58254, %v547_v27 }
 0x11a   :  { %v1597_v59 = vmax.f32 %v1579_v8, 0.0  ;;  %v594_v17 = vadd.s32 %v592_v47, %v590_v14  ;;  %v6518_v45 = vmul.u32 14564, %v548_v21  ;;  %vm8173_vm6 = vcmp.ge.s32.totalorder %v6492_v51, 1 }
 0x11b   :  { %v1289_v61 = vpop.f32.mrf.mxu2  ;;  %v1025_v53 = vpop.f32.mrf.mxu0  ;;  %v512_v24 = vsub.s32 %v6343_v25, %v511_v33  ;;  %v554_v56 = vshll.u32 %v6514_v19, 16  ;;  %vm1541_vm9 = vcmp.le.s32.totalorder %v6492_v51, 15  ;;  %v553_v25 = vmul.u32 58254, %v548_v21 }
 0x11c   :  { %v1472_v1 = vpop.f32.mrf.mxu3  ;;  %v6500_v44 = vsel %vm6486_vm3, %v1597_v59, 0.0  ;;  %v1321_v31 = vadd.f32 %v1289_v61, %v1125_v26  ;;  %v1127_v10 = vpop.f32.mrf.mxu1  ;;  %v595_v34 = vadd.s32 %v594_v17, %v584_v13 }
 0x11d   :  { %v1960_v16 = vrot.slane %v6500_v44, 1  ;;  %v2142_v18 = vrot.slane %v6500_v44, 2  ;;  %v1128_v20 = vadd.f32 %v1127_v10, %v1025_v53  ;;  %vm756_vm15 = vcmp.ne.s32.totalorder %v512_v24, 0 }
 0x11e   :  { %v1504_v29 = vadd.f32 %v1472_v1, %v1321_v31  ;;  %vm774_vm8 = vcmp.lt.s32.totalorder %v512_v24, 0  ;;  %vm558_vm14 = vc.u32 %v550_v48, %v554_v56  ;;  %v556_v31 = vshll.u32 %v6518_v45, 16 }
 0x11f   :  { %v1979_v37 = vsel %vm1165_vm1, %v1959_v39, %v1960_v16  ;;  %v2161_v11 = vsel %vm1348_vm2, %v2141_v42, %v2142_v18  ;;  %v810_v42 = vadd.s32 18, %v512_v24  ;;  %vm792_vm7 = vmand %vm774_vm8, %vm756_vm15  ;;  %v6532_v10 = vadd.s32 112, %v5773_v22 }
 0x120   :  { %v1580_v26 = vadd.f32 %v6104_v43, %v1504_v29  ;;  %v1991_v32 = vpack.c.bf16 %v1979_v37, %v1980_v9  ;;  %v2173_v8 = vpack.c.bf16 %v2161_v11, %v2162_v38  ;;  %v596_v9 = vadd.s32 %v595_v34, %v586_v0 }
 0x121   :  { %v6523_v6 = vsel %vm792_vm7, %v810_v42, %v512_v24  ;;  %v559_v0 = vsel %vm558_vm14, 1, %v5632_v60  ;;  %v6539_v29 = vadd.s32 104, %v5773_v22  ;;  %v557_v37 = vshrl.u32 %v6518_v45, 16 }
 0x122   :  { %v1598_v39 = vmax.f32 %v1580_v26, 0.0  ;;  %2085 = vmatmul.bf16.gmra.mxu2 %v1991_v32  ;;  %2267 = vmatmul.bf16.gmra.mxu3 %v2173_v8  ;;  %8257 = vst [vmem:[#allocation36_spill] sm:$0xff] %v6523_v6  ;;  %vm1522_vm11 = vcmp.ge.s32.totalorder %v6523_v6, 1  ;;  %vm1540_vm5 = vcmp.le.s32.totalorder %v6523_v6, 15  ;;  %v597_v27 = vshrl.u32 %v596_v9, 4 }
 0x123   :  { %v1292_v62 = vpop.f32.mrf.mxu2  ;;  %v1027_v1 = vpop.f32.mrf.mxu0  ;;  %vm1558_vm15 = vmand %vm1522_vm11, %vm1540_vm5  ;;  %v561_v21 = vadd.s32 %v559_v0, %v553_v25  ;;  %v634_v26 = vand.u32 65535, %v6532_v10  ;;  %v635_v24 = vshrl.u32 %v6532_v10, 16  ;;  %v605_v25 = vand.u32 65535, %v6539_v29 }
 0x124   :  { %v1475_v61 = vpop.f32.mrf.mxu3  ;;  %v4622_v38 = vpack.c.bf16 %v1598_v39, %v1597_v59  ;;  %v1322_v13 = vadd.f32 %v1292_v62, %v1128_v20  ;;  %v1129_v2 = vpop.f32.mrf.mxu1  ;;  %v560_v59 = vadd.s32 %v554_v56, %v550_v48  ;;  %v6534_v14 = vsel %vm1558_vm15, %v1598_v39, 0.0  ;;  %vm4621_vm8 = vmpackc.low %vm1558_vm15, %vm6486_vm3 }
 0x125   :  { %v598_v20 = vmul.u32 18, %v597_v27  ;;  %v1961_v47 = vrot.slane %v6534_v14, 1  ;;  %v555_v48 = vshrl.u32 %v6514_v19, 16  ;;  %vm6551_vm5 = vmand %vm8173_vm6, %vm1541_vm9  ;;  %v2143_v11 = vrot.slane %v6534_v14, 2 }
 0x126   :  { %v1505_v53 = vadd.f32 %v1475_v61, %v1322_v13  ;;  %4623 = vmatmul.msk.bf16.gmra.mxu1 %vm4621_vm8, %v4622_v38  ;;  %vm562_vm3 = vc.u32 %v560_v59, %v556_v31  ;;  %v1130_v19 = vadd.f32 %v1129_v2, %v1027_v1  ;;  %v638_v2 = vmul.u32 58254, %v634_v26 }
 0x127   :  { %v599_v17 = vsub.s32 %v6440_v54, %v598_v20  ;;  %v563_v8 = vsel %vm562_vm3, 1, %v5632_v60  ;;  %v1978_v9 = vsel %vm1165_vm1, %v1960_v16, %v1961_v47  ;;  %v2160_v1 = vsel %vm1348_vm2, %v2142_v18, %v2143_v11 }
 0x128   :  { %v6542_v33 = vadd.f32 %v6104_v43, %v1505_v53  ;;  %v565_v39 = vadd.s32 %v563_v8, %v561_v21  ;;  %v6578_v0 = vmul.u32 14564, %v635_v24  ;;  %v637_v21 = vmul.u32 14564, %v634_v26 }
 0x129   :  { %vm759_vm9 = vcmp.ne.s32.totalorder %v599_v17, 0  ;;  %vm777_vm7 = vcmp.lt.s32.totalorder %v599_v17, 0  ;;  %v813_v56 = vadd.s32 18, %v599_v17  ;;  %v641_v8 = vshll.u32 %v638_v2, 16 }
 0x12a   :  { %v1599_v32 = vmax.f32 %v6542_v33, 0.0  ;;  %vm795_vm14 = vmand %vm777_vm7, %vm759_vm9  ;;  %v566_v53 = vadd.s32 %v565_v39, %v555_v48  ;;  %v606_v26 = vshrl.u32 %v6539_v29, 16  ;;  %v642_v39 = vshrl.u32 %v638_v2, 16 }
 0x12b   :  { %v1294_v34 = vpop.f32.mrf.mxu2  ;;  %v1030_v62 = vpop.f32.mrf.mxu0  ;;  %v6576_v31 = vsel %vm795_vm14, %v813_v56, %v599_v17  ;;  %vm645_vm3 = vc.u32 %v637_v21, %v641_v8 }
 0x12c   :  { %v1477_v45 = vpop.f32.mrf.mxu3  ;;  %v6563_v42 = vsel %vm6551_vm5, %v1599_v32, 0.0  ;;  %v1323_v54 = vadd.f32 %v1294_v34, %v1130_v19  ;;  %v1132_v61 = vpop.f32.mrf.mxu1  ;;  %v567_v48 = vadd.s32 %v566_v53, %v557_v37  ;;  %vm8174_vm15 = vcmp.ge.s32.totalorder %v6576_v31, 1  ;;  %v5204_v53 = vld [vmem:[#allocation7 + $0x38] sm:$0xff] }
 0x12d   :  { %v1962_v38 = vrot.slane %v6563_v42, 1  ;;  %v2144_v13 = vrot.slane %v6563_v42, 2  ;;  %v1133_v16 = vadd.f32 %v1132_v61, %v1030_v62  ;;  %v640_v19 = vmul.u32 58254, %v635_v24  ;;  %1796 = vmatpush.bf16.msrb.mxu0 %v5204_v53 }
 0x12e   :  { %v1506_v27 = vadd.f32 %v1477_v45, %v1323_v54  ;;  %v643_v34 = vshll.u32 %v6578_v0, 16  ;;  %vm1543_vm8 = vcmp.le.s32.totalorder %v6576_v31, 15  ;;  %v647_v37 = vadd.s32 %v641_v8, %v637_v21 }
 0x12f   :  { %v1977_v59 = vsel %vm1165_vm1, %v1961_v47, %v1962_v38  ;;  %v2159_v20 = vsel %vm1348_vm2, %v2143_v11, %v2144_v13  ;;  %v568_v11 = vshrl.u32 %v567_v48, 4  ;;  %v6596_v54 = vmul.u32 58254, %v605_v25  ;;  %vm6610_vm7 = vmand %vm8174_vm15, %vm1543_vm8 }
 0x130   :  { %v6589_v18 = vadd.f32 %v6104_v43, %v1506_v27  ;;  %v1992_v33 = vpack.c.bf16 %v1977_v59, %v1978_v9  ;;  %v2174_v17 = vpack.c.bf16 %v2159_v20, %v2160_v1  ;;  %v644_v1 = vshrl.u32 %v6578_v0, 16 }
 0x131   :  { %v569_v9 = vmul.u32 18, %v568_v11  ;;  %v646_v27 = vsel %vm645_vm3, 1, %v5632_v60  ;;  %vm649_vm9 = vc.u32 %v647_v37, %v643_v34  ;;  %v608_v20 = vmul.u32 14564, %v605_v25 }
 0x132   :  { %v1600_v47 = vmax.f32 %v6589_v18, 0.0  ;;  %2090 = vmatmul.bf16.gmra.mxu2 %v1992_v33  ;;  %2272 = vmatmul.bf16.gmra.mxu3 %v2174_v17  ;;  %v648_v59 = vadd.s32 %v646_v27, %v640_v19  ;;  %v6600_v18 = vmul.u32 14564, %v606_v26  ;;  %v650_v17 = vsel %vm649_vm9, 1, %v5632_v60 }
 0x133   :  { %v1297_v45 = vpop.f32.mrf.mxu2  ;;  %v1032_v62 = vpop.f32.mrf.mxu0  ;;  %v570_v21 = vsub.s32 %v6477_v40, %v569_v9  ;;  %v612_v0 = vshll.u32 %v6596_v54, 16  ;;  %v611_v34 = vmul.u32 58254, %v606_v26 }
 0x134   :  { %v1480_v56 = vpop.f32.mrf.mxu3  ;;  %v1324_v24 = vadd.f32 %v1297_v45, %v1133_v16  ;;  %v1134_v61 = vpop.f32.mrf.mxu1  ;;  %v4625_v33 = vpack.c.bf16 %v1600_v47, %v1599_v32  ;;  %v5203_v16 = vld [vmem:[#allocation7 + $0x30] sm:$0xff]  ;;  %v652_v8 = vadd.s32 %v650_v17, %v648_v59  ;;  %v614_v11 = vshll.u32 %v6600_v18, 16 }
 0x135   :  { %v1135_v48 = vadd.f32 %v1134_v61, %v1032_v62  ;;  %vm758_vm14 = vcmp.ne.s32.totalorder %v570_v21, 0  ;;  %vm776_vm3 = vcmp.lt.s32.totalorder %v570_v21, 0  ;;  %v812_v32 = vadd.s32 18, %v570_v21  ;;  %1797 = vmatpush.bf16.msrb.mxu0 %v5203_v16 }
 0x136   :  { %v1507_v2 = vadd.f32 %v1480_v56, %v1324_v24  ;;  %vm794_vm9 = vmand %vm776_vm3, %vm758_vm14  ;;  %v653_v19 = vadd.s32 %v652_v8, %v642_v39  ;;  %vm616_vm6 = vc.u32 %v608_v20, %v612_v0  ;;  %v618_v45 = vadd.s32 %v612_v0, %v608_v20 }
 0x137   :  { %v6618_v37 = vsel %vm794_vm9, %v812_v32, %v570_v21  ;;  %v617_v24 = vsel %vm616_vm6, 1, %v5632_v60  ;;  %v6622_v62 = vadd.s32 128, %v5773_v22  ;;  %v613_v16 = vshrl.u32 %v6596_v54, 16 }
 0x138   :  { %v6615_v40 = vadd.f32 %v6104_v43, %v1507_v2  ;;  %vm8178_vm8 = vcmp.ge.s32.totalorder %v6618_v37, 1  ;;  %vm1542_vm15 = vcmp.le.s32.totalorder %v6618_v37, 15  ;;  %v654_v39 = vadd.s32 %v653_v19, %v644_v1 }
 0x139   :  { %vm1560_vm6 = vmand %vm8178_vm8, %vm1542_vm15  ;;  %vm620_vm14 = vc.u32 %v618_v45, %v614_v11  ;;  %v619_v1 = vadd.s32 %v617_v24, %v611_v34  ;;  %v693_v11 = vshrl.u32 %v6622_v62, 16  ;;  %1798 = vmatpush.bf16.msrb.mxu0 %v5202_v50 }
 0x13a   :  { %v1601_v56 = vmax.f32 %v6615_v40, 0.0  ;;  %v6636_v59 = vsel %vm1560_vm6, %v1600_v47, 0.0  ;;  %vm4624_vm3 = vmpackc.low %vm1560_vm6, %vm6551_vm5  ;;  %v655_v0 = vshrl.u32 %v654_v39, 4  ;;  %v621_v47 = vsel %vm620_vm14, 1, %v5632_v60 }
 0x13b   :  { %v1299_v43 = vpop.f32.mrf.mxu2  ;;  %4626 = vmatmul.msk.bf16.gmra.mxu1 %vm4624_vm3, %v4625_v33  ;;  %v1963_v20 = vrot.slane %v6636_v59, 1  ;;  %v2145_v2 = vrot.slane %v6636_v59, 2  ;;  %v1035_v21 = vpop.f32.mrf.mxu0  ;;  %v615_v39 = vshrl.u32 %v6600_v18, 16  ;;  %v6664_v30 = vmul.u32 14564, %v693_v11 }
 0x13c   :  { %v1482_v61 = vpop.f32.mrf.mxu3  ;;  %v6630_v26 = vsel %vm6610_vm7, %v1601_v56, 0.0  ;;  %v1325_v9 = vadd.f32 %v1299_v43, %v1135_v48  ;;  %v1137_v17 = vpop.f32.mrf.mxu1  ;;  %v692_v48 = vand.u32 65535, %v6622_v62  ;;  %v656_v24 = vmul.u32 18, %v655_v0 }
 0x13d   :  { %v8181_v27 = vrot.slane %v6630_v26, 1  ;;  %v8180_v53 = vrot.slane %v6630_v26, 2  ;;  %v1138_v32 = vadd.f32 %v1137_v17, %v1035_v21  ;;  %v1976_v54 = vsel %vm1165_vm1, %v1962_v38, %v1963_v20 }
 0x13e   :  { %v1508_v8 = vadd.f32 %v1482_v61, %v1325_v9  ;;  %v2158_v45 = vsel %vm1348_vm2, %v2144_v13, %v2145_v2  ;;  %v623_v43 = vadd.s32 %v621_v47, %v619_v1  ;;  %v696_v9 = vmul.u32 58254, %v692_v48  ;;  %v6669_v13 = vld [vmem:[%s8153_s2] ss:$0 sm:$0xff] }
 0x13f   :  { %v1975_v33 = vsel %vm1165_vm1, %v1963_v20, %v8181_v27  ;;  %v2157_v19 = vsel %vm1348_vm2, %v2145_v2, %v8180_v53  ;;  %v657_v20 = vsub.s32 %v6532_v10, %v656_v24  ;;  %v695_v17 = vmul.u32 14564, %v692_v48 }
 0x140   :  { %v1993_v34 = vpack.c.bf16 %v1975_v33, %v1976_v54  ;;  %v2175_v61 = vpack.c.bf16 %v2157_v19, %v2158_v45  ;;  %v624_v21 = vadd.s32 %v623_v43, %v613_v16  ;;  %v699_v54 = vshll.u32 %v696_v9, 16 }
 0x141   :  { %v6672_v1 = vadd.f32 %v6669_v13, %v1508_v8  ;;  %vm761_vm5 = vcmp.ne.s32.totalorder %v657_v20, 0  ;;  %vm779_vm15 = vcmp.lt.s32.totalorder %v657_v20, 0  ;;  %v815_v18 = vadd.s32 18, %v657_v20 }
 0x142   :  { %2095 = vmatmul.bf16.gmra.mxu2 %v1993_v34  ;;  %2277 = vmatmul.bf16.gmra.mxu3 %v2175_v61  ;;  %vm797_vm9 = vmand %vm779_vm15, %vm761_vm5  ;;  %v625_v16 = vadd.s32 %v624_v21, %v615_v39  ;;  %v698_v48 = vmul.u32 58254, %v693_v11  ;;  %v701_v0 = vshll.u32 %v6664_v30, 16  ;;  %vm703_vm6 = vc.u32 %v695_v17, %v699_v54 }
 0x143   :  { %v1302_v38 = vpop.f32.mrf.mxu2  ;;  %v6675_v47 = vsel %vm797_vm9, %v815_v18, %v657_v20  ;;  %v705_v50 = vadd.s32 %v699_v54, %v695_v17  ;;  %v1037_v19 = vpop.f32.mrf.mxu0  ;;  %v704_v11 = vsel %vm703_vm6, 1, %v5632_v60  ;;  %v1602_v20 = vmax.f32 %v6672_v1, 0.0  ;;  %v5201_v1 = vld [vmem:[#allocation7 + $0x20] sm:$0xff] }
 0x144   :  { %v1326_v33 = vadd.f32 %v1302_v38, %v1138_v32  ;;  %v1485_v2 = vpop.f32.mrf.mxu3  ;;  %8262 = vst [vmem:[#allocation37_spill] sm:$0xff] %v6675_v47  ;;  %v6678_v32 = vadd.s32 120, %v5773_v22  ;;  %vm8177_vm14 = vcmp.ge.s32.totalorder %v6675_v47, 1  ;;  %vm1545_vm3 = vcmp.le.s32.totalorder %v6675_v47, 15  ;;  %v1139_v34 = vpop.f32.mrf.mxu1  ;;  %1799 = vmatpush.bf16.msrb.mxu0 %v5201_v1 }
 0x145   :  { %v626_v45 = vshrl.u32 %v625_v16, 4  ;;  %vm707_vm5 = vc.u32 %v705_v50, %v701_v0  ;;  %v706_v39 = vadd.s32 %v704_v11, %v698_v48  ;;  %vm6697_vm15 = vmand %vm8177_vm14, %vm1545_vm3  ;;  %v702_v48 = vshrl.u32 %v6664_v30, 16 }
 0x146   :  { %v1509_v10 = vadd.f32 %v1485_v2, %v1326_v33  ;;  %v663_v24 = vand.u32 65535, %v6678_v32  ;;  %v664_v43 = vshrl.u32 %v6678_v32, 16  ;;  %v708_v38 = vsel %vm707_vm5, 1, %v5632_v60 }
 0x147   :  { %v627_v61 = vmul.u32 18, %v626_v45  ;;  %v700_v33 = vshrl.u32 %v696_v9, 16  ;;  %v5200_v45 = vld [vmem:[#allocation7 + $0x18] sm:$0xff]  ;;  %v4628_v11 = vpack.c.bf16 %v1602_v20, %v1601_v56  ;;  %v1140_v9 = vadd.f32 %v1139_v34, %v1037_v19 }
 0x148   :  { %v6683_v8 = vadd.f32 %v6669_v13, %v1509_v10  ;;  %v6691_v54 = vmul.u32 58254, %v663_v24  ;;  %v710_v10 = vadd.s32 %v708_v38, %v706_v39  ;;  %v6702_v16 = vmul.u32 14564, %v664_v43  ;;  %1800 = vmatpush.bf16.msrb.mxu0 %v5200_v45 }
 0x149   :  { %v628_v2 = vsub.s32 %v6539_v29, %v627_v61  ;;  %v666_v0 = vmul.u32 14564, %v663_v24  ;;  %v669_v38 = vmul.u32 58254, %v664_v43  ;;  %v721_v47 = vand.u32 65535, %v6719_v49 }
 0x14a   :  { %v8179_v21 = vmax.f32 %v6683_v8, 0.0  ;;  %v711_v61 = vadd.s32 %v710_v10, %v700_v33  ;;  %v670_v30 = vshll.u32 %v6691_v54, 16  ;;  %v672_v1 = vshll.u32 %v6702_v16, 16 }
 0x14b   :  { %v1304_v17 = vpop.f32.mrf.mxu2  ;;  %vm760_vm9 = vcmp.ne.s32.totalorder %v628_v2, 0  ;;  %vm778_vm6 = vcmp.lt.s32.totalorder %v628_v2, 0  ;;  %v814_v50 = vadd.s32 18, %v628_v2 }
 0x14c   :  { %v6712_v29 = vsel %vm6697_vm15, %v8179_v21, 0.0  ;;  %vm796_vm3 = vmand %vm778_vm6, %vm760_vm9  ;;  %v1487_v39 = vpop.f32.mrf.mxu3  ;;  %v712_v40 = vadd.s32 %v711_v61, %v702_v48  ;;  %vm674_vm8 = vc.u32 %v666_v0, %v670_v30  ;;  %v1142_v43 = vpop.f32.mrf.mxu1  ;;  %v5199_v21 = vld [vmem:[#allocation7 + $0x10] sm:$0xff]  ;;  %v1327_v45 = vadd.f32 %v1304_v17, %v1140_v9 }
 0x14d   :  { %v6715_v24 = vsel %vm796_vm3, %v814_v50, %v628_v2  ;;  %v1040_v2 = vpop.f32.mrf.mxu0  ;;  %v675_v10 = vsel %vm674_vm8, 1, %v5632_v60  ;;  %v676_v50 = vadd.s32 %v670_v30, %v666_v0  ;;  %v722_v0 = vshrl.u32 %v6719_v49, 16  ;;  %1801 = vmatpush.bf16.msrb.mxu0 %v5199_v21 }
 0x14e   :  { %vm1526_vm5 = vcmp.ge.s32.totalorder %v6715_v24, 1  ;;  %vm1544_vm14 = vcmp.le.s32.totalorder %v6715_v24, 15  ;;  %v1143_v48 = vadd.f32 %v1142_v43, %v1040_v2  ;;  %v713_v61 = vshrl.u32 %v712_v40, 4 }
 0x14f   :  { %vm1562_vm9 = vmand %vm1526_vm5, %vm1544_vm14  ;;  %v677_v19 = vadd.s32 %v675_v10, %v669_v38  ;;  %vm678_vm8 = vc.u32 %v676_v50, %v672_v1  ;;  %v8265_v34 = vrot.slane %v6712_v29, 1  ;;  %v8267_v40 = vrot.slane %v6712_v29, 2  ;;  %v5198_v38 = vld [vmem:[#allocation7 + $0x8] sm:$0xff] }
 0x150   :  { %v6728_v53 = vsel %vm1562_vm9, %v1602_v20, 0.0  ;;  %vm4627_vm6 = vmpackc.low %vm1562_vm9, %vm6610_vm7  ;;  %v714_v30 = vmul.u32 18, %v713_v61  ;;  %v8266_v20 = vrot.slane %v6630_v26, 1  ;;  %v8268_v17 = vrot.slane %v6630_v26, 2 }
 0x151   :  { %4629 = vmatmul.msk.bf16.gmra.mxu1 %vm4627_vm6, %v4628_v11  ;;  %v1965_v33 = vrot.slane %v6728_v53, 1  ;;  %v2147_v27 = vrot.slane %v6728_v53, 2  ;;  %v671_v61 = vshrl.u32 %v6691_v54, 16  ;;  %1802 = vmatpush.bf16.msrb.mxu0 %v5198_v38  ;;  %v1687_v54 = vrot.slane %v6176_v58, 7 }
 0x152   :  { %v715_v50 = vsub.s32 %v6622_v62, %v714_v30 }
 0x153   :  { %v1307_v56 = vpop.f32.mrf.mxu2  ;;  %v1973_v25 = vsel %vm1165_vm1, %v1965_v33, %v8265_v34  ;;  %v1974_v11 = vsel %vm1165_vm1, %v8266_v20, %v1965_v33  ;;  %v2155_v2 = vsel %vm1348_vm2, %v2147_v27, %v8267_v40  ;;  %v2156_v9 = vsel %vm1348_vm2, %v8268_v17, %v2147_v27 }
 0x154   :  { %v1994_v1 = vpack.c.bf16 %v1973_v25, %v1974_v11  ;;  %v2176_v43 = vpack.c.bf16 %v2155_v2, %v2156_v9  ;;  %v1328_v10 = vadd.f32 %v1307_v56, %v1143_v48  ;;  %v679_v33 = vsel %vm678_vm8, 1, %v5632_v60  ;;  %v1490_v21 = vpop.f32.mrf.mxu3 }
 0x155   :  { %v725_v34 = vmul.u32 58254, %v721_v47  ;;  %v6755_v20 = vmul.u32 14564, %v722_v0  ;;  %vm763_vm7 = vcmp.ne.s32.totalorder %v715_v50, 0  ;;  %vm781_vm14 = vcmp.lt.s32.totalorder %v715_v50, 0 }
 0x156   :  { %2100 = vmatmul.bf16.gmra.mxu2 %v1994_v1  ;;  %2282 = vmatmul.bf16.gmra.mxu3 %v2176_v43  ;;  %v817_v40 = vadd.s32 18, %v715_v50  ;;  %v724_v27 = vmul.u32 14564, %v721_v47  ;;  %vm799_vm3 = vmand %vm781_vm14, %vm763_vm7  ;;  %v673_v25 = vshrl.u32 %v6702_v16, 16  ;;  %v681_v56 = vadd.s32 %v679_v33, %v677_v19  ;;  %v5197_v47 = vld [vmem:[#allocation7] sm:$0xff] }
 0x157   :  { %v728_v62 = vshll.u32 %v725_v34, 16  ;;  %v1510_v48 = vadd.f32 %v1487_v39, %v1327_v45  ;;  %v1511_v30 = vadd.f32 %v1490_v21, %v1328_v10  ;;  %v727_v11 = vmul.u32 58254, %v722_v0  ;;  %1803 = vmatpush.bf16.msrb.mxu0 %v5197_v47 }
 0x158   :  { %v1690_v2 = vrot.slane %v6287_v57, 7  ;;  %v6760_v17 = vsel %vm799_vm3, %v817_v40, %v715_v50  ;;  %v682_v9 = vadd.s32 %v681_v56, %v671_v61  ;;  %v730_v1 = vshll.u32 %v6755_v20, 16  ;;  %v1042_v40 = vpop.f32.mrf.mxu0 }
 0x159   :  { %8269 = vst [vmem:[#allocation38_spill] sm:$0xff] %v6760_v17  ;;  %vm732_vm9 = vc.u32 %v724_v27, %v728_v62  ;;  %v734_v43 = vadd.s32 %v728_v62, %v724_v27  ;;  %v8270_v16 = vrot.slane %v6187_v5, 7  ;;  %v1689_v39 = vrot.slane %v6228_v46, 7  ;;  %v1144_v27 = vpop.f32.mrf.mxu1 }
 0x15a   :  { %v1693_v57 = vrot.slane %v6429_v23, 7  ;;  %v1692_v0 = vrot.slane %v6383_v12, 7  ;;  %v683_v45 = vadd.s32 %v682_v9, %v673_v25  ;;  %v733_v38 = vsel %vm732_vm9, 1, %v5632_v60 }
 0x15b   :  { %v6769_v19 = vsel %vm899_vm0, %v1687_v54, %v8270_v16  ;;  %v1586_v10 = vadd.f32 %v6669_v13, %v1510_v48  ;;  %v6777_v50 = vadd.f32 %v6669_v13, %v1511_v30  ;;  %v729_v61 = vshrl.u32 %v725_v34, 16  ;;  %v1309_v62 = vpop.f32.mrf.mxu2 }
 0x15c   :  { %v735_v33 = vadd.s32 %v733_v38, %v727_v11  ;;  %vm8184_vm6 = vcmp.ge.s32.totalorder %v6760_v17, 1  ;;  %v684_v46 = vshrl.u32 %v683_v45, 4  ;;  %vm736_vm8 = vc.u32 %v734_v43, %v730_v1 }
 0x15d   :  { %v6782_v12 = vsel %vm899_vm0, %v1689_v39, %v1690_v2  ;;  %vm1547_vm7 = vcmp.le.s32.totalorder %v6760_v17, 15  ;;  %v737_v23 = vsel %vm736_vm8, 1, %v5632_v60  ;;  %v8271_v21 = vmov %v8270_v16 }
 0x15e   :  { %v6790_v34 = vsel %vm899_vm0, %v8271_v21, %v1689_v39  ;;  %v1691_v25 = vrot.slane %v6340_v63, 7  ;;  %v685_v56 = vmul.u32 18, %v684_v46  ;;  %v731_v48 = vshrl.u32 %v6755_v20, 16  ;;  %vm6807_vm14 = vmand %vm8184_vm6, %vm1547_vm7 }
 0x15f   :  { %v739_v30 = vadd.s32 %v737_v23, %v735_v33  ;;  %v1724_v11 = vpack.c.bf16 %v6782_v12, %v6790_v34  ;;  %v1605_v9 = vmax.f32 %v6777_v50, 0.0  ;;  %v1145_v1 = vadd.f32 %v1144_v27, %v1042_v40  ;;  %v1492_v33 = vpop.f32.mrf.mxu3 }
 0x160   :  { %v6799_v60 = vsel %vm899_vm0, %v1691_v25, %v1692_v0  ;;  %v6803_v5 = vsel %vm899_vm0, %v1690_v2, %v1691_v25  ;;  %v1604_v63 = vmax.f32 %v1586_v10, 0.0  ;;  %v686_v47 = vsub.s32 %v6678_v32, %v685_v56 }
 0x161   :  { %v740_v43 = vadd.s32 %v739_v30, %v729_v61  ;;  %v1725_v16 = vpack.c.bf16 %v6799_v60, %v6803_v5  ;;  %v1329_v39 = vadd.f32 %v1309_v62, %v1145_v1  ;;  %v6816_v45 = vsel %vm899_vm0, %v1692_v0, %v1693_v57 }
 0x162   :  { %vm762_vm3 = vcmp.ne.s32.totalorder %v686_v47, 0  ;;  %vm780_vm9 = vcmp.lt.s32.totalorder %v686_v47, 0  ;;  %v816_v2 = vadd.s32 18, %v686_v47  ;;  %v6820_v10 = vsel %vm6807_vm14, %v1605_v9, 0.0 }
 0x163   :  { %v741_v38 = vadd.s32 %v740_v43, %v731_v48  ;;  %vm798_vm8 = vmand %vm780_vm9, %vm762_vm3  ;;  %v8274_v32 = vmax.f32 %v6683_v8, 0.0  ;;  %v1694_v27 = vrot.slane %v6464_v3, 7  ;;  %v1512_v0 = vadd.f32 %v1492_v33, %v1329_v39 }
 0x164   :  { %v6824_v61 = vsel %vm798_vm8, %v816_v2, %v686_v47  ;;  %v1968_v46 = vrot.slane %v6820_v10, 1  ;;  %v2150_v23 = vrot.slane %v6820_v10, 2  ;;  %v8275_v1 = vrot.slane %v6712_v29, 1 }
 0x165   :  { %v4631_v50 = vpack.c.bf16 %v1604_v63, %v8274_v32  ;;  %v742_v40 = vshrl.u32 %v741_v38, 4  ;;  %vm8185_vm7 = vcmp.ge.s32.totalorder %v6824_v61, 1  ;;  %vm1546_vm6 = vcmp.le.s32.totalorder %v6824_v61, 15 }
 0x166   :  { %vm1564_vm3 = vmand %vm8185_vm7, %vm1546_vm6  ;;  %v1588_v62 = vadd.f32 %v6669_v13, %v1512_v0  ;;  %v1715_v48 = vsel %vm899_vm0, %v1693_v57, %v1694_v27  ;;  %v8276_v47 = vrot.slane %v6712_v29, 2  ;;  %v1695_v2 = vrot.slane %v6500_v44, 7 }
 0x167   :  { %v743_v8 = vmul.u32 18, %v742_v40  ;;  %v6833_v21 = vsel %vm1564_vm3, %v1604_v63, 0.0  ;;  %vm4630_vm9 = vmpackc.low %vm1564_vm3, %vm6697_vm15  ;;  %v1726_v39 = vpack.c.bf16 %v1715_v48, %v6816_v45  ;;  %v1701_v34 = vrot.slane %v6712_v29, 7 }
 0x168   :  { %4632 = vmatmul.msk.bf16.gmra.mxu1 %vm4630_vm9, %v4631_v50  ;;  %v1967_v3 = vrot.slane %v6833_v21, 1  ;;  %v2149_v25 = vrot.slane %v6833_v21, 2  ;;  %v1606_v38 = vmax.f32 %v1588_v62, 0.0  ;;  %v1714_v33 = vsel %vm899_vm0, %v1694_v27, %v1695_v2 }
 0x169   :  { %v744_v56 = vsub.s32 %v6719_v49, %v743_v8 }
 0x16a   :  { %v1971_v30 = vsel %vm1165_vm1, %v1967_v3, %v1968_v46  ;;  %v1972_v18 = vsel %vm1165_vm1, %v8275_v1, %v1967_v3  ;;  %v2153_v63 = vsel %vm1348_vm2, %v2149_v25, %v2150_v23  ;;  %v2154_v49 = vsel %vm1348_vm2, %v8276_v47, %v2149_v25 }
 0x16b   :  { %v1995_v13 = vpack.c.bf16 %v1971_v30, %v1972_v18  ;;  %v2177_v43 = vpack.c.bf16 %v2153_v63, %v2154_v49  ;;  %vm764_vm15 = vcmp.ne.s32.totalorder %v744_v56, 0  ;;  %vm782_vm6 = vcmp.lt.s32.totalorder %v744_v56, 0 }
 0x16c   :  { %vm800_vm8 = vmand %vm782_vm6, %vm764_vm15  ;;  %v818_v57 = vadd.s32 18, %v744_v56  ;;  %v4634_v45 = vpack.c.bf16 %v1606_v38, %v1605_v9  ;;  %v1696_v3 = vrot.slane %v6534_v14, 7  ;;  %v8278_v9 = vrot.slane %v6176_v58, 1 }
 0x16d   :  { %2105 = vmatmul.bf16.gmra.mxu2 %v1995_v13  ;;  %2287 = vmatmul.bf16.gmra.mxu3 %v2177_v43  ;;  %v8279_v14 = vrot.slane %v6176_v58, 2  ;;  %v1699_v63 = vrot.slane %v6630_v26, 7  ;;  %v1700_v47 = vrot.slane %v6728_v53, 7  ;;  %v1702_v26 = vrot.slane %v6833_v21, 7  ;;  %v5227_v43 = vld [vmem:[#allocation10 + $0x70] sm:$0xff]  ;;  %v1907_v21 = vpop.f32.mrf.mxu1 }
 0x16e   :  { %v6857_v32 = vsel %vm800_vm8, %v818_v57, %v744_v56  ;;  %v1703_v13 = vrot.slane %v6820_v10, 7  ;;  %vm8282_vm8 = vcmp.ge.s32.totalorder %v6090_v41, 1 }
 0x16f   :  { %8277 = vst [vmem:[#allocation39_spill] sm:$0xff] %v6857_v32  ;;  %vm1530_vm3 = vcmp.ge.s32.totalorder %v6857_v32, 1  ;;  %vm1548_vm9 = vcmp.le.s32.totalorder %v6857_v32, 15  ;;  %v1707_v49 = vsel %vm899_vm0, %v1701_v34, %v1702_v26 }
 0x170   :  { %vm1566_vm7 = vmand %vm1530_vm3, %vm1548_vm9  ;;  %v1706_v60 = vsel %vm899_vm0, %v1702_v26, %v1703_v13  ;;  %v5245_v26 = vld [vmem:[#allocation10 + $0xc0] sm:$0xff] }
 0x171   :  { %v1660_v50 = vsel %vm1566_vm7, %v1606_v38, 0.0  ;;  %vm4633_vm15 = vmpackc.low %vm1566_vm7, %vm6807_vm14  ;;  %vm2317_vm14 = vcmp.le.s32.totalorder %v6093_v55, 14  ;;  %vm2316_vm7 = vcmp.le.s32.totalorder %v6090_v41, 14 }
 0x172   :  { %v1704_v40 = vrot.slane %v1660_v50, 7  ;;  %v1969_v0 = vrot.slane %v1660_v50, 1  ;;  %v2151_v44 = vrot.slane %v1660_v50, 2  ;;  %vm6933_vm6 = vmand %vm1514_vm10, %vm2317_vm14  ;;  %vm2318_vm14 = vcmp.le.s32.totalorder %v6111_v28, 14 }
 0x173   :  { %vm6939_vm9 = vmand %vm8282_vm8, %vm2316_vm7  ;;  %vm8285_vm7 = vcmp.ge.s32.totalorder %v6111_v28, 1 }
 0x174   :  { %v1722_v8 = vsel %vm899_vm0, %v1704_v40, %v1687_v54  ;;  %v1970_v27 = vsel %vm1165_vm1, %v1968_v46, %v1969_v0  ;;  %v1987_v56 = vsel %vm1165_vm1, %v1969_v0, %v8278_v9  ;;  %v2152_v54 = vsel %vm1348_vm2, %v2150_v23, %v2151_v44  ;;  %v5252_v0 = vld [vmem:[#allocation10 + $0xf8] sm:$0xff]  ;;  %v5250_v9 = vld [vmem:[#allocation10 + $0xe8] sm:$0xff]  ;;  %vm6956_vm8 = vmand %vm8285_vm7, %vm2318_vm14 }
 0x175   :  { %v1723_v25 = vpack.c.bf16 %v6769_v19, %v1722_v8  ;;  %v2169_v20 = vsel %vm1348_vm2, %v2151_v44, %v8279_v14  ;;  %v1713_v19 = vsel %vm899_vm0, %v1695_v2, %v1696_v3  ;;  %v1996_v48 = vpack.c.bf16 %v1987_v56, %v1970_v27  ;;  %v2071_v57 = vpop.f32.mrf.mxu2  ;;  %v2253_v2 = vpop.f32.mrf.mxu3  ;;  %v5243_v44 = vld [vmem:[#allocation10 + $0xb0] sm:$0xff]  ;;  %3029 = vmatpush.bf16.msra.mxu3 %v5252_v0  ;;  %v5242_v27 = vld [vmem:[#allocation10 + $0xa8] sm:$0xff] }
 0x176   :  { %v1727_v62 = vpack.c.bf16 %v1713_v19, %v1714_v33  ;;  %v2178_v30 = vpack.c.bf16 %v2169_v20, %v2152_v54  ;;  %v1697_v46 = vrot.slane %v6563_v42, 7  ;;  %v1698_v23 = vrot.slane %v6636_v59, 7  ;;  %v1909_v10 = vpop.f32.mrf.mxu1  ;;  %v5225_v33 = vld [vmem:[#allocation10 + $0x60] sm:$0xff]  ;;  %v5251_v8 = vld [vmem:[#allocation10 + $0xf0] sm:$0xff]  ;;  %v5222_v14 = vld [vmem:[#allocation10 + $0x48] sm:$0xff] }
 0x177   :  { %1804 = vmatmul.bf16.vlgmr.msrb.gmra.mxu0 %v1723_v25  ;;  %v1709_v59 = vsel %vm899_vm0, %v1699_v63, %v1700_v47  ;;  %v1705_v5 = vsel %vm899_vm0, %v1703_v13, %v1704_v40  ;;  %v5224_v40 = vld [vmem:[#allocation10 + $0x58] sm:$0xff]  ;;  %v5223_v25 = vld [vmem:[#allocation10 + $0x50] sm:$0xff]  ;;  %v5241_v20 = vld [vmem:[#allocation10 + $0xa0] sm:$0xff]  ;;  %vm2320_vm7 = vcmp.le.s32.totalorder %v6192_v7, 14 }
 0x178   :  { %4635 = vmatmul.msk.bf16.gmra.mxu1 %vm4633_vm15, %v4634_v45  ;;  %v1712_v1 = vsel %vm899_vm0, %v1696_v3, %v1697_v46  ;;  %v1711_v58 = vsel %vm899_vm0, %v1697_v46, %v1698_v23  ;;  %v1710_v42 = vsel %vm899_vm0, %v1698_v23, %v1699_v63  ;;  %v1731_v29 = vpack.c.bf16 %v1705_v5, %v1706_v60  ;;  %v5244_v45 = vld [vmem:[#allocation10 + $0xb8] sm:$0xff]  ;;  %v5249_v19 = vld [vmem:[#allocation10 + $0xe0] sm:$0xff]  ;;  %v5239_v23 = vld [vmem:[#allocation10 + $0x90] sm:$0xff] }
 0x179   :  { %v1728_v18 = vpack.c.bf16 %v1711_v58, %v1712_v1  ;;  %v1729_v12 = vpack.c.bf16 %v1709_v59, %v1710_v42  ;;  %2847 = vmatpush.bf16.msra.mxu2 %v5244_v45  ;;  %3030 = vmatpush.bf16.msra.mxu3 %v5251_v8  ;;  %v5248_v46 = vld [vmem:[#allocation10 + $0xd8] sm:$0xff]  ;;  %v5247_v58 = vld [vmem:[#allocation10 + $0xd0] sm:$0xff]  ;;  %v5246_v59 = vld [vmem:[#allocation10 + $0xc8] sm:$0xff] }
 0x17a   :  { %v6924_v60 = vld [vmem:[#allocation8] ss:$0 sm:$0xff]  ;;  %vm4764_vm15 = vmpackc.low %vm6933_vm6, %vm6939_vm9 }
 0x17d   :  { %2110 = vmatmul.bf16.gmra.mxu2 %v1996_v48  ;;  %2292 = vmatmul.bf16.gmra.mxu3 %v2178_v30  ;;  %v2073_v38 = vpop.f32.mrf.mxu2  ;;  %v6916_v50 = vpop.f32.mrf.mxu3  ;;  %v5221_v48 = vld [vmem:[#allocation10 + $0x40] sm:$0xff]  ;;  %v5240_v30 = vld [vmem:[#allocation10 + $0x98] sm:$0xff] }
 0x17e   :  { %v6918_v3 = vpop.f32.mrf.mxu1  ;;  %2848 = vmatpush.bf16.msra.mxu2 %v5243_v44  ;;  %3031 = vmatpush.bf16.msra.mxu3 %v5250_v9 }
 0x182   :  { %2849 = vmatpush.bf16.msra.mxu2 %v5242_v27  ;;  %3032 = vmatpush.bf16.msra.mxu3 %v5249_v19 }
 0x185   :  { %v2076_v56 = vpop.f32.mrf.mxu2  ;;  %v2258_v54 = vpop.f32.mrf.mxu3 }
 0x186   :  { %2850 = vmatpush.bf16.msra.mxu2 %v5241_v20  ;;  %3033 = vmatpush.bf16.msra.mxu3 %v5248_v46 }
 0x187   :  { %1809 = vmatmul.bf16.gmra.mxu0 %v1724_v11  ;;  %v1708_v11 = vsel %vm899_vm0, %v1700_v47, %v1701_v34  ;;  %v5238_v47 = vld [vmem:[#allocation10 + $0x88] sm:$0xff] }
 0x188   :  { %v1730_v53 = vpack.c.bf16 %v1707_v49, %v1708_v11  ;;  %v5237_v11 = vld [vmem:[#allocation10 + $0x80] sm:$0xff] }
 0x18a   :  { %2851 = vmatpush.bf16.msra.mxu2 %v5240_v30  ;;  %3034 = vmatpush.bf16.msra.mxu3 %v5247_v58 }
 0x18d   :  { %v2078_v1 = vpop.f32.mrf.mxu2 }
 0x18e   :  { %2852 = vmatpush.bf16.msra.mxu2 %v5239_v23  ;;  %3035 = vmatpush.bf16.msra.mxu3 %v5246_v59 }
 0x192   :  { %2853 = vmatpush.bf16.msra.mxu2 %v5238_v47  ;;  %3036 = vmatpush.bf16.msra.mxu3 %v5245_v26 }
 0x195   :  { %v6922_v49 = vpop.f32.mrf.mxu2 }
 0x196   :  { %2854 = vmatpush.bf16.msra.mxu2 %v5237_v11 }
 0x197   :  { %1814 = vmatmul.bf16.gmra.mxu0 %v1725_v16  ;;  %v5228_v16 = vld [vmem:[#allocation10 + $0x78] sm:$0xff] }
 0x198   :  { %2683 = vmatpush.bf16.msra.mxu1 %v5228_v16 }
 0x19c   :  { %2684 = vmatpush.bf16.msra.mxu1 %v5227_v43 }
 0x19d   :  { %v2083_v0 = vpop.f32.mrf.mxu2 }
 0x1a5   :  { %v2086_v58 = vpop.f32.mrf.mxu2 }
 0x1a7   :  { %1819 = vmatmul.bf16.gmra.mxu0 %v1726_v39  ;;  %v5226_v39 = vld [vmem:[#allocation10 + $0x68] sm:$0xff] }
 0x1a8   :  { %2685 = vmatpush.bf16.msra.mxu1 %v5226_v39 }
 0x1ac   :  { %2686 = vmatpush.bf16.msra.mxu1 %v5225_v33 }
 0x1b0   :  { %2687 = vmatpush.bf16.msra.mxu1 %v5224_v40 }
 0x1b4   :  { %2688 = vmatpush.bf16.msra.mxu1 %v5223_v25 }
 0x1b7   :  { %1824 = vmatmul.bf16.gmra.mxu0 %v1727_v62  ;;  %v1914_v62 = vpop.f32.mrf.mxu1 }
 0x1b8   :  { %2689 = vmatpush.bf16.msra.mxu1 %v5222_v14 }
 0x1bc   :  { %2690 = vmatpush.bf16.msra.mxu1 %v5221_v48 }
 0x1bf   :  { %v6920_v34 = vpop.f32.mrf.mxu1 }
 0x1c7   :  { %1829 = vmatmul.bf16.gmra.mxu0 %v1728_v18  ;;  %v2260_v18 = vpop.f32.mrf.mxu3 }
 0x1cf   :  { %v2263_v16 = vpop.f32.mrf.mxu3 }
 0x1d7   :  { %1834 = vmatmul.bf16.gmra.mxu0 %v1729_v12  ;;  %v2265_v8 = vpop.f32.mrf.mxu3 }
 0x1e7   :  { %1839 = vmatmul.bf16.gmra.mxu0 %v1730_v53 }
 0x1f4   :  { %v1805_v63 = vpop.f32.mrf.mxu0 }
 0x1f5   :  { %v1908_v42 = vadd.f32 %v1907_v21, %v1805_v63 }
 0x1f7   :  { %1844 = vmatmul.bf16.gmra.mxu0 %v1731_v29  ;;  %v2116_v12 = vadd.f32 %v2071_v57, %v1908_v42 }
 0x1f9   :  { %v2298_v13 = vadd.f32 %v2253_v2, %v2116_v12  ;;  %v1919_v2 = vpop.f32.mrf.mxu1  ;;  %v2268_v12 = vpop.f32.mrf.mxu3 }
 0x1fb   :  { %v2356_v29 = vadd.f32 %v6924_v60, %v2298_v13 }
 0x1fc   :  { %v1807_v53 = vpop.f32.mrf.mxu0 }
 0x1fd   :  { %v1910_v5 = vadd.f32 %v1909_v10, %v1807_v53  ;;  %v2374_v33 = vmax.f32 %v2356_v29, 0.0 }
 0x1ff   :  { %v2117_v43 = vadd.f32 %v2073_v38, %v1910_v5 }
 0x201   :  { %v2299_v21 = vadd.f32 %v6916_v50, %v2117_v43  ;;  %v1922_v19 = vpop.f32.mrf.mxu1 }
 0x203   :  { %v2357_v57 = vadd.f32 %v6924_v60, %v2299_v21 }
 0x204   :  { %v1810_v10 = vpop.f32.mrf.mxu0 }
 0x205   :  { %v2375_v50 = vmax.f32 %v2357_v57, 0.0  ;;  %v1913_v45 = vadd.f32 %v6918_v3, %v1810_v10 }
 0x207   :  { %v4765_v40 = vpack.c.bf16 %v2375_v50, %v2374_v33  ;;  %v2118_v44 = vadd.f32 %v2076_v56, %v1913_v45  ;;  %v6952_v9 = vsel %vm6933_vm6, %v2375_v50, 0.0  ;;  %v6962_v56 = vsel %vm6939_vm9, %v2374_v33, 0.0  ;;  %v2088_v33 = vpop.f32.mrf.mxu2 }
 0x208   :  { %v2738_v48 = vrot.slane %v6952_v9, 1  ;;  %v2920_v30 = vrot.slane %v6952_v9, 2  ;;  %vm2319_vm6 = vcmp.le.s32.totalorder %v6171_v52, 14  ;;  %v2737_v63 = vrot.slane %v6962_v56, 1 }
 0x209   :  { %v2300_v25 = vadd.f32 %v2258_v54, %v2118_v44  ;;  %4766 = vmatmul.msk.bf16.vlgmr.msra.gmra.mxu1 %vm4764_vm15, %v4765_v40  ;;  %v2919_v42 = vrot.slane %v6962_v56, 2  ;;  %vm8288_vm9 = vcmp.ge.s32.totalorder %v6171_v52, 1  ;;  %v1924_v10 = vpop.f32.mrf.mxu1 }
 0x20a   :  { %vm2337_vm15 = vmand %vm8288_vm9, %vm2319_vm6 }
 0x20b   :  { %v2358_v27 = vadd.f32 %v6924_v60, %v2300_v25  ;;  %v2953_v53 = vsel %vm1348_vm2, %v2919_v42, %v2920_v30  ;;  %vm4767_vm14 = vmpackc.low %vm2337_vm15, %vm6956_vm8 }
 0x20c   :  { %v1812_v14 = vpop.f32.mrf.mxu0  ;;  %vm7002_vm6 = vmand %vm1517_vm13, %vm2320_vm7 }
 0x20d   :  { %v2376_v54 = vmax.f32 %v2358_v27, 0.0  ;;  %v1915_v20 = vadd.f32 %v1914_v62, %v1812_v14 }
 0x20f   :  { %v6968_v46 = vsel %vm6956_vm8, %v2376_v54, 0.0  ;;  %v2119_v23 = vadd.f32 %v2078_v1, %v1915_v20  ;;  %v2771_v1 = vsel %vm1165_vm1, %v2737_v63, %v2738_v48  ;;  %vm2321_vm8 = vcmp.le.s32.totalorder %v6306_v15, 14 }
 0x210   :  { %v2739_v47 = vrot.slane %v6968_v46, 1  ;;  %v2921_v62 = vrot.slane %v6968_v46, 2  ;;  %vm2339_vm9 = vmand %vm1518_vm4, %vm2321_vm8  ;;  %vm8293_vm8 = vcmp.ge.s32.totalorder %v6419_v4, 1 }
 0x211   :  { %v2301_v59 = vadd.f32 %v2260_v18, %v2119_v23 }
 0x212   :  { %v2770_v11 = vsel %vm1165_vm1, %v2738_v48, %v2739_v47  ;;  %v2952_v26 = vsel %vm1348_vm2, %v2920_v30, %v2921_v62  ;;  %v1927_v30 = vpop.f32.mrf.mxu1 }
 0x213   :  { %v2359_v13 = vadd.f32 %v6924_v60, %v2301_v59  ;;  %v2773_v18 = vpack.c.bf16 %v2770_v11, %v2771_v1  ;;  %v2955_v5 = vpack.c.bf16 %v2952_v26, %v2953_v53 }
 0x214   :  { %v1815_v43 = vpop.f32.mrf.mxu0 }
 0x215   :  { %v1918_v29 = vadd.f32 %v6920_v34, %v1815_v43  ;;  %2855 = vmatmul.bf16.vlgmr.msra.gmra.mxu2 %v2773_v18  ;;  %3037 = vmatmul.bf16.vlgmr.msra.gmra.mxu3 %v2955_v5  ;;  %v2377_v21 = vmax.f32 %v2359_v13, 0.0  ;;  %v2270_v34 = vpop.f32.mrf.mxu3 }
 0x217   :  { %v2120_v57 = vadd.f32 %v6922_v49, %v1918_v29  ;;  %v4768_v39 = vpack.c.bf16 %v2377_v21, %v2376_v54  ;;  %v6998_v45 = vsel %vm2337_vm15, %v2377_v21, 0.0  ;;  %vm4770_vm15 = vmpackc.low %vm2339_vm9, %vm7002_vm6 }
 0x218   :  { %v2922_v27 = vrot.slane %v6998_v45, 2 }
 0x219   :  { %v2302_v38 = vadd.f32 %v2263_v16, %v2120_v57  ;;  %4769 = vmatmul.msk.bf16.gmra.mxu1 %vm4767_vm14, %v4768_v39  ;;  %v2740_v16 = vrot.slane %v6998_v45, 1  ;;  %vm2322_vm14 = vcmp.le.s32.totalorder %v6294_v36, 14 }
 0x21a   :  { %v1929_v57 = vpop.f32.mrf.mxu1  ;;  %vm7034_vm7 = vmand %vm1519_vm12, %vm2322_vm14  ;;  %vm2324_vm14 = vcmp.le.s32.totalorder %v6387_v35, 14 }
 0x21b   :  { %v2360_v50 = vadd.f32 %v6924_v60, %v2302_v38  ;;  %v2769_v23 = vsel %vm1165_vm1, %v2739_v47, %v2740_v16 }
 0x21c   :  { %v1817_v44 = vpop.f32.mrf.mxu0 }
 0x21d   :  { %v2378_v49 = vmax.f32 %v2360_v50, 0.0  ;;  %v1920_v25 = vadd.f32 %v1919_v2, %v1817_v44  ;;  %v2273_v47 = vpop.f32.mrf.mxu3 }
 0x21f   :  { %v7010_v3 = vsel %vm7002_vm6, %v2378_v49, 0.0  ;;  %v2121_v14 = vadd.f32 %v2083_v0, %v1920_v25  ;;  %v2951_v0 = vsel %vm1348_vm2, %v2921_v62, %v2922_v27  ;;  %vm2323_vm6 = vcmp.le.s32.totalorder %v6419_v4, 14 }
 0x220   :  { %v2741_v54 = vrot.slane %v7010_v3, 1  ;;  %v2923_v20 = vrot.slane %v7010_v3, 2 }
 0x221   :  { %v2303_v48 = vadd.f32 %v2265_v8, %v2121_v14  ;;  %v2091_v8 = vpop.f32.mrf.mxu2 }
 0x222   :  { %v2768_v2 = vsel %vm1165_vm1, %v2740_v16, %v2741_v54  ;;  %v2950_v59 = vsel %vm1348_vm2, %v2922_v27, %v2923_v20 }
 0x223   :  { %v2361_v11 = vadd.f32 %v6924_v60, %v2303_v48  ;;  %v2774_v1 = vpack.c.bf16 %v2768_v2, %v2769_v23  ;;  %v2956_v26 = vpack.c.bf16 %v2950_v59, %v2951_v0 }
 0x224   :  { %v1820_v53 = vpop.f32.mrf.mxu0 }
 0x225   :  { %v1923_v13 = vadd.f32 %v1922_v19, %v1820_v53  ;;  %2860 = vmatmul.bf16.gmra.mxu2 %v2774_v1  ;;  %3042 = vmatmul.bf16.gmra.mxu3 %v2956_v26  ;;  %v2379_v18 = vmax.f32 %v2361_v11, 0.0  ;;  %v2275_v25 = vpop.f32.mrf.mxu3  ;;  %v1932_v26 = vpop.f32.mrf.mxu1 }
 0x227   :  { %v2122_v5 = vadd.f32 %v2086_v58, %v1923_v13  ;;  %v4771_v43 = vpack.c.bf16 %v2379_v18, %v2378_v49  ;;  %v7030_v21 = vsel %vm2339_vm9, %v2379_v18, 0.0  ;;  %vm7058_vm9 = vmand %vm8293_vm8, %vm2323_vm6  ;;  %vm8296_vm6 = vcmp.ge.s32.totalorder %v6387_v35, 1 }
 0x228   :  { %v2924_v40 = vrot.slane %v7030_v21, 2  ;;  %vm7074_vm8 = vmand %vm8296_vm6, %vm2324_vm14  ;;  %vm2326_vm14 = vcmp.le.s32.totalorder %v6492_v51, 14  ;;  %vm8301_vm6 = vcmp.ge.s32.totalorder %v6492_v51, 1 }
 0x229   :  { %v2304_v62 = vadd.f32 %v2268_v12, %v2122_v5  ;;  %4772 = vmatmul.msk.bf16.gmra.mxu1 %vm4770_vm15, %v4771_v43  ;;  %v2093_v58 = vpop.f32.mrf.mxu2  ;;  %v2742_v12 = vrot.slane %v7030_v21, 1  ;;  %vm4773_vm15 = vmpackc.low %vm7058_vm9, %vm7034_vm7 }
 0x22b   :  { %v2362_v29 = vadd.f32 %v6924_v60, %v2304_v62  ;;  %v2767_v48 = vsel %vm1165_vm1, %v2741_v54, %v2742_v12 }
 0x22c   :  { %v1822_v39 = vpop.f32.mrf.mxu0 }
 0x22d   :  { %v2380_v38 = vmax.f32 %v2362_v29, 0.0  ;;  %v1925_v50 = vadd.f32 %v1924_v10, %v1822_v39  ;;  %v2278_v5 = vpop.f32.mrf.mxu3 }
 0x22f   :  { %v7042_v44 = vsel %vm7034_vm7, %v2380_v38, 0.0  ;;  %v2123_v49 = vadd.f32 %v2088_v33, %v1925_v50  ;;  %v2949_v33 = vsel %vm1348_vm2, %v2923_v20, %v2924_v40  ;;  %vm2325_vm7 = vcmp.le.s32.totalorder %v6523_v6, 14 }
 0x230   :  { %v2743_v16 = vrot.slane %v7042_v44, 1  ;;  %v2925_v27 = vrot.slane %v7042_v44, 2 }
 0x231   :  { %v2305_v14 = vadd.f32 %v2270_v34, %v2123_v49  ;;  %v2096_v13 = vpop.f32.mrf.mxu2 }
 0x232   :  { %v2766_v10 = vsel %vm1165_vm1, %v2742_v12, %v2743_v16  ;;  %v2948_v2 = vsel %vm1348_vm2, %v2924_v40, %v2925_v27  ;;  %v1934_v12 = vpop.f32.mrf.mxu1 }
 0x233   :  { %v2363_v23 = vadd.f32 %v6924_v60, %v2305_v14  ;;  %v2775_v59 = vpack.c.bf16 %v2766_v10, %v2767_v48  ;;  %v2957_v0 = vpack.c.bf16 %v2948_v2, %v2949_v33 }
 0x234   :  { %v1825_v11 = vpop.f32.mrf.mxu0 }
 0x235   :  { %v1928_v1 = vadd.f32 %v1927_v30, %v1825_v11  ;;  %2865 = vmatmul.bf16.gmra.mxu2 %v2775_v59  ;;  %3047 = vmatmul.bf16.gmra.mxu3 %v2957_v0  ;;  %v2381_v54 = vmax.f32 %v2363_v23, 0.0  ;;  %v2280_v0 = vpop.f32.mrf.mxu3 }
 0x237   :  { %v2124_v20 = vadd.f32 %v2091_v8, %v1928_v1  ;;  %v4774_v53 = vpack.c.bf16 %v2381_v54, %v2380_v38  ;;  %v7070_v30 = vsel %vm7058_vm9, %v2381_v54, 0.0  ;;  %vm7098_vm9 = vmand %vm1522_vm11, %vm2325_vm7 }
 0x238   :  { %v2926_v39 = vrot.slane %v7070_v30, 2  ;;  %vm7115_vm7 = vmand %vm8301_vm6, %vm2326_vm14  ;;  %vm2328_vm6 = vcmp.le.s32.totalorder %v6576_v31, 14 }
 0x239   :  { %v2306_v18 = vadd.f32 %v2273_v47, %v2124_v20  ;;  %4775 = vmatmul.msk.bf16.gmra.mxu1 %vm4773_vm15, %v4774_v53  ;;  %v2744_v47 = vrot.slane %v7070_v30, 1  ;;  %v2098_v10 = vpop.f32.mrf.mxu2  ;;  %vm4776_vm15 = vmpackc.low %vm7098_vm9, %vm7074_vm8  ;;  %v2473_v53 = vrot.slane %v6952_v9, 7 }
 0x23a   :  { %v1937_v20 = vpop.f32.mrf.mxu1 }
 0x23b   :  { %v2364_v43 = vadd.f32 %v6924_v60, %v2306_v18  ;;  %v2765_v48 = vsel %vm1165_vm1, %v2743_v16, %v2744_v47 }
 0x23c   :  { %v1827_v8 = vpop.f32.mrf.mxu0 }
 0x23d   :  { %v2382_v29 = vmax.f32 %v2364_v43, 0.0  ;;  %v1930_v19 = vadd.f32 %v1929_v57, %v1827_v8 }
 0x23f   :  { %v7082_v38 = vsel %vm7074_vm8, %v2382_v29, 0.0  ;;  %v2125_v50 = vadd.f32 %v2093_v58, %v1930_v19  ;;  %v2947_v58 = vsel %vm1348_vm2, %v2925_v27, %v2926_v39  ;;  %v2283_v19 = vpop.f32.mrf.mxu3  ;;  %vm2327_vm8 = vcmp.le.s32.totalorder %v6618_v37, 14 }
 0x240   :  { %v2745_v40 = vrot.slane %v7082_v38, 1  ;;  %v2927_v49 = vrot.slane %v7082_v38, 2 }
 0x241   :  { %v2307_v14 = vadd.f32 %v2275_v25, %v2125_v50  ;;  %v2101_v43 = vpop.f32.mrf.mxu2 }
 0x242   :  { %v2764_v57 = vsel %vm1165_vm1, %v2744_v47, %v2745_v40  ;;  %v2946_v2 = vsel %vm1348_vm2, %v2926_v39, %v2927_v49 }
 0x243   :  { %v2365_v33 = vadd.f32 %v6924_v60, %v2307_v14  ;;  %v2776_v23 = vpack.c.bf16 %v2764_v57, %v2765_v48  ;;  %v2958_v59 = vpack.c.bf16 %v2946_v2, %v2947_v58 }
 0x244   :  { %v1830_v34 = vpop.f32.mrf.mxu0 }
 0x245   :  { %v1933_v11 = vadd.f32 %v1932_v26, %v1830_v34  ;;  %2870 = vmatmul.bf16.gmra.mxu2 %v2776_v23  ;;  %3052 = vmatmul.bf16.gmra.mxu3 %v2958_v59  ;;  %v2383_v16 = vmax.f32 %v2365_v33, 0.0  ;;  %v5236_v34 = vld [vmem:[#allocation10 + $0x38] sm:$0xff] }
 0x246   :  { %2581 = vmatpush.bf16.msra.mxu0 %v5236_v34 }
 0x247   :  { %v2126_v27 = vadd.f32 %v2096_v13, %v1933_v11  ;;  %v4777_v1 = vpack.c.bf16 %v2383_v16, %v2382_v29  ;;  %v7111_v26 = vsel %vm7098_vm9, %v2383_v16, 0.0  ;;  %vm8304_vm9 = vcmp.ge.s32.totalorder %v6618_v37, 1  ;;  %v1939_v11 = vpop.f32.mrf.mxu1 }
 0x248   :  { %v2746_v9 = vrot.slane %v7111_v26, 1  ;;  %v2928_v47 = vrot.slane %v7111_v26, 2 }
 0x249   :  { %v2308_v54 = vadd.f32 %v2278_v5, %v2126_v27  ;;  %4778 = vmatmul.msk.bf16.gmra.mxu1 %vm4776_vm15, %v4777_v1  ;;  %v2472_v5 = vrot.slane %v6962_v56, 7  ;;  %vm7146_vm15 = vmand %vm8304_vm9, %vm2327_vm8  ;;  %v2103_v1 = vpop.f32.mrf.mxu2  ;;  %vm2329_vm9 = vcmp.le.s32.totalorder %v6715_v24, 14 }
 0x24a   :  { %v2763_v58 = vsel %vm1165_vm1, %v2745_v40, %v2746_v9  ;;  %v2945_v33 = vsel %vm1348_vm2, %v2927_v49, %v2928_v47  ;;  %vm4779_vm14 = vmpackc.low %vm7146_vm15, %vm7115_vm7  ;;  %v5235_v49 = vld [vmem:[#allocation10 + $0x30] sm:$0xff] }
 0x24b   :  { %v2366_v18 = vadd.f32 %v6924_v60, %v2308_v54  ;;  %v7130_v14 = vsel %vm899_vm0, %v2472_v5, %v2473_v53  ;;  %2582 = vmatpush.bf16.msra.mxu0 %v5235_v49 }
 0x24c   :  { %v1832_v13 = vpop.f32.mrf.mxu0 }
 0x24d   :  { %v2384_v8 = vmax.f32 %v2366_v18, 0.0  ;;  %v1935_v29 = vadd.f32 %v1934_v12, %v1832_v13  ;;  %v2285_v13 = vpop.f32.mrf.mxu3 }
 0x24f   :  { %v7124_v39 = vsel %vm7115_vm7, %v2384_v8, 0.0  ;;  %v2127_v50 = vadd.f32 %v2098_v10, %v1935_v29  ;;  %vm8307_vm7 = vcmp.ge.s32.totalorder %v6576_v31, 1 }
 0x250   :  { %v2747_v57 = vrot.slane %v7124_v39, 1  ;;  %v2929_v12 = vrot.slane %v7124_v39, 2  ;;  %vm7164_vm8 = vmand %vm8307_vm7, %vm2328_vm6 }
 0x251   :  { %v2309_v48 = vadd.f32 %v2280_v0, %v2127_v50 }
 0x252   :  { %v2762_v2 = vsel %vm1165_vm1, %v2746_v9, %v2747_v57  ;;  %v2944_v10 = vsel %vm1348_vm2, %v2928_v47, %v2929_v12  ;;  %v2474_v47 = vrot.slane %v6968_v46, 7  ;;  %v5234_v46 = vld [vmem:[#allocation10 + $0x28] sm:$0xff] }
 0x253   :  { %v2367_v23 = vadd.f32 %v6924_v60, %v2309_v48  ;;  %v2777_v59 = vpack.c.bf16 %v2762_v2, %v2763_v58  ;;  %v2959_v25 = vpack.c.bf16 %v2944_v10, %v2945_v33  ;;  %v1942_v48 = vpop.f32.mrf.mxu1  ;;  %2583 = vmatpush.bf16.msra.mxu0 %v5234_v46  ;;  %v8312_v46 = vld [vmem:[#allocation37_spill] sm:$0xff] }
 0x254   :  { %v1835_v16 = vpop.f32.mrf.mxu0  ;;  %vm2330_vm6 = vcmp.le.s32.totalorder %v8312_v46, 14  ;;  %vm8313_vm7 = vcmp.ge.s32.totalorder %v8312_v46, 1 }
 0x255   :  { %v1938_v40 = vadd.f32 %v1937_v20, %v1835_v16  ;;  %2875 = vmatmul.bf16.gmra.mxu2 %v2777_v59  ;;  %3057 = vmatmul.bf16.gmra.mxu3 %v2959_v25  ;;  %v2385_v27 = vmax.f32 %v2367_v23, 0.0  ;;  %v2475_v20 = vrot.slane %v6998_v45, 7  ;;  %v7182_v59 = vsel %vm899_vm0, %v2473_v53, %v2474_v47  ;;  %v2106_v25 = vpop.f32.mrf.mxu2 }
 0x257   :  { %v2128_v54 = vadd.f32 %v2101_v43, %v1938_v40  ;;  %v4780_v18 = vpack.c.bf16 %v2385_v27, %v2384_v8  ;;  %v7159_v62 = vsel %vm7146_vm15, %v2385_v27, 0.0  ;;  %v7178_v23 = vsel %vm899_vm0, %v2474_v47, %v2475_v20  ;;  %v2288_v40 = vpop.f32.mrf.mxu3  ;;  %vm7200_vm15 = vmand %vm1526_vm5, %vm2329_vm9 }
 0x258   :  { %v2748_v2 = vrot.slane %v7159_v62, 1  ;;  %v2930_v58 = vrot.slane %v7159_v62, 2  ;;  %vm2331_vm9 = vcmp.le.s32.totalorder %v6824_v61, 14 }
 0x259   :  { %v2310_v29 = vadd.f32 %v2283_v19, %v2128_v54  ;;  %4781 = vmatmul.msk.bf16.gmra.mxu1 %vm4779_vm14, %v4780_v18  ;;  %v5233_v54 = vld [vmem:[#allocation10 + $0x20] sm:$0xff]  ;;  %vm4782_vm14 = vmpackc.low %vm7200_vm15, %vm7164_vm8 }
 0x25a   :  { %v2761_v53 = vsel %vm1165_vm1, %v2747_v57, %v2748_v2  ;;  %v2943_v49 = vsel %vm1348_vm2, %v2929_v12, %v2930_v58  ;;  %2584 = vmatpush.bf16.msra.mxu0 %v5233_v54  ;;  %v5232_v12 = vld [vmem:[#allocation10 + $0x18] sm:$0xff] }
 0x25b   :  { %v2368_v9 = vadd.f32 %v6924_v60, %v2310_v29 }
 0x25c   :  { %v1837_v8 = vpop.f32.mrf.mxu0 }
 0x25d   :  { %v2386_v19 = vmax.f32 %v2368_v9, 0.0  ;;  %v1940_v50 = vadd.f32 %v1939_v11, %v1837_v8  ;;  %v2509_v11 = vpack.c.bf16 %v7178_v23, %v7182_v59 }
 0x25e   :  { %2585 = vmatpush.bf16.msra.mxu0 %v5232_v12 }
 0x25f   :  { %v7172_v10 = vsel %vm7164_vm8, %v2386_v19, 0.0  ;;  %v2129_v33 = vadd.f32 %v2103_v1, %v1940_v50  ;;  %vm7218_vm8 = vmand %vm8313_vm7, %vm2330_vm6  ;;  %vm2332_vm7 = vcmp.le.s32.totalorder %v6760_v17, 14 }
 0x260   :  { %v2749_v0 = vrot.slane %v7172_v10, 1  ;;  %v2931_v34 = vrot.slane %v7172_v10, 2 }
 0x261   :  { %v2311_v16 = vadd.f32 %v2285_v13, %v2129_v33 }
 0x262   :  { %v2760_v27 = vsel %vm1165_vm1, %v2748_v2, %v2749_v0  ;;  %v2942_v1 = vsel %vm1348_vm2, %v2930_v58, %v2931_v34  ;;  %v1944_v58 = vpop.f32.mrf.mxu1 }
 0x263   :  { %v2369_v18 = vadd.f32 %v6924_v60, %v2311_v16  ;;  %v2778_v29 = vpack.c.bf16 %v2760_v27, %v2761_v53  ;;  %v2960_v9 = vpack.c.bf16 %v2942_v1, %v2943_v49  ;;  %v2108_v16 = vpop.f32.mrf.mxu2  ;;  %v2477_v27 = vrot.slane %v7030_v21, 7 }
 0x264   :  { %v1840_v47 = vpop.f32.mrf.mxu0  ;;  %v2476_v1 = vrot.slane %v7010_v3, 7 }
 0x265   :  { %v1943_v8 = vadd.f32 %v1942_v48, %v1840_v47  ;;  %2880 = vmatmul.bf16.gmra.mxu2 %v2778_v29  ;;  %3062 = vmatmul.bf16.gmra.mxu3 %v2960_v9  ;;  %v2387_v57 = vmax.f32 %v2369_v18, 0.0  ;;  %v5231_v48 = vld [vmem:[#allocation10 + $0x10] sm:$0xff]  ;;  %v5230_v9 = vld [vmem:[#allocation10 + $0x8] sm:$0xff] }
 0x266   :  { %2586 = vmatpush.bf16.msra.mxu0 %v5231_v48  ;;  %v7232_v47 = vsel %vm899_vm0, %v2476_v1, %v2477_v27  ;;  %v5229_v48 = vld [vmem:[#allocation10] sm:$0xff] }
 0x267   :  { %v2130_v50 = vadd.f32 %v2106_v25, %v1943_v8  ;;  %v4783_v2 = vpack.c.bf16 %v2387_v57, %v2386_v19  ;;  %v7213_v43 = vsel %vm7200_vm15, %v2387_v57, 0.0  ;;  %v2290_v25 = vpop.f32.mrf.mxu3  ;;  %v7238_v8 = vsel %vm899_vm0, %v2475_v20, %v2476_v1 }
 0x268   :  { %v2750_v18 = vrot.slane %v7213_v43, 1  ;;  %v2932_v29 = vrot.slane %v7213_v43, 2  ;;  %vm8316_vm15 = vcmp.ge.s32.totalorder %v6824_v61, 1  ;;  %v2478_v19 = vrot.slane %v7042_v44, 7 }
 0x269   :  { %v2312_v33 = vadd.f32 %v2288_v40, %v2130_v50  ;;  %4784 = vmatmul.msk.bf16.gmra.mxu1 %vm4782_vm14, %v4783_v2  ;;  %vm7256_vm14 = vmand %vm8316_vm15, %vm2331_vm9  ;;  %vm2333_vm15 = vcmp.le.s32.totalorder %v6857_v32, 14 }
 0x26a   :  { %v2759_v45 = vsel %vm1165_vm1, %v2749_v0, %v2750_v18  ;;  %2587 = vmatpush.bf16.msra.mxu0 %v5230_v9  ;;  %vm4785_vm6 = vmpackc.low %vm7256_vm14, %vm7218_vm8 }
 0x26b   :  { %v2370_v53 = vadd.f32 %v6924_v60, %v2312_v33 }
 0x26c   :  { %v1842_v40 = vpop.f32.mrf.mxu0 }
 0x26d   :  { %v2388_v49 = vmax.f32 %v2370_v53, 0.0  ;;  %v1945_v54 = vadd.f32 %v1944_v58, %v1842_v40  ;;  %v1947_v58 = vpop.f32.mrf.mxu1 }
 0x26e   :  { %2588 = vmatpush.bf16.msra.mxu0 %v5229_v48 }
 0x26f   :  { %v7226_v13 = vsel %vm7218_vm8, %v2388_v49, 0.0  ;;  %v2131_v3 = vadd.f32 %v2108_v16, %v1945_v54  ;;  %v2941_v16 = vsel %vm1348_vm2, %v2931_v34, %v2932_v29  ;;  %v2111_v54 = vpop.f32.mrf.mxu2  ;;  %v2293_v50 = vpop.f32.mrf.mxu3  ;;  %vm8319_vm8 = vcmp.ge.s32.totalorder %v6760_v17, 1 }
 0x270   :  { %v2751_v57 = vrot.slane %v7226_v13, 1  ;;  %v2933_v12 = vrot.slane %v7226_v13, 2  ;;  %vm7274_vm9 = vmand %vm8319_vm8, %vm2332_vm7  ;;  %vm3102_vm7 = vcmp.le.s32.totalorder %v6093_v55, 13  ;;  %vm3101_vm8 = vcmp.le.s32.totalorder %v6090_v41, 13 }
 0x271   :  { %v2313_v2 = vadd.f32 %v2290_v25, %v2131_v3  ;;  %v2501_v25 = vsel %vm899_vm0, %v2477_v27, %v2478_v19 }
 0x272   :  { %v2758_v33 = vsel %vm1165_vm1, %v2750_v18, %v2751_v57  ;;  %v2940_v20 = vsel %vm1348_vm2, %v2932_v29, %v2933_v12 }
 0x273   :  { %v2371_v53 = vadd.f32 %v6924_v60, %v2313_v2  ;;  %v2779_v1 = vpack.c.bf16 %v2758_v33, %v2759_v45  ;;  %v2961_v40 = vpack.c.bf16 %v2940_v20, %v2941_v16  ;;  %v2479_v2 = vrot.slane %v7070_v30, 7 }
 0x274   :  { %v1845_v0 = vpop.f32.mrf.mxu0 }
 0x275   :  { %v1948_v18 = vadd.f32 %v1947_v58, %v1845_v0  ;;  %2885 = vmatmul.bf16.gmra.mxu2 %v2779_v1  ;;  %3067 = vmatmul.bf16.gmra.mxu3 %v2961_v40  ;;  %v2389_v3 = vmax.f32 %v2371_v53, 0.0  ;;  %v1949_v45 = vpop.f32.mrf.mxu1  ;;  %v2500_v40 = vsel %vm899_vm0, %v2478_v19, %v2479_v2 }
 0x277   :  { %v2132_v34 = vadd.f32 %v2111_v54, %v1948_v18  ;;  %v4786_v29 = vpack.c.bf16 %v2389_v3, %v2388_v49  ;;  %v7269_v33 = vsel %vm7256_vm14, %v2389_v3, 0.0  ;;  %v2113_v48 = vpop.f32.mrf.mxu2  ;;  %v2295_v54 = vpop.f32.mrf.mxu3  ;;  %v2511_v3 = vpack.c.bf16 %v2500_v40, %v2501_v25  ;;  %vm2351_vm14 = vmand %vm1530_vm3, %vm2333_vm15 }
 0x278   :  { %v2752_v30 = vrot.slane %v7269_v33, 1  ;;  %v2934_v53 = vrot.slane %v7269_v33, 2  ;;  %vm8325_vm15 = vcmp.ge.s32.totalorder %v6090_v41, 1 }
 0x279   :  { %v2314_v9 = vadd.f32 %v2293_v50, %v2132_v34  ;;  %4787 = vmatmul.msk.bf16.gmra.mxu1 %vm4785_vm6, %v4786_v29  ;;  %vm4788_vm6 = vmpackc.low %vm2351_vm14, %vm7274_vm9 }
 0x27a   :  { %v2939_v27 = vsel %vm1348_vm2, %v2933_v12, %v2934_v53  ;;  %v2481_v12 = vrot.slane %v7111_v26, 7 }
 0x27b   :  { %v2372_v58 = vadd.f32 %v6924_v60, %v2314_v9  ;;  %v2757_v9 = vsel %vm1165_vm1, %v2751_v57, %v2752_v30 }
 0x27c   :  { %v1847_v49 = vpop.f32.mrf.mxu0 }
 0x27d   :  { %v2390_v50 = vmax.f32 %v2372_v58, 0.0  ;;  %v1950_v16 = vadd.f32 %v1949_v45, %v1847_v49 }
 0x27f   :  { %v7282_v1 = vsel %vm7274_vm9, %v2390_v50, 0.0  ;;  %v2133_v44 = vadd.f32 %v2113_v48, %v1950_v16  ;;  %vm7410_vm9 = vmand %vm1514_vm10, %vm3102_vm7  ;;  %vm3103_vm7 = vcmp.le.s32.totalorder %v6111_v28, 13 }
 0x280   :  { %v2753_v0 = vrot.slane %v7282_v1, 1  ;;  %v2935_v18 = vrot.slane %v7282_v1, 2 }
 0x281   :  { %v2315_v34 = vadd.f32 %v2295_v54, %v2133_v44 }
 0x282   :  { %v2756_v29 = vsel %vm1165_vm1, %v2752_v30, %v2753_v0  ;;  %v2938_v21 = vsel %vm1348_vm2, %v2934_v53, %v2935_v18  ;;  %v2480_v53 = vrot.slane %v7082_v38, 7 }
 0x283   :  { %v2373_v58 = vadd.f32 %v6924_v60, %v2315_v34  ;;  %v2780_v19 = vpack.c.bf16 %v2756_v29, %v2757_v9  ;;  %v2962_v45 = vpack.c.bf16 %v2938_v21, %v2939_v27  ;;  %v2482_v34 = vrot.slane %v7124_v39, 7  ;;  %v5259_v21 = vld [vmem:[#allocation11 + $0x70] sm:$0xff] }
 0x284   :  { %v2498_v40 = vsel %vm899_vm0, %v2480_v53, %v2481_v12  ;;  %v2484_v29 = vrot.slane %v7172_v10, 7  ;;  %v2486_v9 = vrot.slane %v7226_v13, 7 }
 0x285   :  { %2890 = vmatmul.bf16.gmra.mxu2 %v2780_v19  ;;  %3072 = vmatmul.bf16.gmra.mxu3 %v2962_v45  ;;  %v2391_v49 = vmax.f32 %v2373_v58, 0.0  ;;  %v2497_v56 = vsel %vm899_vm0, %v2481_v12, %v2482_v34  ;;  %v5258_v58 = vld [vmem:[#allocation11 + $0x68] sm:$0xff]  ;;  %v5284_v12 = vld [vmem:[#allocation11 + $0xf8] sm:$0xff] }
 0x286   :  { %v2692_v27 = vpop.f32.mrf.mxu1  ;;  %3814 = vmatpush.bf16.msrb.mxu3 %v5284_v12 }
 0x287   :  { %v7306_v57 = vsel %vm2351_vm14, %v2391_v49, 0.0  ;;  %v4789_v16 = vpack.c.bf16 %v2391_v49, %v2390_v50  ;;  %vm7416_vm14 = vmand %vm8325_vm15, %vm3101_vm8  ;;  %vm8328_vm8 = vcmp.ge.s32.totalorder %v6111_v28, 1 }
 0x288   :  { %v2489_v48 = vrot.slane %v7306_v57, 7  ;;  %v2754_v30 = vrot.slane %v7306_v57, 1  ;;  %v2936_v50 = vrot.slane %v7306_v57, 2  ;;  %v5270_v57 = vld [vmem:[#allocation11 + $0x88] sm:$0xff]  ;;  %vm7435_vm15 = vmand %vm8328_vm8, %vm3103_vm7  ;;  %vm3105_vm8 = vcmp.le.s32.totalorder %v6192_v7, 13 }
 0x289   :  { %4790 = vmatmul.msk.bf16.gmra.mxu1 %vm4788_vm6, %v4789_v16  ;;  %v5257_v16 = vld [vmem:[#allocation11 + $0x60] sm:$0xff]  ;;  %vm4919_vm6 = vmpackc.low %vm7410_vm9, %vm7416_vm14 }
 0x28a   :  { %v2507_v60 = vsel %vm899_vm0, %v2489_v48, %v2472_v5  ;;  %v2755_v44 = vsel %vm1165_vm1, %v2753_v0, %v2754_v30  ;;  %v2499_v5 = vsel %vm899_vm0, %v2479_v2, %v2480_v53  ;;  %v2772_v26 = vsel %vm1165_vm1, %v2754_v30, %v2737_v63  ;;  %v5256_v30 = vld [vmem:[#allocation11 + $0x58] sm:$0xff]  ;;  %v5283_v53 = vld [vmem:[#allocation11 + $0xf0] sm:$0xff] }
 0x28b   :  { %v2508_v20 = vpack.c.bf16 %v7130_v14, %v2507_v60  ;;  %v2937_v38 = vsel %vm1348_vm2, %v2935_v18, %v2936_v50  ;;  %v2954_v14 = vsel %vm1348_vm2, %v2936_v50, %v2919_v42  ;;  %v2512_v25 = vpack.c.bf16 %v2498_v40, %v2499_v5  ;;  %v5276_v60 = vld [vmem:[#allocation11 + $0xb8] sm:$0xff]  ;;  %3815 = vmatpush.bf16.msrb.mxu3 %v5283_v53  ;;  %v5274_v40 = vld [vmem:[#allocation11 + $0xa8] sm:$0xff] }
 0x28c   :  { %v2781_v54 = vpack.c.bf16 %v2772_v26, %v2755_v44  ;;  %v2963_v0 = vpack.c.bf16 %v2954_v14, %v2937_v38  ;;  %v2483_v2 = vrot.slane %v7159_v62, 7  ;;  %v2485_v18 = vrot.slane %v7213_v43, 7  ;;  %3632 = vmatpush.bf16.msrb.mxu2 %v5276_v60  ;;  %v5255_v44 = vld [vmem:[#allocation11 + $0x50] sm:$0xff]  ;;  %v5282_v5 = vld [vmem:[#allocation11 + $0xe8] sm:$0xff] }
 0x28d   :  { %2589 = vmatmul.bf16.vlgmr.msra.gmra.mxu0 %v2508_v20  ;;  %v8322_v62 = vpack.c.bf16 %v7232_v47, %v7238_v8  ;;  %v5260_v8 = vld [vmem:[#allocation11 + $0x78] sm:$0xff]  ;;  %v5275_v20 = vld [vmem:[#allocation11 + $0xb0] sm:$0xff]  ;;  %v5254_v14 = vld [vmem:[#allocation11 + $0x48] sm:$0xff] }
 0x28e   :  { %v2496_v63 = vsel %vm899_vm0, %v2482_v34, %v2483_v2  ;;  %v2494_v39 = vsel %vm899_vm0, %v2484_v29, %v2485_v18  ;;  %v2495_v23 = vsel %vm899_vm0, %v2483_v2, %v2484_v29  ;;  %v2493_v43 = vsel %vm899_vm0, %v2485_v18, %v2486_v9  ;;  %3468 = vmatpush.bf16.msrb.mxu1 %v5260_v8  ;;  %v5253_v34 = vld [vmem:[#allocation11 + $0x40] sm:$0xff]  ;;  %v5271_v29 = vld [vmem:[#allocation11 + $0x90] sm:$0xff] }
 0x28f   :  { %v2513_v42 = vpack.c.bf16 %v2496_v63, %v2497_v56  ;;  %v2514_v59 = vpack.c.bf16 %v2494_v39, %v2495_v23  ;;  %3816 = vmatpush.bf16.msrb.mxu3 %v5282_v5  ;;  %v2488_v2 = vrot.slane %v7282_v1, 7  ;;  %v5272_v63 = vld [vmem:[#allocation11 + $0x98] sm:$0xff]  ;;  %v5277_v8 = vld [vmem:[#allocation11 + $0xc0] sm:$0xff] }
 0x290   :  { %3633 = vmatpush.bf16.msrb.mxu2 %v5275_v20  ;;  %v5280_v56 = vld [vmem:[#allocation11 + $0xd8] sm:$0xff] }
 0x291   :  { %v2490_v18 = vsel %vm899_vm0, %v2488_v2, %v2489_v48  ;;  %v5278_v48 = vld [vmem:[#allocation11 + $0xc8] sm:$0xff] }
 0x292   :  { %3469 = vmatpush.bf16.msrb.mxu1 %v5259_v21 }
 0x294   :  { %3634 = vmatpush.bf16.msrb.mxu2 %v5274_v40 }
 0x295   :  { %2895 = vmatmul.bf16.gmra.mxu2 %v2781_v54  ;;  %3077 = vmatmul.bf16.gmra.mxu3 %v2963_v0  ;;  %v5281_v54 = vld [vmem:[#allocation11 + $0xe0] sm:$0xff] }
 0x296   :  { %3470 = vmatpush.bf16.msrb.mxu1 %v5258_v58  ;;  %3817 = vmatpush.bf16.msrb.mxu3 %v5281_v54 }
 0x298   :  { %v2856_v19 = vpop.f32.mrf.mxu2  ;;  %v7362_v13 = vpop.f32.mrf.mxu3 }
 0x29a   :  { %3471 = vmatpush.bf16.msrb.mxu1 %v5257_v16  ;;  %3818 = vmatpush.bf16.msrb.mxu3 %v5280_v56 }
 0x29d   :  { %2594 = vmatmul.bf16.gmra.mxu0 %v2509_v11  ;;  %v2487_v11 = vrot.slane %v7269_v33, 7 }
 0x29e   :  { %3472 = vmatpush.bf16.msrb.mxu1 %v5256_v30 }
 0x29f   :  { %v2492_v10 = vsel %vm899_vm0, %v2486_v9, %v2487_v11  ;;  %v2491_v1 = vsel %vm899_vm0, %v2487_v11, %v2488_v2  ;;  %v7399_v11 = vld [vmem:[%s8157_s6] ss:$0 sm:$0xff] }
 0x2a0   :  { %v2515_v47 = vpack.c.bf16 %v2492_v10, %v2493_v43  ;;  %v7366_v45 = vpop.f32.mrf.mxu2  ;;  %v7368_v49 = vpop.f32.mrf.mxu3  ;;  %v2516_v9 = vpack.c.bf16 %v2490_v18, %v2491_v1 }
 0x2a2   :  { %3473 = vmatpush.bf16.msrb.mxu1 %v5255_v44 }
 0x2a6   :  { %3474 = vmatpush.bf16.msrb.mxu1 %v5254_v14 }
 0x2a8   :  { %v7372_v26 = vpop.f32.mrf.mxu2  ;;  %v7374_v38 = vpop.f32.mrf.mxu3 }
 0x2aa   :  { %3475 = vmatpush.bf16.msrb.mxu1 %v5253_v34 }
 0x2ad   :  { %2599 = vmatmul.bf16.gmra.mxu0 %v8322_v62  ;;  %v5279_v62 = vld [vmem:[#allocation11 + $0xd0] sm:$0xff] }
 0x2ae   :  { %3819 = vmatpush.bf16.msrb.mxu3 %v5279_v62 }
 0x2b0   :  { %v7385_v39 = vpop.f32.mrf.mxu3 }
 0x2b2   :  { %3820 = vmatpush.bf16.msrb.mxu3 %v5278_v48 }
 0x2b6   :  { %3821 = vmatpush.bf16.msrb.mxu3 %v5277_v8 }
 0x2b8   :  { %v3048_v16 = vpop.f32.mrf.mxu3 }
 0x2bd   :  { %2604 = vmatmul.bf16.gmra.mxu0 %v2511_v3  ;;  %v7364_v3 = vpop.f32.mrf.mxu1 }
 0x2c5   :  { %v7370_v50 = vpop.f32.mrf.mxu1 }
 0x2cd   :  { %2609 = vmatmul.bf16.gmra.mxu0 %v2512_v25  ;;  %v5273_v25 = vld [vmem:[#allocation11 + $0xa0] sm:$0xff]  ;;  %v7376_v0 = vpop.f32.mrf.mxu1 }
 0x2ce   :  { %3635 = vmatpush.bf16.msrb.mxu2 %v5273_v25  ;;  %v3050_v25 = vpop.f32.mrf.mxu3 }
 0x2d2   :  { %3636 = vmatpush.bf16.msrb.mxu2 %v5272_v63 }
 0x2d5   :  { %v7391_v43 = vpop.f32.mrf.mxu1 }
 0x2d6   :  { %3637 = vmatpush.bf16.msrb.mxu2 %v5271_v29 }
 0x2da   :  { %3638 = vmatpush.bf16.msrb.mxu2 %v5270_v57 }
 0x2dd   :  { %2614 = vmatmul.bf16.gmra.mxu0 %v2513_v42  ;;  %v7379_v42 = vpop.f32.mrf.mxu2 }
 0x2e5   :  { %v7393_v21 = vpop.f32.mrf.mxu2 }
 0x2ed   :  { %2619 = vmatmul.bf16.gmra.mxu0 %v2514_v59  ;;  %v2868_v40 = vpop.f32.mrf.mxu2 }
 0x2fd   :  { %2624 = vmatmul.bf16.gmra.mxu0 %v2515_v47  ;;  %v5269_v47 = vld [vmem:[#allocation11 + $0x80] sm:$0xff] }
 0x2fe   :  { %3639 = vmatpush.bf16.msrb.mxu2 %v5269_v47  ;;  %v3053_v47 = vpop.f32.mrf.mxu3 }
 0x30a   :  { %v2590_v23 = vpop.f32.mrf.mxu0 }
 0x30b   :  { %v2693_v59 = vadd.f32 %v2692_v27, %v2590_v23 }
 0x30d   :  { %2629 = vmatmul.bf16.gmra.mxu0 %v2516_v9  ;;  %v2901_v10 = vadd.f32 %v2856_v19, %v2693_v59  ;;  %v2871_v59 = vpop.f32.mrf.mxu2 }
 0x30f   :  { %v3083_v58 = vadd.f32 %v7362_v13, %v2901_v10 }
 0x311   :  { %v3141_v60 = vadd.f32 %v7399_v11, %v3083_v58 }
 0x312   :  { %v2592_v33 = vpop.f32.mrf.mxu0 }
 0x313   :  { %v2695_v27 = vadd.f32 %v7364_v3, %v2592_v33  ;;  %v2704_v3 = vpop.f32.mrf.mxu1  ;;  %v3159_v53 = vmax.f32 %v3141_v60, 0.0 }
 0x315   :  { %v2902_v19 = vadd.f32 %v7366_v45, %v2695_v27 }
 0x317   :  { %v3084_v12 = vadd.f32 %v7368_v49, %v2902_v19 }
 0x319   :  { %v3142_v13 = vadd.f32 %v7399_v11, %v3084_v12 }
 0x31a   :  { %v2595_v20 = vpop.f32.mrf.mxu0 }
 0x31b   :  { %v3160_v49 = vmax.f32 %v3142_v13, 0.0  ;;  %v2698_v44 = vadd.f32 %v7370_v50, %v2595_v20  ;;  %v2707_v18 = vpop.f32.mrf.mxu1 }
 0x31d   :  { %v4920_v5 = vpack.c.bf16 %v3160_v49, %v3159_v53  ;;  %v2903_v14 = vadd.f32 %v7372_v26, %v2698_v44  ;;  %v7431_v50 = vsel %vm7410_vm9, %v3160_v49, 0.0  ;;  %v7441_v26 = vsel %vm7416_vm14, %v3159_v53, 0.0  ;;  %v2873_v49 = vpop.f32.mrf.mxu2 }
 0x31e   :  { %v3523_v29 = vrot.slane %v7431_v50, 1  ;;  %v3705_v62 = vrot.slane %v7431_v50, 2  ;;  %vm3104_vm9 = vcmp.le.s32.totalorder %v6171_v52, 13  ;;  %v3522_v9 = vrot.slane %v7441_v26, 1 }
 0x31f   :  { %v3085_v54 = vadd.f32 %v7374_v38, %v2903_v14  ;;  %4921 = vmatmul.msk.bf16.vlgmr.msrb.gmra.mxu1 %vm4919_vm6, %v4920_v5  ;;  %v3704_v57 = vrot.slane %v7441_v26, 2  ;;  %vm8331_vm14 = vcmp.ge.s32.totalorder %v6171_v52, 1 }
 0x320   :  { %vm3122_vm6 = vmand %vm8331_vm14, %vm3104_vm9 }
 0x321   :  { %v3143_v2 = vadd.f32 %v7399_v11, %v3085_v54  ;;  %v3738_v58 = vsel %vm1348_vm2, %v3704_v57, %v3705_v62  ;;  %vm4922_vm7 = vmpackc.low %vm3122_vm6, %vm7435_vm15 }
 0x322   :  { %v2597_v63 = vpop.f32.mrf.mxu0  ;;  %vm7484_vm9 = vmand %vm1517_vm13, %vm3105_vm8 }
 0x323   :  { %v3161_v38 = vmax.f32 %v3143_v2, 0.0  ;;  %v2700_v56 = vadd.f32 %v7376_v0, %v2597_v63  ;;  %v2709_v45 = vpop.f32.mrf.mxu1 }
 0x325   :  { %v7448_v23 = vsel %vm7435_vm15, %v3161_v38, 0.0  ;;  %v2904_v1 = vadd.f32 %v7379_v42, %v2700_v56  ;;  %v3556_v42 = vsel %vm1165_vm1, %v3522_v9, %v3523_v29  ;;  %vm3106_vm15 = vcmp.le.s32.totalorder %v6306_v15, 13 }
 0x326   :  { %v3524_v0 = vrot.slane %v7448_v23, 1  ;;  %v3706_v48 = vrot.slane %v7448_v23, 2  ;;  %vm3124_vm14 = vmand %vm1518_vm4, %vm3106_vm15  ;;  %vm8336_vm15 = vcmp.ge.s32.totalorder %v6419_v4, 1 }
 0x327   :  { %v3086_v10 = vadd.f32 %v7385_v39, %v2904_v1 }
 0x328   :  { %v3555_v8 = vsel %vm1165_vm1, %v3523_v29, %v3524_v0  ;;  %v3737_v33 = vsel %vm1348_vm2, %v3705_v62, %v3706_v48 }
 0x329   :  { %v3144_v27 = vadd.f32 %v7399_v11, %v3086_v10  ;;  %v3558_v39 = vpack.c.bf16 %v3555_v8, %v3556_v42  ;;  %v3740_v19 = vpack.c.bf16 %v3737_v33, %v3738_v58 }
 0x32a   :  { %v2600_v60 = vpop.f32.mrf.mxu0 }
 0x32b   :  { %v2703_v12 = vadd.f32 %v7391_v43, %v2600_v60  ;;  %3640 = vmatmul.bf16.vlgmr.msrb.gmra.mxu2 %v3558_v39  ;;  %3822 = vmatmul.bf16.vlgmr.msrb.gmra.mxu3 %v3740_v19  ;;  %v3162_v13 = vmax.f32 %v3144_v27, 0.0  ;;  %v3055_v43 = vpop.f32.mrf.mxu3  ;;  %v2712_v1 = vpop.f32.mrf.mxu1 }
 0x32d   :  { %v2905_v30 = vadd.f32 %v7393_v21, %v2703_v12  ;;  %v4923_v20 = vpack.c.bf16 %v3162_v13, %v3161_v38  ;;  %v7480_v5 = vsel %vm3122_vm6, %v3162_v13, 0.0  ;;  %vm4925_vm6 = vmpackc.low %vm3124_vm14, %vm7484_vm9 }
 0x32e   :  { %v3707_v34 = vrot.slane %v7480_v5, 2 }
 0x32f   :  { %v3087_v53 = vadd.f32 %v3048_v16, %v2905_v30  ;;  %4924 = vmatmul.msk.bf16.gmra.mxu1 %vm4922_vm7, %v4923_v20  ;;  %v3525_v16 = vrot.slane %v7480_v5, 1  ;;  %vm3107_vm7 = vcmp.le.s32.totalorder %v6294_v36, 13 }
 0x330   :  { %vm7516_vm8 = vmand %vm1519_vm12, %vm3107_vm7  ;;  %vm3109_vm7 = vcmp.le.s32.totalorder %v6387_v35, 13 }
 0x331   :  { %v3145_v44 = vadd.f32 %v7399_v11, %v3087_v53  ;;  %v3554_v10 = vsel %vm1165_vm1, %v3524_v0, %v3525_v16 }
 0x332   :  { %v2602_v54 = vpop.f32.mrf.mxu0 }
 0x333   :  { %v3163_v21 = vmax.f32 %v3145_v44, 0.0  ;;  %v2705_v2 = vadd.f32 %v2704_v3, %v2602_v54  ;;  %v3058_v0 = vpop.f32.mrf.mxu3  ;;  %v2714_v20 = vpop.f32.mrf.mxu1 }
 0x335   :  { %v7492_v63 = vsel %vm7484_vm9, %v3163_v21, 0.0  ;;  %v2906_v38 = vadd.f32 %v2868_v40, %v2705_v2  ;;  %v3736_v40 = vsel %vm1348_vm2, %v3706_v48, %v3707_v34  ;;  %vm3108_vm9 = vcmp.le.s32.totalorder %v6419_v4, 13 }
 0x336   :  { %v3526_v56 = vrot.slane %v7492_v63, 1  ;;  %v3708_v29 = vrot.slane %v7492_v63, 2 }
 0x337   :  { %v3088_v62 = vadd.f32 %v3050_v25, %v2906_v38  ;;  %v2876_v25 = vpop.f32.mrf.mxu2 }
 0x338   :  { %v3553_v3 = vsel %vm1165_vm1, %v3525_v16, %v3526_v56  ;;  %v3735_v8 = vsel %vm1348_vm2, %v3707_v34, %v3708_v29 }
 0x339   :  { %v3146_v42 = vadd.f32 %v7399_v11, %v3088_v62  ;;  %v3559_v33 = vpack.c.bf16 %v3553_v3, %v3554_v10  ;;  %v3741_v58 = vpack.c.bf16 %v3735_v8, %v3736_v40 }
 0x33a   :  { %v2605_v27 = vpop.f32.mrf.mxu0 }
 0x33b   :  { %v2708_v39 = vadd.f32 %v2707_v18, %v2605_v27  ;;  %3645 = vmatmul.bf16.gmra.mxu2 %v3559_v33  ;;  %3827 = vmatmul.bf16.gmra.mxu3 %v3741_v58  ;;  %v3164_v19 = vmax.f32 %v3146_v42, 0.0  ;;  %v3060_v16 = vpop.f32.mrf.mxu3  ;;  %v2717_v27 = vpop.f32.mrf.mxu1 }
 0x33d   :  { %v2907_v60 = vadd.f32 %v2871_v59, %v2708_v39  ;;  %v4926_v12 = vpack.c.bf16 %v3164_v19, %v3163_v21  ;;  %v7512_v30 = vsel %vm3124_vm14, %v3164_v19, 0.0  ;;  %vm7540_vm14 = vmand %vm8336_vm15, %vm3108_vm9  ;;  %vm8339_vm9 = vcmp.ge.s32.totalorder %v6387_v35, 1 }
 0x33e   :  { %v3709_v54 = vrot.slane %v7512_v30, 2  ;;  %vm7556_vm15 = vmand %vm8339_vm9, %vm3109_vm7  ;;  %vm3111_vm7 = vcmp.le.s32.totalorder %v6492_v51, 13  ;;  %vm8344_vm9 = vcmp.ge.s32.totalorder %v6492_v51, 1 }
 0x33f   :  { %v3089_v48 = vadd.f32 %v3053_v47, %v2907_v60  ;;  %4927 = vmatmul.msk.bf16.gmra.mxu1 %vm4925_vm6, %v4926_v12  ;;  %v2878_v59 = vpop.f32.mrf.mxu2  ;;  %v3527_v47 = vrot.slane %v7512_v30, 1  ;;  %vm4928_vm6 = vmpackc.low %vm7540_vm14, %vm7516_vm8 }
 0x341   :  { %v3147_v13 = vadd.f32 %v7399_v11, %v3089_v48  ;;  %v3552_v3 = vsel %vm1165_vm1, %v3526_v56, %v3527_v47 }
 0x342   :  { %v2607_v53 = vpop.f32.mrf.mxu0 }
 0x343   :  { %v3165_v44 = vmax.f32 %v3147_v13, 0.0  ;;  %v2710_v14 = vadd.f32 %v2709_v45, %v2607_v53  ;;  %v3063_v12 = vpop.f32.mrf.mxu3  ;;  %v3259_v13 = vrot.slane %v7448_v23, 7  ;;  %v5266_v23 = vld [vmem:[#allocation11 + $0x28] sm:$0xff] }
 0x345   :  { %v7524_v21 = vsel %vm7516_vm8, %v3165_v44, 0.0  ;;  %v2908_v2 = vadd.f32 %v2873_v49, %v2710_v14  ;;  %v3734_v49 = vsel %vm1348_vm2, %v3708_v29, %v3709_v54  ;;  %vm3110_vm8 = vcmp.le.s32.totalorder %v6523_v6, 13 }
 0x346   :  { %v3528_v34 = vrot.slane %v7524_v21, 1  ;;  %v3710_v38 = vrot.slane %v7524_v21, 2 }
 0x347   :  { %v3090_v62 = vadd.f32 %v3055_v43, %v2908_v2  ;;  %v2881_v19 = vpop.f32.mrf.mxu2 }
 0x348   :  { %v3551_v45 = vsel %vm1165_vm1, %v3527_v47, %v3528_v34  ;;  %v3733_v10 = vsel %vm1348_vm2, %v3709_v54, %v3710_v38  ;;  %v2719_v54 = vpop.f32.mrf.mxu1 }
 0x349   :  { %v3148_v8 = vadd.f32 %v7399_v11, %v3090_v62  ;;  %v3560_v40 = vpack.c.bf16 %v3551_v45, %v3552_v3  ;;  %v3742_v42 = vpack.c.bf16 %v3733_v10, %v3734_v49 }
 0x34a   :  { %v2610_v33 = vpop.f32.mrf.mxu0 }
 0x34b   :  { %v2713_v58 = vadd.f32 %v2712_v1, %v2610_v33  ;;  %3650 = vmatmul.bf16.gmra.mxu2 %v3560_v40  ;;  %3832 = vmatmul.bf16.gmra.mxu3 %v3742_v42  ;;  %v3166_v56 = vmax.f32 %v3148_v8, 0.0  ;;  %v3065_v43 = vpop.f32.mrf.mxu3 }
 0x34d   :  { %v2909_v29 = vadd.f32 %v2876_v25, %v2713_v58  ;;  %v4929_v39 = vpack.c.bf16 %v3166_v56, %v3165_v44  ;;  %v7552_v1 = vsel %vm7540_vm14, %v3166_v56, 0.0  ;;  %vm7580_vm14 = vmand %vm1522_vm11, %vm3110_vm8 }
 0x34e   :  { %v3711_v44 = vrot.slane %v7552_v1, 2  ;;  %vm7597_vm8 = vmand %vm8344_vm9, %vm3111_vm7  ;;  %vm3113_vm9 = vcmp.le.s32.totalorder %v6576_v31, 13 }
 0x34f   :  { %v3091_v60 = vadd.f32 %v3058_v0, %v2909_v29  ;;  %4930 = vmatmul.msk.bf16.gmra.mxu1 %vm4928_vm6, %v4929_v39  ;;  %v3529_v0 = vrot.slane %v7552_v1, 1  ;;  %v2883_v3 = vpop.f32.mrf.mxu2  ;;  %vm4931_vm6 = vmpackc.low %vm7580_vm14, %vm7556_vm15 }
 0x350   :  { %v2722_v39 = vpop.f32.mrf.mxu1 }
 0x351   :  { %v3149_v48 = vadd.f32 %v7399_v11, %v3091_v60  ;;  %v3550_v10 = vsel %vm1165_vm1, %v3528_v34, %v3529_v0  ;;  %v3258_v60 = vrot.slane %v7431_v50, 7 }
 0x352   :  { %v2612_v25 = vpop.f32.mrf.mxu0 }
 0x353   :  { %v3167_v18 = vmax.f32 %v3149_v48, 0.0  ;;  %v2715_v53 = vadd.f32 %v2714_v20, %v2612_v25 }
 0x355   :  { %v7564_v14 = vsel %vm7556_vm15, %v3167_v18, 0.0  ;;  %v2910_v47 = vadd.f32 %v2878_v59, %v2715_v53  ;;  %v3732_v59 = vsel %vm1348_vm2, %v3710_v38, %v3711_v44  ;;  %vm3112_vm15 = vcmp.le.s32.totalorder %v6618_v37, 13 }
 0x356   :  { %v3530_v2 = vrot.slane %v7564_v14, 1  ;;  %v3712_v62 = vrot.slane %v7564_v14, 2 }
 0x357   :  { %v3092_v45 = vadd.f32 %v3060_v16, %v2910_v47  ;;  %v2886_v25 = vpop.f32.mrf.mxu2 }
 0x358   :  { %v3549_v20 = vsel %vm1165_vm1, %v3529_v0, %v3530_v2  ;;  %v3731_v49 = vsel %vm1348_vm2, %v3711_v44, %v3712_v62  ;;  %v3068_v0 = vpop.f32.mrf.mxu3 }
 0x359   :  { %v3150_v8 = vadd.f32 %v7399_v11, %v3092_v45  ;;  %v3561_v40 = vpack.c.bf16 %v3549_v20, %v3550_v10  ;;  %v3743_v42 = vpack.c.bf16 %v3731_v49, %v3732_v59 }
 0x35a   :  { %v2615_v33 = vpop.f32.mrf.mxu0 }
 0x35b   :  { %v2718_v58 = vadd.f32 %v2717_v27, %v2615_v33  ;;  %3655 = vmatmul.bf16.gmra.mxu2 %v3561_v40  ;;  %3837 = vmatmul.bf16.gmra.mxu3 %v3743_v42  ;;  %v3168_v34 = vmax.f32 %v3150_v8, 0.0 }
 0x35d   :  { %v2911_v38 = vadd.f32 %v2881_v19, %v2718_v58  ;;  %v4932_v56 = vpack.c.bf16 %v3168_v34, %v3167_v18  ;;  %v7593_v27 = vsel %vm7580_vm14, %v3168_v34, 0.0  ;;  %vm8347_vm14 = vcmp.ge.s32.totalorder %v6618_v37, 1  ;;  %v2724_v58 = vpop.f32.mrf.mxu1 }
 0x35e   :  { %v3531_v50 = vrot.slane %v7593_v27, 1  ;;  %v3713_v44 = vrot.slane %v7593_v27, 2 }
 0x35f   :  { %v3093_v29 = vadd.f32 %v3063_v12, %v2911_v38  ;;  %4933 = vmatmul.msk.bf16.gmra.mxu1 %vm4931_vm6, %v4932_v56  ;;  %v3257_v12 = vrot.slane %v7441_v26, 7  ;;  %vm7628_vm6 = vmand %vm8347_vm14, %vm3112_vm15  ;;  %v5268_v56 = vld [vmem:[#allocation11 + $0x38] sm:$0xff]  ;;  %vm3114_vm14 = vcmp.le.s32.totalorder %v6715_v24, 13 }
 0x360   :  { %v3548_v8 = vsel %vm1165_vm1, %v3530_v2, %v3531_v50  ;;  %v3730_v40 = vsel %vm1348_vm2, %v3712_v62, %v3713_v44  ;;  %vm4934_vm7 = vmpackc.low %vm7628_vm6, %vm7597_vm8  ;;  %3366 = vmatpush.bf16.msrb.mxu0 %v5268_v56 }
 0x361   :  { %v3151_v48 = vadd.f32 %v7399_v11, %v3093_v29  ;;  %v7612_v20 = vsel %vm899_vm0, %v3257_v12, %v3258_v60  ;;  %v2888_v29 = vpop.f32.mrf.mxu2 }
 0x362   :  { %v2617_v19 = vpop.f32.mrf.mxu0 }
 0x363   :  { %v3169_v18 = vmax.f32 %v3151_v48, 0.0  ;;  %v2720_v53 = vadd.f32 %v2719_v54, %v2617_v19  ;;  %v5267_v19 = vld [vmem:[#allocation11 + $0x30] sm:$0xff] }
 0x364   :  { %3367 = vmatpush.bf16.msrb.mxu0 %v5267_v19  ;;  %v5265_v19 = vld [vmem:[#allocation11 + $0x20] sm:$0xff] }
 0x365   :  { %v7606_v47 = vsel %vm7597_vm8, %v3169_v18, 0.0  ;;  %v2912_v45 = vadd.f32 %v2883_v3, %v2720_v53  ;;  %v3070_v53 = vpop.f32.mrf.mxu3  ;;  %vm8350_vm8 = vcmp.ge.s32.totalorder %v6576_v31, 1 }
 0x366   :  { %v3532_v10 = vrot.slane %v7606_v47, 1  ;;  %v3714_v54 = vrot.slane %v7606_v47, 2  ;;  %vm7646_vm15 = vmand %vm8350_vm8, %vm3113_vm9  ;;  %vm3115_vm9 = vcmp.le.s32.totalorder %v8312_v46, 13  ;;  %vm8355_vm8 = vcmp.ge.s32.totalorder %v8312_v46, 1 }
 0x367   :  { %v3094_v49 = vadd.f32 %v3065_v43, %v2912_v45 }
 0x368   :  { %v3547_v59 = vsel %vm1165_vm1, %v3531_v50, %v3532_v10  ;;  %v3729_v3 = vsel %vm1348_vm2, %v3713_v44, %v3714_v54  ;;  %3368 = vmatpush.bf16.msrb.mxu0 %v5266_v23 }
 0x369   :  { %v3152_v42 = vadd.f32 %v7399_v11, %v3094_v49  ;;  %v3562_v16 = vpack.c.bf16 %v3547_v59, %v3548_v8  ;;  %v3744_v33 = vpack.c.bf16 %v3729_v3, %v3730_v40  ;;  %v2727_v59 = vpop.f32.mrf.mxu1  ;;  %v2891_v43 = vpop.f32.mrf.mxu2 }
 0x36a   :  { %v2620_v34 = vpop.f32.mrf.mxu0 }
 0x36b   :  { %v2723_v38 = vadd.f32 %v2722_v39, %v2620_v34  ;;  %3660 = vmatmul.bf16.gmra.mxu2 %v3562_v16  ;;  %3842 = vmatmul.bf16.gmra.mxu3 %v3744_v33  ;;  %v3170_v2 = vmax.f32 %v3152_v42, 0.0  ;;  %v3260_v39 = vrot.slane %v7480_v5, 7  ;;  %v7664_v33 = vsel %vm899_vm0, %v3258_v60, %v3259_v13 }
 0x36c   :  { %3369 = vmatpush.bf16.msrb.mxu0 %v5265_v19 }
 0x36d   :  { %v2913_v62 = vadd.f32 %v2886_v25, %v2723_v38  ;;  %v4935_v48 = vpack.c.bf16 %v3170_v2, %v3169_v18  ;;  %v7641_v45 = vsel %vm7628_vm6, %v3170_v2, 0.0  ;;  %v7660_v16 = vsel %vm899_vm0, %v3259_v13, %v3260_v39  ;;  %v3073_v56 = vpop.f32.mrf.mxu3  ;;  %vm7682_vm6 = vmand %vm1526_vm5, %vm3114_vm14 }
 0x36e   :  { %v3533_v8 = vrot.slane %v7641_v45, 1  ;;  %v3715_v3 = vrot.slane %v7641_v45, 2  ;;  %v3294_v38 = vpack.c.bf16 %v7660_v16, %v7664_v33  ;;  %vm3116_vm14 = vcmp.le.s32.totalorder %v6824_v61, 13 }
 0x36f   :  { %v3095_v50 = vadd.f32 %v3068_v0, %v2913_v62  ;;  %4936 = vmatmul.msk.bf16.gmra.mxu1 %vm4934_vm7, %v4935_v48  ;;  %vm4937_vm7 = vmpackc.low %vm7682_vm6, %vm7646_vm15 }
 0x370   :  { %v3546_v60 = vsel %vm1165_vm1, %v3532_v10, %v3533_v8  ;;  %v3728_v48 = vsel %vm1348_vm2, %v3714_v54, %v3715_v3  ;;  %v5264_v54 = vld [vmem:[#allocation11 + $0x18] sm:$0xff] }
 0x371   :  { %v3153_v44 = vadd.f32 %v7399_v11, %v3095_v50  ;;  %3370 = vmatpush.bf16.msrb.mxu0 %v5264_v54 }
 0x372   :  { %v2622_v18 = vpop.f32.mrf.mxu0 }
 0x373   :  { %v3171_v0 = vmax.f32 %v3153_v44, 0.0  ;;  %v2725_v49 = vadd.f32 %v2724_v58, %v2622_v18 }
 0x375   :  { %v7654_v40 = vsel %vm7646_vm15, %v3171_v0, 0.0  ;;  %v2914_v42 = vadd.f32 %v2888_v29, %v2725_v49  ;;  %vm7700_vm15 = vmand %vm8355_vm8, %vm3115_vm9  ;;  %vm3117_vm8 = vcmp.le.s32.totalorder %v6760_v17, 13 }
 0x376   :  { %v3534_v58 = vrot.slane %v7654_v40, 1  ;;  %v3716_v34 = vrot.slane %v7654_v40, 2 }
 0x377   :  { %v3096_v2 = vadd.f32 %v3070_v53, %v2914_v42  ;;  %v2729_v42 = vpop.f32.mrf.mxu1 }
 0x378   :  { %v3545_v29 = vsel %vm1165_vm1, %v3533_v8, %v3534_v58  ;;  %v3727_v62 = vsel %vm1348_vm2, %v3715_v3, %v3716_v34 }
 0x379   :  { %v3154_v50 = vadd.f32 %v7399_v11, %v3096_v2  ;;  %v3563_v44 = vpack.c.bf16 %v3545_v29, %v3546_v60  ;;  %v3745_v13 = vpack.c.bf16 %v3727_v62, %v3728_v48  ;;  %v2893_v2 = vpop.f32.mrf.mxu2  ;;  %v5263_v29 = vld [vmem:[#allocation11 + $0x10] sm:$0xff]  ;;  %v3261_v62 = vrot.slane %v7492_v63, 7 }
 0x37a   :  { %v2625_v18 = vpop.f32.mrf.mxu0  ;;  %3371 = vmatpush.bf16.msrb.mxu0 %v5263_v29  ;;  %v5261_v29 = vld [vmem:[#allocation11] sm:$0xff] }
 0x37b   :  { %v3172_v49 = vmax.f32 %v3154_v50, 0.0  ;;  %v2728_v10 = vadd.f32 %v2727_v59, %v2625_v18  ;;  %3665 = vmatmul.bf16.gmra.mxu2 %v3563_v44  ;;  %3847 = vmatmul.bf16.gmra.mxu3 %v3745_v13  ;;  %v3262_v59 = vrot.slane %v7512_v30, 7  ;;  %v5262_v13 = vld [vmem:[#allocation11 + $0x8] sm:$0xff] }
 0x37d   :  { %v2915_v8 = vadd.f32 %v2891_v43, %v2728_v10  ;;  %v4938_v3 = vpack.c.bf16 %v3172_v49, %v3171_v0  ;;  %v7695_v25 = vsel %vm7682_vm6, %v3172_v49, 0.0  ;;  %v3075_v43 = vpop.f32.mrf.mxu3  ;;  %v7714_v18 = vsel %vm899_vm0, %v3261_v62, %v3262_v59 }
 0x37e   :  { %v3535_v50 = vrot.slane %v7695_v25, 1  ;;  %v3717_v44 = vrot.slane %v7695_v25, 2  ;;  %v7720_v49 = vsel %vm899_vm0, %v3260_v39, %v3261_v62  ;;  %3372 = vmatpush.bf16.msrb.mxu0 %v5262_v13  ;;  %vm8358_vm6 = vcmp.ge.s32.totalorder %v6824_v61, 1 }
 0x37f   :  { %v3097_v23 = vadd.f32 %v3073_v56, %v2915_v8  ;;  %4939 = vmatmul.msk.bf16.gmra.mxu1 %vm4937_vm7, %v4938_v3  ;;  %vm7738_vm7 = vmand %vm8358_vm6, %vm3116_vm14  ;;  %v3263_v0 = vrot.slane %v7524_v21, 7  ;;  %vm3118_vm6 = vcmp.le.s32.totalorder %v6857_v32, 13 }
 0x380   :  { %v3544_v5 = vsel %vm1165_vm1, %v3534_v58, %v3535_v50  ;;  %vm4940_vm9 = vmpackc.low %vm7738_vm7, %vm7700_vm15 }
 0x381   :  { %v3155_v60 = vadd.f32 %v7399_v11, %v3097_v23 }
 0x382   :  { %v2627_v56 = vpop.f32.mrf.mxu0  ;;  %3373 = vmatpush.bf16.msrb.mxu0 %v5261_v29 }
 0x383   :  { %v3173_v48 = vmax.f32 %v3155_v60, 0.0  ;;  %v2730_v19 = vadd.f32 %v2729_v42, %v2627_v56  ;;  %v2732_v42 = vpop.f32.mrf.mxu1 }
 0x385   :  { %v7708_v53 = vsel %vm7700_vm15, %v3173_v48, 0.0  ;;  %v2916_v63 = vadd.f32 %v2893_v2, %v2730_v19  ;;  %v3726_v2 = vsel %vm1348_vm2, %v3716_v34, %v3717_v44  ;;  %v2896_v19 = vpop.f32.mrf.mxu2  ;;  %v3078_v8 = vpop.f32.mrf.mxu3  ;;  %vm8361_vm15 = vcmp.ge.s32.totalorder %v6760_v17, 1 }
 0x386   :  { %v3536_v10 = vrot.slane %v7708_v53, 1  ;;  %v3718_v54 = vrot.slane %v7708_v53, 2  ;;  %vm7756_vm14 = vmand %vm8361_vm15, %vm3117_vm8  ;;  %vm3899_vm15 = vcmp.le.s32.totalorder %v6715_v24, 12 }
 0x387   :  { %v3098_v3 = vadd.f32 %v3075_v43, %v2916_v63  ;;  %v3286_v43 = vsel %vm899_vm0, %v3262_v59, %v3263_v0 }
 0x388   :  { %v3543_v23 = vsel %vm1165_vm1, %v3535_v50, %v3536_v10  ;;  %v3725_v39 = vsel %vm1348_vm2, %v3717_v44, %v3718_v54 }
 0x389   :  { %v3156_v60 = vadd.f32 %v7399_v11, %v3098_v3  ;;  %v3564_v62 = vpack.c.bf16 %v3543_v23, %v3544_v5  ;;  %v3746_v56 = vpack.c.bf16 %v3725_v39, %v3726_v2  ;;  %v3264_v3 = vrot.slane %v7552_v1, 7 }
 0x38a   :  { %v2630_v58 = vpop.f32.mrf.mxu0 }
 0x38b   :  { %v3174_v50 = vmax.f32 %v3156_v60, 0.0  ;;  %v2733_v63 = vadd.f32 %v2732_v42, %v2630_v58  ;;  %3670 = vmatmul.bf16.gmra.mxu2 %v3564_v62  ;;  %3852 = vmatmul.bf16.gmra.mxu3 %v3746_v56  ;;  %v2734_v5 = vpop.f32.mrf.mxu1  ;;  %v3285_v56 = vsel %vm899_vm0, %v3263_v0, %v3264_v3 }
 0x38d   :  { %v2917_v34 = vadd.f32 %v2896_v19, %v2733_v63  ;;  %v4941_v44 = vpack.c.bf16 %v3174_v50, %v3173_v48  ;;  %v7751_v42 = vsel %vm7738_vm7, %v3174_v50, 0.0  ;;  %v2898_v29 = vpop.f32.mrf.mxu2  ;;  %v3080_v19 = vpop.f32.mrf.mxu3  ;;  %v3296_v63 = vpack.c.bf16 %v3285_v56, %v3286_v43  ;;  %vm3136_vm7 = vmand %vm1530_vm3, %vm3118_vm6 }
 0x38e   :  { %v3537_v1 = vrot.slane %v7751_v42, 1  ;;  %v3719_v60 = vrot.slane %v7751_v42, 2 }
 0x38f   :  { %v3099_v13 = vadd.f32 %v3078_v8, %v2917_v34  ;;  %4942 = vmatmul.msk.bf16.gmra.mxu1 %vm4940_vm9, %v4941_v44  ;;  %vm4943_vm9 = vmpackc.low %vm3136_vm7, %vm7756_vm14 }
 0x390   :  { %v3724_v59 = vsel %vm1348_vm2, %v3718_v54, %v3719_v60  ;;  %v3266_v54 = vrot.slane %v7593_v27, 7 }
 0x391   :  { %v3157_v23 = vadd.f32 %v7399_v11, %v3099_v13  ;;  %v3542_v13 = vsel %vm1165_vm1, %v3536_v10, %v3537_v1 }
 0x392   :  { %v2632_v48 = vpop.f32.mrf.mxu0 }
 0x393   :  { %v3175_v8 = vmax.f32 %v3157_v23, 0.0  ;;  %v2735_v2 = vadd.f32 %v2734_v5, %v2632_v48 }
 0x395   :  { %v7764_v62 = vsel %vm7756_vm14, %v3175_v8, 0.0  ;;  %v2918_v21 = vadd.f32 %v2898_v29, %v2735_v2  ;;  %vm8383_vm14 = vcmp.ge.s32.totalorder %v8312_v46, 1 }
 0x396   :  { %v3538_v58 = vrot.slane %v7764_v62, 1  ;;  %v3720_v50 = vrot.slane %v7764_v62, 2 }
 0x397   :  { %v3100_v34 = vadd.f32 %v3080_v19, %v2918_v21  ;;  %v3265_v21 = vrot.slane %v7564_v14, 7 }
 0x398   :  { %v3541_v44 = vsel %vm1165_vm1, %v3537_v1, %v3538_v58  ;;  %v3723_v30 = vsel %vm1348_vm2, %v3719_v60, %v3720_v50 }
 0x399   :  { %v3158_v23 = vadd.f32 %v7399_v11, %v3100_v34  ;;  %v3565_v0 = vpack.c.bf16 %v3541_v44, %v3542_v13  ;;  %v3747_v5 = vpack.c.bf16 %v3723_v30, %v3724_v59  ;;  %v3284_v43 = vsel %vm899_vm0, %v3264_v3, %v3265_v21 }
 0x39a   :  { %v3268_v3 = vrot.slane %v7641_v45, 7  ;;  %v3267_v34 = vrot.slane %v7606_v47, 7  ;;  %v3269_v44 = vrot.slane %v7654_v40, 7  ;;  %v8364_v45 = vpack.c.bf16 %v7714_v18, %v7720_v49 }
 0x39b   :  { %v3176_v48 = vmax.f32 %v3158_v23, 0.0  ;;  %3675 = vmatmul.bf16.gmra.mxu2 %v3565_v0  ;;  %3857 = vmatmul.bf16.gmra.mxu3 %v3747_v5  ;;  %v3271_v13 = vrot.slane %v7708_v53, 7 }
 0x39c   :  { %v3282_v26 = vsel %vm899_vm0, %v3266_v54, %v3267_v34  ;;  %v3280_v16 = vsel %vm899_vm0, %v3268_v3, %v3269_v44  ;;  %v7835_v49 = vpop.f32.mrf.mxu1 }
 0x39d   :  { %v3230_v10 = vsel %vm3136_vm7, %v3176_v48, 0.0  ;;  %v4944_v2 = vpack.c.bf16 %v3176_v48, %v3175_v8  ;;  %v3283_v8 = vsel %vm899_vm0, %v3265_v21, %v3266_v54  ;;  %vm3898_vm7 = vcmp.le.s32.totalorder %v6576_v31, 12 }
 0x39e   :  { %v3274_v29 = vrot.slane %v3230_v10, 7  ;;  %v3539_v1 = vrot.slane %v3230_v10, 1  ;;  %v3721_v56 = vrot.slane %v3230_v10, 2  ;;  %v3273_v10 = vrot.slane %v7764_v62, 7 }
 0x39f   :  { %4945 = vmatmul.msk.bf16.gmra.mxu1 %vm4943_vm9, %v4944_v2  ;;  %vm7959_vm9 = vmand %vm1526_vm5, %vm3899_vm15  ;;  %vm8388_vm5 = vcmp.ge.s32.totalorder %v6576_v31, 1 }
 0x3a0   :  { %v3292_v11 = vsel %vm899_vm0, %v3274_v29, %v3257_v12  ;;  %v3540_v39 = vsel %vm1165_vm1, %v3538_v58, %v3539_v1  ;;  %v3557_v27 = vsel %vm1165_vm1, %v3539_v1, %v3522_v9  ;;  %v3722_v12 = vsel %vm1348_vm2, %v3720_v50, %v3721_v56 }
 0x3a1   :  { %v3293_v60 = vpack.c.bf16 %v7612_v20, %v3292_v11  ;;  %v3739_v14 = vsel %vm1348_vm2, %v3721_v56, %v3704_v57  ;;  %v3297_v20 = vpack.c.bf16 %v3283_v8, %v3284_v43  ;;  %v3566_v19 = vpack.c.bf16 %v3557_v27, %v3540_v39 }
 0x3a2   :  { %v3748_v58 = vpack.c.bf16 %v3739_v14, %v3722_v12  ;;  %v3281_v9 = vsel %vm899_vm0, %v3267_v34, %v3268_v3  ;;  %v3270_v50 = vrot.slane %v7695_v25, 7  ;;  %v3275_v11 = vsel %vm899_vm0, %v3273_v10, %v3274_v29 }
 0x3a3   :  { %3374 = vmatmul.bf16.vlgmr.msrb.gmra.mxu0 %v3293_v60  ;;  %v3298_v57 = vpack.c.bf16 %v3281_v9, %v3282_v26  ;;  %vm3900_vm1 = vcmp.le.s32.totalorder %v8312_v46, 12  ;;  %vm8380_vm2 = vcmp.ge.s32.totalorder %v6824_v61, 1  ;;  %v5298_v46 = vld [vmem:[#allocation14 + $0x64] sm:$0xf0] }
 0x3a4   :  { %v3279_v47 = vsel %vm899_vm0, %v3269_v44, %v3270_v50  ;;  %v3278_v40 = vsel %vm899_vm0, %v3270_v50, %v3271_v13  ;;  %vm7942_vm6 = vmand %vm8383_vm14, %vm3900_vm1 }
 0x3a5   :  { %v3299_v33 = vpack.c.bf16 %v3279_v47, %v3280_v16  ;;  %vm7978_vm1 = vmand %vm8388_vm5, %vm3898_vm7 }
 0x3ab   :  { %3680 = vmatmul.bf16.gmra.mxu2 %v3566_v19  ;;  %3862 = vmatmul.bf16.gmra.mxu3 %v3748_v58 }
 0x3ae   :  { %v7837_v30 = vpop.f32.mrf.mxu2  ;;  %v7839_v59 = vpop.f32.mrf.mxu3 }
 0x3af   :  { %8365 = vst [vmem:[#allocation37_spill] sm:$0xff] %v7837_v30 }
 0x3b0   :  { %8366 = vst [vmem:[#allocation40_spill] sm:$0xff] %v7839_v59 }
 0x3b3   :  { %3379 = vmatmul.bf16.gmra.mxu0 %v3294_v38  ;;  %v3272_v38 = vrot.slane %v7751_v42, 7  ;;  %v7841_v42 = vpop.f32.mrf.mxu1 }
 0x3b5   :  { %v3277_v25 = vsel %vm899_vm0, %v3271_v13, %v3272_v38  ;;  %v3276_v60 = vsel %vm899_vm0, %v3272_v38, %v3273_v10  ;;  %vm3901_vm0 = vcmp.le.s32.totalorder %v6824_v61, 12 }
 0x3b6   :  { %v3300_v18 = vpack.c.bf16 %v3277_v25, %v3278_v40  ;;  %v7843_v53 = vpop.f32.mrf.mxu2  ;;  %v3301_v21 = vpack.c.bf16 %v3275_v11, %v3276_v60  ;;  %vm7928_vm8 = vmand %vm8380_vm2, %vm3901_vm0  ;;  %vm3897_vm0 = vcmp.le.s32.totalorder %v6618_v37, 12  ;;  %vm3896_vm2 = vcmp.le.s32.totalorder %v6492_v51, 12 }
 0x3b7   :  { %8367 = vst [vmem:[#allocation41_spill] sm:$0xff] %v7843_v53 }
 0x3bb   :  { %v7847_v23 = vpop.f32.mrf.mxu1 }
 0x3be   :  { %v7849_v0 = vpop.f32.mrf.mxu2 }
 0x3bf   :  { %8369 = vst [vmem:[#allocation43_spill] sm:$0xff] %v7849_v0 }
 0x3c3   :  { %3384 = vmatmul.bf16.gmra.mxu0 %v8364_v45  ;;  %v7853_v48 = vpop.f32.mrf.mxu1 }
 0x3c6   :  { %v7856_v2 = vpop.f32.mrf.mxu2 }
 0x3c7   :  { %8371 = vst [vmem:[#allocation45_spill] sm:$0xff] %v7856_v2 }
 0x3cb   :  { %v7866_v56 = vpop.f32.mrf.mxu1 }
 0x3ce   :  { %v7868_v39 = vpop.f32.mrf.mxu2 }
 0x3cf   :  { %8373 = vst [vmem:[#allocation47_spill] sm:$0xff] %v7868_v39 }
 0x3d3   :  { %3389 = vmatmul.bf16.gmra.mxu0 %v3296_v63  ;;  %v7845_v63 = vpop.f32.mrf.mxu3  ;;  %v7874_v43 = vpop.f32.mrf.mxu1 }
 0x3d4   :  { %8368 = vst [vmem:[#allocation42_spill] sm:$0xff] %v7845_v63 }
 0x3d6   :  { %v7878_v27 = vpop.f32.mrf.mxu2 }
 0x3d7   :  { %8375 = vst [vmem:[#allocation49_spill] sm:$0xff] %v7878_v27  ;;  %v7911_v27 = vld [vmem:[%s8159_s8] ss:$0 sm:$0xff] }
 0x3db   :  { %v7851_v5 = vpop.f32.mrf.mxu3  ;;  %v7884_v14 = vpop.f32.mrf.mxu1 }
 0x3dc   :  { %8370 = vst [vmem:[#allocation44_spill] sm:$0xff] %v7851_v5 }
 0x3e3   :  { %3394 = vmatmul.bf16.gmra.mxu0 %v3297_v20  ;;  %v7860_v54 = vpop.f32.mrf.mxu3  ;;  %v7886_v20 = vpop.f32.mrf.mxu2 }
 0x3e4   :  { %8372 = vst [vmem:[#allocation46_spill] sm:$0xff] %v7860_v54  ;;  %v7892_v3 = vpop.f32.mrf.mxu1 }
 0x3eb   :  { %v7872_v62 = vpop.f32.mrf.mxu3  ;;  %v7894_v34 = vpop.f32.mrf.mxu2 }
 0x3ec   :  { %8374 = vst [vmem:[#allocation48_spill] sm:$0xff] %v7872_v62 }
 0x3f3   :  { %3399 = vmatmul.bf16.gmra.mxu0 %v3298_v57  ;;  %v7880_v12 = vpop.f32.mrf.mxu3  ;;  %v3497_v57 = vpop.f32.mrf.mxu1 }
 0x3f4   :  { %8376 = vst [vmem:[#allocation50_spill] sm:$0xff] %v7880_v12  ;;  %v3661_v50 = vpop.f32.mrf.mxu2 }
 0x3fb   :  { %v7888_v19 = vpop.f32.mrf.mxu3  ;;  %v3499_v47 = vpop.f32.mrf.mxu1 }
 0x3fc   :  { %8377 = vst [vmem:[#allocation51_spill] sm:$0xff] %v7888_v19 }
 0x403   :  { %3404 = vmatmul.bf16.gmra.mxu0 %v3299_v33  ;;  %v7896_v9 = vpop.f32.mrf.mxu3  ;;  %v3663_v33 = vpop.f32.mrf.mxu2 }
 0x404   :  { %8378 = vst [vmem:[#allocation52_spill] sm:$0xff] %v7896_v9  ;;  %v3502_v40 = vpop.f32.mrf.mxu1 }
 0x40b   :  { %v3843_v45 = vpop.f32.mrf.mxu3  ;;  %v3666_v10 = vpop.f32.mrf.mxu2 }
 0x40c   :  { %v3504_v41 = vpop.f32.mrf.mxu1 }
 0x413   :  { %3409 = vmatmul.bf16.gmra.mxu0 %v3300_v18  ;;  %v7902_v38 = vpop.f32.mrf.mxu3  ;;  %v3668_v55 = vpop.f32.mrf.mxu2 }
 0x414   :  { %v3507_v52 = vpop.f32.mrf.mxu1 }
 0x41b   :  { %v7906_v60 = vpop.f32.mrf.mxu3  ;;  %v3671_v63 = vpop.f32.mrf.mxu2 }
 0x41c   :  { %v3509_v30 = vpop.f32.mrf.mxu1 }
 0x420   :  { %v7862_v1 = vpop.f32.mrf.mxu0 }
 0x423   :  { %3414 = vmatmul.bf16.gmra.mxu0 %v3301_v21  ;;  %v3850_v28 = vpop.f32.mrf.mxu3  ;;  %v3673_v54 = vpop.f32.mrf.mxu2 }
 0x428   :  { %v7870_v8 = vpop.f32.mrf.mxu0 }
 0x42b   :  { %v3853_v7 = vpop.f32.mrf.mxu3 }
 0x430   :  { %v7876_v29 = vpop.f32.mrf.mxu0 }
 0x431   :  { %v3483_v24 = vadd.f32 %v7847_v23, %v7876_v29 }
 0x438   :  { %v7882_v22 = vpop.f32.mrf.mxu0 }
 0x440   :  { %v7890_v58 = vpop.f32.mrf.mxu0 }
 0x448   :  { %v7898_v26 = vpop.f32.mrf.mxu0 }
 0x450   :  { %v7900_v44 = vpop.f32.mrf.mxu0 }
 0x458   :  { %v3392_v16 = vpop.f32.mrf.mxu0 }
 0x460   :  { %v3395_v13 = vpop.f32.mrf.mxu0 }
 0x461   :  { %v3498_v25 = vadd.f32 %v3497_v57, %v3395_v13  ;;  %v3855_v57 = vpop.f32.mrf.mxu3 }
 0x463   :  { %v3694_v18 = vadd.f32 %v3661_v50, %v3498_v25  ;;  %v3512_v50 = vpop.f32.mrf.mxu1  ;;  %v3676_v25 = vpop.f32.mrf.mxu2 }
 0x465   :  { %v7904_v11 = vadd.f32 %v3843_v45, %v3694_v18 }
 0x467   :  { %8379 = vst [vmem:[#allocation53_spill] sm:$0xff] %v7904_v11 }
 0x468   :  { %v3397_v21 = vpop.f32.mrf.mxu0 }
 0x469   :  { %v3858_v45 = vpop.f32.mrf.mxu3 }
 0x46b   :  { %v3514_v17 = vpop.f32.mrf.mxu1  ;;  %v3678_v62 = vpop.f32.mrf.mxu2 }
 0x470   :  { %v3400_v59 = vpop.f32.mrf.mxu0 }
 0x471   :  { %v3860_v4 = vpop.f32.mrf.mxu3  ;;  %v3503_v2 = vadd.f32 %v3502_v40, %v3400_v59  ;;  %v5081_v40 = vld [vmem:[#allocation14 + $0x68] sm:$0xf0] }
 0x478   :  { %v3402_v5 = vpop.f32.mrf.mxu0 }
 0x479   :  { %v3505_v35 = vadd.f32 %v3504_v41, %v3402_v5  ;;  %v7934_v5 = vpop.f32.mrf.mxu3 }
 0x480   :  { %v3405_v15 = vpop.f32.mrf.mxu0 }
 0x481   :  { %v3508_v32 = vadd.f32 %v3507_v52, %v3405_v15  ;;  %v3517_v52 = vpop.f32.mrf.mxu1 }
 0x483   :  { %v3698_v6 = vadd.f32 %v3671_v63, %v3508_v32  ;;  %v7919_v32 = vadd.f32 %v7835_v49, %v7862_v1  ;;  %v5299_v1 = vld [vmem:[#allocation14 + $0x74] sm:$0xf] }
 0x485   :  { %v3880_v15 = vadd.f32 %v3853_v7, %v3698_v6 }
 0x488   :  { %v3407_v13 = vpop.f32.mrf.mxu0 }
 0x489   :  { %v3510_v36 = vadd.f32 %v3509_v30, %v3407_v13 }
 0x48b   :  { %v3699_v11 = vadd.f32 %v3673_v54, %v3510_v36  ;;  %v3696_v36 = vadd.f32 %v3666_v10, %v3503_v2  ;;  %v3493_v2 = vadd.f32 %v7884_v14, %v7900_v44 }
 0x48d   :  { %v3881_v30 = vadd.f32 %v3855_v57, %v3699_v11  ;;  %v8419_v57 = vld [vmem:[#allocation38_spill] sm:$0xff] }
 0x48f   :  { %v3939_v63 = vadd.f32 %v7911_v27, %v3881_v30  ;;  %v5047_v30 = vld [vmem:[#allocation14 + $0x20] sm:$0xf] }
 0x490   :  { %v3410_v18 = vpop.f32.mrf.mxu0 }
 0x491   :  { %v3513_v53 = vadd.f32 %v3512_v50, %v3410_v18  ;;  %v3500_v50 = vadd.f32 %v3499_v47, %v3397_v21  ;;  %v3697_v18 = vadd.f32 %v3668_v55, %v3505_v35  ;;  %v7923_v55 = vadd.f32 %v7841_v42, %v7870_v8  ;;  %v3681_v35 = vpop.f32.mrf.mxu2  ;;  %v5300_v42 = vld [vmem:[#allocation14 + $0x74] sm:$0xf0] }
 0x492   :  { %v3878_v8 = vadd.f32 %v7906_v60, %v3696_v36  ;;  %v3957_v11 = vmax.f32 %v3939_v63, 0.0  ;;  %v3488_v60 = vadd.f32 %v7866_v56, %v7890_v58  ;;  %v3692_v21 = vadd.f32 %v7886_v20, %v3493_v2  ;;  %v8391_v56 = vld [vmem:[#allocation49_spill] sm:$0xff]  ;;  %v8392_v20 = vld [vmem:[#allocation52_spill] sm:$0xff]  ;;  %v5293_v2 = vld [vmem:[#allocation14 + $0x44] sm:$0xf] }
 0x493   :  { %v3700_v0 = vadd.f32 %v3676_v25, %v3513_v53  ;;  %v3695_v59 = vadd.f32 %v3663_v33, %v3500_v50  ;;  %v3879_v6 = vadd.f32 %v3850_v28, %v3697_v18  ;;  %v5295_v25 = vld [vmem:[#allocation14 + $0x54] sm:$0xf] }
 0x494   :  { %v3936_v23 = vadd.f32 %v7911_v27, %v3878_v8  ;;  %v8396_v36 = vld [vmem:[#allocation36_spill] sm:$0xff]  ;;  %v3865_v8 = vpop.f32.mrf.mxu3 }
 0x495   :  { %v3882_v39 = vadd.f32 %v3858_v45, %v3700_v0  ;;  %v5087_v0 = vld [vmem:[#allocation14 + $0x70] sm:$0xf]  ;;  %v3877_v47 = vadd.f32 %v7902_v38, %v3695_v59  ;;  %v3937_v10 = vadd.f32 %v7911_v27, %v3879_v6  ;;  %v3485_v38 = vadd.f32 %v7853_v48, %v7882_v22  ;;  %v5073_v45 = vld [vmem:[#allocation14 + $0x58] sm:$0xf0]  ;;  %v3519_v48 = vpop.f32.mrf.mxu1  ;;  %v8399_v6 = vld [vmem:[#allocation51_spill] sm:$0xff] }
 0x496   :  { %v5088_v28 = vor.u32 %v5300_v42, %v5087_v0  ;;  %vm3895_vm14 = vcmp.le.s32.totalorder %v8396_v36, 12  ;;  %v8397_v59 = vld [vmem:[#allocation45_spill] sm:$0xff]  ;;  %v3874_v63 = vadd.f32 %v8399_v6, %v3692_v21  ;;  %v3954_v61 = vmax.f32 %v3936_v23, 0.0  ;;  %v5049_v6 = vld [vmem:[#allocation14 + $0x28] sm:$0xf0] }
 0x497   :  { %v3940_v41 = vadd.f32 %v7911_v27, %v3882_v39  ;;  %v5089_v39 = vld [vmem:[#allocation14 + $0x78] sm:$0xf0]  ;;  %v3935_v58 = vadd.f32 %v7911_v27, %v3877_v47  ;;  %v5055_v47 = vld [vmem:[#allocation14 + $0x30] sm:$0xf] }
 0x498   :  { %v3412_v12 = vpop.f32.mrf.mxu0  ;;  %v5092_v14 = vor.u32 %v5299_v1, %v5089_v39  ;;  %4165 = vmatpush.bf16.msra.mxu2 %v5088_v28  ;;  %v8404_v39 = vld [vmem:[#allocation34_spill] sm:$0xff]  ;;  %v8420_v23 = vld [vmem:[#allocation41_spill] sm:$0xff] }
 0x499   :  { %v3515_v19 = vadd.f32 %v3514_v17, %v3412_v12  ;;  %v3958_v54 = vmax.f32 %v3940_v41, 0.0 }
 0x49a   :  { %4178 = vmatpush.bf16.msra.mxu3 %v5092_v14 }
 0x49b   :  { %v3701_v9 = vadd.f32 %v3678_v62, %v3515_v19  ;;  %v3938_v62 = vadd.f32 %v7911_v27, %v3880_v15  ;;  %v5079_v19 = vld [vmem:[#allocation14 + $0x60] sm:$0xf]  ;;  %v5076_v15 = vor.u32 %v5295_v25, %v5073_v45  ;;  %v5291_v25 = vld [vmem:[#allocation14 + $0x34] sm:$0xf]  ;;  %v5057_v45 = vld [vmem:[#allocation14 + $0x38] sm:$0xf0] }
 0x49c   :  { %v5080_v33 = vor.u32 %v5298_v46, %v5079_v19  ;;  %v3953_v46 = vmax.f32 %v3935_v58, 0.0 }
 0x49d   :  { %v3883_v13 = vadd.f32 %v3860_v4, %v3701_v9  ;;  %v3495_v4 = vadd.f32 %v7892_v3, %v3392_v16  ;;  %v5297_v3 = vld [vmem:[#allocation14 + $0x64] sm:$0xf]  ;;  %v3490_v9 = vadd.f32 %v7874_v43, %v7898_v26  ;;  %v5296_v26 = vld [vmem:[#allocation14 + $0x54] sm:$0xf0]  ;;  %v3956_v29 = vmax.f32 %v3938_v62, 0.0 }
 0x49e   :  { %v5084_v43 = vor.u32 %v5297_v3, %v5081_v40  ;;  %4166 = vmatpush.bf16.msra.mxu2 %v5080_v33  ;;  %v8405_v62 = vld [vmem:[#allocation50_spill] sm:$0xff]  ;;  %v5292_v16 = vld [vmem:[#allocation14 + $0x34] sm:$0xf0]  ;;  %v8410_v33 = vld [vmem:[#allocation43_spill] sm:$0xff] }
 0x49f   :  { %v3941_v17 = vadd.f32 %v7911_v27, %v3883_v13  ;;  %v3693_v44 = vadd.f32 %v7894_v34, %v3495_v4  ;;  %v5071_v34 = vld [vmem:[#allocation14 + $0x50] sm:$0xf]  ;;  %v3691_v22 = vadd.f32 %v8391_v56, %v3490_v9  ;;  %v3683_v4 = vpop.f32.mrf.mxu2  ;;  %v8409_v9 = vld [vmem:[#allocation39_spill] sm:$0xff]  ;;  %v3688_v40 = vadd.f32 %v8410_v33, %v3483_v24 }
 0x4a0   :  { %v3415_v53 = vpop.f32.mrf.mxu0  ;;  %v5072_v13 = vor.u32 %v5296_v26, %v5071_v34  ;;  %4179 = vmatpush.bf16.msra.mxu3 %v5084_v43  ;;  %v3932_v43 = vadd.f32 %v7911_v27, %v3874_v63  ;;  %v8415_v26 = vld [vmem:[#allocation32_spill] sm:$0xff]  ;;  %v5056_v56 = vor.u32 %v5292_v16, %v5055_v47  ;;  %v5031_v16 = vld [vmem:[#allocation14] sm:$0xf]  ;;  %v5286_v33 = vld [vmem:[#allocation14 + $0x4] sm:$0xf0] }
 0x4a1   :  { %v3959_v49 = vmax.f32 %v3941_v17, 0.0  ;;  %v3518_v12 = vadd.f32 %v3517_v52, %v3415_v53  ;;  %v3875_v31 = vadd.f32 %v8392_v20, %v3693_v44  ;;  %v3955_v52 = vmax.f32 %v3937_v10, 0.0  ;;  %v5063_v17 = vld [vmem:[#allocation14 + $0x40] sm:$0xf]  ;;  %v8398_v53 = vld [vmem:[#allocation47_spill] sm:$0xff]  ;;  %v8411_v10 = vld [vmem:[#allocation48_spill] sm:$0xff] }
 0x4a2   :  { %v3690_v7 = vadd.f32 %v8398_v53, %v3488_v60  ;;  %4167 = vmatpush.bf16.msra.mxu2 %v5072_v13  ;;  %v5290_v13 = vld [vmem:[#allocation14 + $0x24] sm:$0xf0]  ;;  %v3950_v36 = vmax.f32 %v3932_v43, 0.0  ;;  %v8442_v47 = vld [vmem:[#allocation28_spill] sm:$0xff]  ;;  %v5285_v34 = vld [vmem:[#allocation14 + $0x4] sm:$0xf] }
 0x4a3   :  { %5010 = vmatpush.msk.msra.mxu0 %vm7928_vm8, %v3959_v49  ;;  %v3702_v50 = vadd.f32 %v3681_v35, %v3518_v12  ;;  %vm8393_vm8 = vcmp.ge.s32.totalorder %v6618_v37, 1  ;;  %v5294_v35 = vld [vmem:[#allocation14 + $0x44] sm:$0xf0]  ;;  %v3689_v37 = vadd.f32 %v8397_v59, %v3485_v38  ;;  %v8400_v49 = vld [vmem:[#allocation53_spill] sm:$0xff]  ;;  %v3873_v12 = vadd.f32 %v8405_v62, %v3691_v22  ;;  %v8423_v22 = vld [vmem:[#allocation46_spill] sm:$0xff] }
 0x4a4   :  { %vm7993_vm15 = vmand %vm8393_vm8, %vm3897_vm0  ;;  %v3934_v0 = vadd.f32 %v7911_v27, %v8400_v49  ;;  %v5064_v19 = vor.u32 %v5294_v35, %v5063_v17  ;;  %4180 = vmatpush.bf16.msra.mxu3 %v5076_v15  ;;  %vm3892_vm8 = vcmp.le.s32.totalorder %v8415_v26, 12  ;;  %v8431_v17 = vld [vmem:[#allocation31_spill] sm:$0xff]  ;;  %v4017_v35 = vld [vmem:[#allocation13 + $0x8] sm:$0xff]  ;;  %v5048_v49 = vor.u32 %v5290_v13, %v5047_v30 }
 0x4a5   :  { %5011 = vmatpush.msk.msra.mxu0 %vm7942_vm6, %v3958_v54  ;;  %vm8401_vm6 = vcmp.ge.s32.totalorder %v6492_v51, 1  ;;  %v5065_v54 = vld [vmem:[#allocation14 + $0x48] sm:$0xf0]  ;;  %v3884_v28 = vadd.f32 %v7934_v5, %v3702_v50  ;;  %v3933_v51 = vadd.f32 %v7911_v27, %v3875_v31  ;;  %vm8023_vm0 = vmand %vm1522_vm11, %vm3895_vm14  ;;  %vm8412_vm11 = vcmp.ge.s32.totalorder %v8404_v39, 1  ;;  %v8432_v59 = vld [vmem:[#allocation44_spill] sm:$0xff] }
 0x4a6   :  { %vm8009_vm7 = vmand %vm8401_vm6, %vm3896_vm2  ;;  %v8408_v5 = vld [vmem:[#allocation35_spill] sm:$0xff]  ;;  %v5068_v44 = vor.u32 %v5293_v2, %v5065_v54  ;;  %v3952_v38 = vmax.f32 %v3934_v0, 0.0  ;;  %vm3902_vm6 = vcmp.le.s32.totalorder %v8419_v57, 12  ;;  %4168 = vmatpush.bf16.msra.mxu2 %v5064_v19  ;;  %v3871_v20 = vadd.f32 %v8423_v22, %v3689_v37  ;;  %v8435_v0 = vld [vmem:[#allocation42_spill] sm:$0xff] }
 0x4a7   :  { %5012 = vmatpush.msk.msra.mxu0 %vm7959_vm9, %v3957_v11  ;;  %vm3894_vm9 = vcmp.le.s32.totalorder %v8404_v39, 12  ;;  %vm3893_vm5 = vcmp.le.s32.totalorder %v8408_v5, 12  ;;  %v3872_v11 = vadd.f32 %v8411_v10, %v3690_v7  ;;  %v3942_v60 = vadd.f32 %v7911_v27, %v3884_v28  ;;  %v5039_v28 = vld [vmem:[#allocation14 + $0x10] sm:$0xf]  ;;  %v5287_v19 = vld [vmem:[#allocation14 + $0x14] sm:$0xf] }
 0x4a8   :  { %v3417_v18 = vpop.f32.mrf.mxu0  ;;  %vm8038_vm2 = vmand %vm8412_vm11, %vm3894_vm9  ;;  %v3951_v50 = vmax.f32 %v3933_v51, 0.0  ;;  %v3931_v31 = vadd.f32 %v7911_v27, %v3873_v12  ;;  %4181 = vmatpush.bf16.msra.mxu3 %v5068_v44  ;;  %v3870_v37 = vadd.f32 %v8432_v59, %v3688_v40  ;;  %v3929_v2 = vadd.f32 %v7911_v27, %v3871_v20  ;;  %v8439_v62 = vld [vmem:[#allocation40_spill] sm:$0xff]  ;;  %v8444_v43 = vld [vmem:[#allocation27_spill] sm:$0xff] }
 0x4a9   :  { %v3520_v41 = vadd.f32 %v3519_v48, %v3417_v18  ;;  %5013 = vmatpush.msk.msra.mxu0 %vm7978_vm1, %v3956_v29  ;;  %vm3903_vm1 = vcmp.le.s32.totalorder %v8409_v9, 12  ;;  %v3687_v29 = vadd.f32 %v8420_v23, %v7923_v55  ;;  %vm8074_vm9 = vmand %vm1519_vm12, %vm3892_vm8  ;;  %v8426_v18 = vld [vmem:[#allocation33_spill] sm:$0xff]  ;;  %vm3890_vm12 = vcmp.le.s32.totalorder %v8431_v17, 12  ;;  %v5033_v26 = vld [vmem:[#allocation14 + $0x8] sm:$0xf0] }
 0x4aa   :  { %v3930_v53 = vadd.f32 %v7911_v27, %v3872_v11  ;;  %v3960_v7 = vmax.f32 %v3942_v60, 0.0  ;;  %4169 = vmatpush.bf16.msra.mxu2 %v5056_v56  ;;  %v3949_v54 = vmax.f32 %v3931_v31, 0.0  ;;  %v3928_v51 = vadd.f32 %v7911_v27, %v3870_v37  ;;  %v5315_v23 = vld [vmem:[#allocation16 + $0x70] sm:$0xff]  ;;  %v5305_v48 = vld [vmem:[#allocation16 + $0x20] sm:$0xff]  ;;  %v5304_v22 = vld [vmem:[#allocation16 + $0x18] sm:$0xff] }
 0x4ab   :  { %v3703_v1 = vadd.f32 %v3683_v4, %v3520_v41  ;;  %5014 = vmatpush.msk.msra.mxu0 %vm7993_vm15, %v3955_v52  ;;  %vm8416_vm15 = vcmp.ge.s32.totalorder %v8408_v5, 1  ;;  %v8427_v52 = vld [vmem:[#allocation37_spill] sm:$0xff]  ;;  %v5060_v4 = vor.u32 %v5291_v25, %v5057_v45  ;;  %v3869_v42 = vadd.f32 %v8435_v0, %v3687_v29  ;;  %v5307_v45 = vld [vmem:[#allocation16 + $0x30] sm:$0xff]  ;;  %v5306_v29 = vld [vmem:[#allocation16 + $0x28] sm:$0xff] }
 0x4ac   :  { %vm8051_vm14 = vmand %vm8416_vm15, %vm3893_vm5  ;;  %v3686_v41 = vadd.f32 %v8427_v52, %v7919_v32  ;;  %v5289_v32 = vld [vmem:[#allocation14 + $0x24] sm:$0xf]  ;;  %v3948_v14 = vmax.f32 %v3930_v53, 0.0  ;;  %v8440_v5 = vld [vmem:[#allocation29_spill] sm:$0xff]  ;;  %v3947_v44 = vmax.f32 %v3929_v2, 0.0  ;;  %v3946_v11 = vmax.f32 %v3928_v51, 0.0 }
 0x4ad   :  { %v3885_v3 = vadd.f32 %v3865_v8, %v3703_v1  ;;  %5015 = vmatpush.msk.msra.mxu0 %vm8009_vm7, %v3954_v61  ;;  %vm8062_vm7 = vmand %vm1530_vm3, %vm3903_vm1  ;;  %vm3891_vm3 = vcmp.le.s32.totalorder %v8426_v18, 12  ;;  %vm4018_vm1 = vcmask 130048   ;;  %v8436_v61 = vld [vmem:[#allocation30_spill] sm:$0xff]  ;;  %v5288_v1 = vld [vmem:[#allocation14 + $0x14] sm:$0xf0]  ;;  %4182 = vmatpush.bf16.msra.mxu3 %v5060_v4  ;;  %v5052_v8 = vor.u32 %v5289_v32, %v5049_v6 }
 0x4ae   :  { %vm8100_vm11 = vmand %vm1518_vm4, %vm3891_vm3  ;;  %v3868_v12 = vadd.f32 %v8439_v62, %v3686_v41  ;;  %vm3888_vm8 = vcmp.le.s32.totalorder %v8440_v5, 12  ;;  %4170 = vmatpush.bf16.msra.mxu2 %v5048_v49  ;;  %v3927_v9 = vadd.f32 %v7911_v27, %v3869_v42  ;;  %v5316_v25 = vld [vmem:[#allocation16 + $0x78] sm:$0xff]  ;;  %v5313_v56 = vld [vmem:[#allocation16 + $0x60] sm:$0xff] }
 0x4af   :  { %v3943_v21 = vadd.f32 %v7911_v27, %v3885_v3  ;;  %5016 = vmatpush.msk.msra.mxu0 %vm8023_vm0, %v3953_v46  ;;  %vm8428_vm0 = vcmp.ge.s32.totalorder %v8419_v57, 1  ;;  %vm8115_vm4 = vmand %vm1517_vm13, %vm3890_vm12  ;;  %v5041_v46 = vld [vmem:[#allocation14 + $0x18] sm:$0xf0]  ;;  %vm8441_vm13 = vcmp.ge.s32.totalorder %v8436_v61, 1  ;;  %v5040_v3 = vor.u32 %v5288_v1, %v5039_v28  ;;  %v5303_v31 = vld [vmem:[#allocation16 + $0x10] sm:$0xff] }
 0x4b0   :  { %vm8085_vm5 = vmand %vm8428_vm0, %vm3902_vm6  ;;  %vm8443_vm6 = vcmp.ge.s32.totalorder %v8440_v5, 1  ;;  %v5044_v40 = vor.u32 %v5287_v19, %v5041_v46  ;;  %v3926_v10 = vadd.f32 %v7911_v27, %v3868_v12  ;;  %v3945_v60 = vmax.f32 %v3927_v9, 0.0  ;;  %v4016_v27 = vld [vmem:[#allocation13] sm:$0xff]  ;;  %v5308_v57 = vld [vmem:[#allocation16 + $0x38] sm:$0xff] }
 0x4b1   :  { %v3961_v58 = vmax.f32 %v3943_v21, 0.0  ;;  %5017 = vmatpush.msk.msra.mxu0 %vm8038_vm2, %v3952_v38  ;;  %vm3889_vm2 = vcmp.le.s32.totalorder %v8436_v61, 12  ;;  %4183 = vmatpush.bf16.msra.mxu3 %v5052_v8  ;;  %v5032_v38 = vor.u32 %v5286_v33, %v5031_v16  ;;  %vm8445_vm0 = vcmp.ge.s32.totalorder %v8444_v43, 1  ;;  %v5312_v20 = vld [vmem:[#allocation16 + $0x58] sm:$0xff]  ;;  %v5302_v52 = vld [vmem:[#allocation16 + $0x8] sm:$0xff]  ;;  %v5309_v15 = vld [vmem:[#allocation16 + $0x40] sm:$0xff] }
 0x4b2   :  { %vm3907_vm15 = vmand %vm8441_vm13, %vm3889_vm2  ;;  %4171 = vmatpush.bf16.msra.mxu2 %v5040_v3  ;;  %v5036_v21 = vor.u32 %v5285_v34, %v5033_v26  ;;  %v3944_v24 = vmax.f32 %v3926_v10, 0.0  ;;  %v5310_v41 = vld [vmem:[#allocation16 + $0x48] sm:$0xff]  ;;  %v4369_v17 = vld [vmem:[#allocation17 + $0x78] sm:$0xff] }
 0x4b3   :  { %5018 = vmatpush.msk.msra.mxu0 %vm8051_vm14, %v3951_v50  ;;  %5026 = vmatpush.msk.msra.mxu1 %vm8062_vm7, %v3961_v58  ;;  %vm3887_vm14 = vcmp.le.s32.totalorder %v8442_v47, 12  ;;  %vm3906_vm7 = vmand %vm8443_vm6, %vm3888_vm8  ;;  %v5314_v50 = vld [vmem:[#allocation16 + $0x68] sm:$0xff]  ;;  %v5311_v58 = vld [vmem:[#allocation16 + $0x50] sm:$0xff] }
 0x4b4   :  { %vm3905_vm3 = vmand %vm1514_vm10, %vm3887_vm14  ;;  %v4367_v4 = vld [vmem:[#allocation17 + $0x68] sm:$0xff]  ;;  %v4366_v59 = vld [vmem:[#allocation17 + $0x60] sm:$0xff] }
 0x4b5   :  { %5019 = vmatpush.msk.msra.mxu0 %vm8074_vm9, %v3950_v36  ;;  %5027 = vmatpush.msk.msra.mxu1 %vm8085_vm5, %v3960_v7  ;;  %vm3886_vm9 = vcmp.le.s32.totalorder %v8444_v43, 12  ;;  %v5301_v36 = vld [vmem:[#allocation16] sm:$0xff]  ;;  %v4365_v37 = vld [vmem:[#allocation17 + $0x58] sm:$0xff]  ;;  %v4364_v53 = vld [vmem:[#allocation17 + $0x50] sm:$0xff] }
 0x4b6   :  { %5028 = vmatmul.msk.f32.vlgmr.msra.gmra.mxu1 %vm4018_vm1, %v4017_v35  ;;  %vm3904_vm5 = vmand %vm8445_vm0, %vm3886_vm9  ;;  %4184 = vmatpush.bf16.msra.mxu3 %v5044_v40  ;;  %v4368_v35 = vld [vmem:[#allocation17 + $0x70] sm:$0xff]  ;;  %v4363_v7 = vld [vmem:[#allocation17 + $0x48] sm:$0xff] }
 0x4b7   :  { %5020 = vmatpush.msk.msra.mxu0 %vm8100_vm11, %v3949_v54  ;;  %4172 = vmatpush.bf16.msra.mxu2 %v5032_v38  ;;  %v4362_v32 = vld [vmem:[#allocation17 + $0x40] sm:$0xff]  ;;  %v4361_v6 = vld [vmem:[#allocation17 + $0x38] sm:$0xff]  ;;  %v4360_v51 = vld [vmem:[#allocation17 + $0x30] sm:$0xff] }
 0x4b8   :  { %4340 = vmatpush.bf16.msrb.mxu1 %v5316_v25  ;;  %v4079_v63 = vld [vmem:[%s8162_s11] sm:$0x3]  ;;  %v4358_v5 = vld [vmem:[#allocation17 + $0x20] sm:$0xff]  ;;  %v4356_v46 = vld [vmem:[#allocation17 + $0x10] sm:$0xff] }
 0x4b9   :  { %5021 = vmatpush.msk.msra.mxu0 %vm8115_vm4, %v3948_v14  ;;  %v4081_v49 = vperm.slane %v4079_v63, 0  ;;  %v4082_v0 = vperm.slane %v4079_v63, 1  ;;  %v4359_v14 = vld [vmem:[#allocation17 + $0x28] sm:$0xff]  ;;  %v4357_v19 = vld [vmem:[#allocation17 + $0x18] sm:$0xff]  ;;  %v4354_v9 = vld [vmem:[#allocation17] sm:$0xff] }
 0x4ba   :  { %4185 = vmatpush.bf16.msra.mxu3 %v5036_v21  ;;  %v4355_v3 = vld [vmem:[#allocation17 + $0x8] sm:$0xff]  ;;  %v5338_v34 = vld [vmem:[%s8166_s15] ss:$0 sm:$0xff] }
 0x4bb   :  { %5022 = vmatpush.msk.msra.mxu0 %vm3907_vm15, %v3947_v44  ;;  %4374 = vmatpush.msrb.mxu2 %v4369_v17  ;;  %v5337_v44 = vld [vmem:[%s8164_s13] ss:$0 sm:$0xff] }
 0x4bc   :  { %4341 = vmatpush.bf16.msrb.mxu1 %v5315_v23 }
 0x4bd   :  { %5023 = vmatpush.msk.msra.mxu0 %vm3906_vm7, %v3946_v11  ;;  %4375 = vmatpush.msrb.mxu2 %v4368_v35 }
 0x4bf   :  { %5024 = vmatpush.msk.msra.mxu0 %vm3905_vm3, %v3945_v60  ;;  %4376 = vmatpush.msrb.mxu2 %v4367_v4 }
 0x4c0   :  { %4342 = vmatpush.bf16.msrb.mxu1 %v5314_v50 }
 0x4c1   :  { %5025 = vmatpush.msk.msra.mxu0 %vm3904_vm5, %v3944_v24  ;;  %4377 = vmatpush.msrb.mxu2 %v4366_v59 }
 0x4c2   :  { %4038 = vmatmul.f32.vlgmr.msra.gmra.mxu0 %v4016_v27 }
 0x4c3   :  { %4327 = vmatpush.bf16.msrb.mxu0 %v5308_v57  ;;  %4378 = vmatpush.msrb.mxu2 %v4365_v37 }
 0x4c4   :  { %4343 = vmatpush.bf16.msrb.mxu1 %v5313_v56 }
 0x4c5   :  { %4379 = vmatpush.msrb.mxu2 %v4364_v53 }
 0x4c7   :  { %4328 = vmatpush.bf16.msrb.mxu0 %v5307_v45  ;;  %4380 = vmatpush.msrb.mxu2 %v4363_v7 }
 0x4c8   :  { %4344 = vmatpush.bf16.msrb.mxu1 %v5312_v20 }
 0x4c9   :  { %4381 = vmatpush.msrb.mxu2 %v4362_v32 }
 0x4cb   :  { %4329 = vmatpush.bf16.msrb.mxu0 %v5306_v29  ;;  %4382 = vmatpush.msrb.mxu2 %v4361_v6 }
 0x4cc   :  { %4345 = vmatpush.bf16.msrb.mxu1 %v5311_v58 }
 0x4cd   :  { %4383 = vmatpush.msrb.mxu2 %v4360_v51 }
 0x4cf   :  { %4330 = vmatpush.bf16.msrb.mxu0 %v5305_v48  ;;  %4384 = vmatpush.msrb.mxu2 %v4359_v14 }
 0x4d0   :  { %4346 = vmatpush.bf16.msrb.mxu1 %v5310_v41 }
 0x4d1   :  { %4385 = vmatpush.msrb.mxu2 %v4358_v5 }
 0x4d3   :  { %4331 = vmatpush.bf16.msrb.mxu0 %v5304_v22  ;;  %4386 = vmatpush.msrb.mxu2 %v4357_v19 }
 0x4d4   :  { %4347 = vmatpush.bf16.msrb.mxu1 %v5309_v15 }
 0x4d5   :  { %4387 = vmatpush.msrb.mxu2 %v4356_v46 }
 0x4d7   :  { %4332 = vmatpush.bf16.msrb.mxu0 %v5303_v31  ;;  %4388 = vmatpush.msrb.mxu2 %v4355_v3 }
 0x4d9   :  { %4389 = vmatpush.msrb.mxu2 %v4354_v9 }
 0x4db   :  { %4333 = vmatpush.bf16.msrb.mxu0 %v5302_v52 }
 0x4df   :  { %4334 = vmatpush.bf16.msrb.mxu0 %v5301_v36 }
 0x533   :  { %v4059_v55 = vpop.f32.mrf.mxu1 }
 0x53f   :  { %v4039_v18 = vpop.f32.mrf.mxu0 }
 0x540   :  { %v4060_v30 = vadd.f32 %v4059_v55, %v4039_v18 }
 0x542   :  { %v4062_v13 = vpack.c.bf16 %v4060_v30, %v4060_v30 }
 0x544   :  { %4173 = vmatmul.bf16.vlgmr.msra.gmra.mxu2 %v4062_v13  ;;  %4186 = vmatmul.bf16.vlgmr.msra.gmra.mxu3 %v4062_v13 }
 0x5c7   :  { %v4174_v42 = vpop.f32.mrf.mxu2  ;;  %v4187_v2 = vpop.f32.mrf.mxu3 }
 0x5c8   :  { %v4175_v54 = vadd.f32 %v4174_v42, %v4081_v49  ;;  %v4188_v61 = vadd.f32 %v4187_v2, %v4082_v0 }
 0x5ca   :  { %v4191_v28 = vmax.f32 %v4175_v54, 0.0  ;;  %v4192_v1 = vmax.f32 %v4188_v61, 0.0 }
 0x5cc   :  { %v4193_v39 = vpack.c.bf16 %v4191_v28, %v4191_v28  ;;  %v4194_v8 = vpack.c.bf16 %v4192_v1, %v4192_v1 }
 0x5ce   :  { %4335 = vmatmul.bf16.vlgmr.msrb.gmra.mxu0 %v4193_v39  ;;  %4348 = vmatmul.bf16.vlgmr.msrb.gmra.mxu1 %v4194_v8 }
 0x5cf   :  { %v4176_v62 = vpop.f32.mrf.mxu2  ;;  %v4189_v12 = vpop.f32.mrf.mxu3 }
 0x64b   :  { %v4336_v47 = vpop.f32.mrf.mxu0  ;;  %v4349_v16 = vpop.f32.mrf.mxu1 }
 0x64c   :  { %v4337_v33 = vadd.f32 %v5337_v44, %v4336_v47 }
 0x64e   :  { %v4350_v40 = vadd.f32 %v4349_v16, %v4337_v33 }
 0x650   :  { %v4353_v10 = vmax.f32 %v4350_v40, 0.0 }
 0x652   :  { %4390 = vmatmul.f32.vlgmr.msrb.gmra.mxu2 %v4353_v10 }
 0x653   :  { %v4338_v11 = vpop.f32.mrf.mxu0  ;;  %v4351_v43 = vpop.f32.mrf.mxu1 }
 0x6d5   :  { %v4391_v26 = vpop.f32.mrf.mxu2 }
 0x6d6   :  { %v4392_v38 = vadd.f32 %v5338_v34, %v4391_v26 }
 0x6d8   :  { %4394 = vst [vmem:[#allocation19] sm:$0xff] %v4392_v38 }
 0x6d9   :  { %4405 = dma.vmem_to_hbm [thread:$0]  %s4401_s7, 128, %s4403_s10, [#allocation4]  }
 0x6da   :  { %5616 = dma.done.wait [#allocation4], 128  }
 0x6db   :  { %5617 = vsyncadd [#allocation4], 4294967168 }
 0x6dc   :  { %4410 = vsyncpa [#allocation3], 1 }
 0x6dd   :  { %4411 = vsyncpa [#allocation6], 1 }
 0x6de   :  { %4412 = vsyncpa [#allocation9], 1 }
 0x6df   :  { %4413 = vsyncpa [#allocation12], 1 }
 0x6e0   :  { %4414 = vsyncpa [#allocation15], 1 }
 0x6e1   :  { %4415 = vsyncpa [#allocation18], 1 }
 0x6e2   :  { %4416 = vsyncpa [#allocation4], 1 }

</bundles_post_ra>
